<compile_context>
chip_gen: v6e
topology: v6e:2x2x1
jax: 0.10.0
libtpu: 0.0.40
codegen_flags: <defaults>
</compile_context>

<pallas_src>
import functools

import jax
import jax.numpy as jnp
from jax.experimental import pallas as pl
from jax.experimental.pallas import tpu as pltpu


# ----------------------------------------------------------------------------
# Fused FFN kernel: o = relu(x @ W1 + b1) @ W2 + b2   for one (tm, E) row tile
# ----------------------------------------------------------------------------
def ffn_kernel(x_ref, w1_ref, b1_ref, w2_ref, b2_ref, o_ref):
    # GEMM 1: bf16 operands on the MXU, f32 accumulation.
    x_bf = x_ref[...].astype(jnp.bfloat16)                         # (tm, E)
    h = jnp.dot(x_bf, w1_ref[...],
                preferred_element_type=jnp.float32)                # (tm, 4E) f32
    # Bias + ReLU in f32 (VPU work hides under the MXU; v5e has no bf16 VPU).
    h = jnp.maximum(h + b1_ref[...], 0.0)
    # GEMM 2: cast activations to bf16; weights already bf16.
    y = jnp.dot(h.astype(jnp.bfloat16), w2_ref[...],
                preferred_element_type=jnp.float32) + b2_ref[...]  # (tm, E) f32
    # Dropout(0.2): identity at inference.
    o_ref[...] = y.astype(o_ref.dtype)


# ----------------------------------------------------------------------------
# Tile-size selection: big tiles, >=2 grid steps when possible, divisor of M
# ----------------------------------------------------------------------------
def _choose_tm(m):
    """Largest row tile <= 512 such that (a) the grid has >= 2 steps when M
    allows (both v7x TensorCores get work) and (b) tm divides M so no pad /
    output-slice HBM round-trip is needed."""
    if m <= 16:
        return max(8, m)                       # single full-array block
    cap = max(8, min(512, (m // 2) // 8 * 8))  # <= M/2 -> at least 2 tiles
    for tm in range(cap, 7, -8):
        if m % tm == 0:
            return tm
    return cap                                 # non-divisible M: padded last tile


# ----------------------------------------------------------------------------
# Wrapper: flatten (B, T, E) -> (M, E), tile rows, keep bf16 weights resident
# ----------------------------------------------------------------------------
@functools.partial(jax.jit, static_argnames=("tm",))
def feed_forward(x, w1_t, b1, w2_t, b2, *, tm=None):
    """x: (B,T,E) f32; w1_t: (E,4E); b1: (1,4E); w2_t: (4E,E); b2: (1,E)."""
    B, T, E = x.shape
    Hd = w1_t.shape[1]
    assert w1_t.shape == (E, Hd) and w2_t.shape == (Hd, E)
    assert b1.shape == (1, Hd) and b2.shape == (1, E)
    assert E % 128 == 0 and Hd % 128 == 0, "lane dims must be multiples of 128"

    # bf16 weights once in the wrapper (half the resident VMEM + weight DMA);
    # biases stay f32 so the elementwise chain runs in f32.
    w1_bf = w1_t.astype(jnp.bfloat16)
    w2_bf = w2_t.astype(jnp.bfloat16)
    b1_f = b1.astype(jnp.float32)
    b2_f = b2.astype(jnp.float32)

    M = B * T
    if tm is None:
        tm = _choose_tm(M)
    x2 = x.reshape(M, E)
    n_tiles = pl.cdiv(M, tm)
    M_pad = n_tiles * tm
    if M_pad != M:
        # Rare fallback (tm is chosen to divide M whenever possible).
        x2 = jnp.pad(x2, ((0, M_pad - M), (0, 0)))

    # VMEM need: double-buffered x/out blocks + single-buffered bf16 weights
    # + biases + the (tm, 4E) f32 hidden intermediate.  Cap below v7x's 64 MiB
    # physical VMEM so Mosaic keeps headroom for internal scratch.
    need = (2 * 2 * tm * E * 4            # x + out blocks, double-buffered f32
            + (E * Hd + Hd * E) * 2       # bf16 weights, single-buffered
            + (Hd + E) * 4                # biases
            + tm * Hd * 4)                # hidden activation
    vmem_limit = int(min(max(2 * need, 32 * 1024 * 1024), 48 * 1024 * 1024))

    resident = dict(pipeline_mode=pl.Buffered(1))  # constant blocks: 1 buffer

    out = pl.pallas_call(
        ffn_kernel,
        out_shape=jax.ShapeDtypeStruct((M_pad, E), x.dtype),
        grid_spec=pltpu.PrefetchScalarGridSpec(
            num_scalar_prefetch=0,
            grid=(n_tiles,),
            in_specs=[
                pl.BlockSpec((tm, E), lambda i: (i, 0)),              # x streams
                pl.BlockSpec((E, Hd), lambda i: (0, 0), **resident),  # W1 resident
                pl.BlockSpec((1, Hd), lambda i: (0, 0), **resident),  # b1 resident
                pl.BlockSpec((Hd, E), lambda i: (0, 0), **resident),  # W2 resident
                pl.BlockSpec((1, E), lambda i: (0, 0), **resident),   # b2 resident
            ],
            out_specs=pl.BlockSpec((tm, E), lambda i: (i, 0)),
        ),
        compiler_params=pltpu.CompilerParams(
            dimension_semantics=("parallel",),   # row tiles shard across v7x TCs
            vmem_limit_bytes=vmem_limit,
        ),
    )(x2, w1_bf, b1_f, w2_bf, b2_f)

    if M_pad != M:
        out = out[:M]
    return out.reshape(B, T, E)


# ----------------------------------------------------------------------------
# References for verification
# ----------------------------------------------------------------------------
def reference_f32(x2, w1_t, b1, w2_t, b2):
    h = jnp.maximum(x2 @ w1_t + b1[0], 0.0)
    return h @ w2_t + b2[0]          # dropout is identity at inference


def reference_bf16(x2, w1_t, b1, w2_t, b2):
    # Same bf16-operand / f32-accumulate recipe as the kernel.
    h = jnp.dot(x2.astype(jnp.bfloat16), w1_t.astype(jnp.bfloat16),
                preferred_element_type=jnp.float32) + b1[0]
    h = jnp.maximum(h, 0.0)
    return jnp.dot(h.astype(jnp.bfloat16), w2_t.astype(jnp.bfloat16),
                   preferred_element_type=jnp.float32) + b2[0]


if __name__ == "__main__":
    # Small-but-consistent shapes: n_embd=384 as in the module, short sequence.
    B, T = 2, 64
    n_embd = 384
    hidden = 4 * n_embd              # 1536

    key = jax.random.PRNGKey(0)
    kx, k1, kb1, k2, kb2 = jax.random.split(key, 5)

    x = jax.random.normal(kx, (B, T, n_embd), jnp.float32)
    # Linear weights, already transposed to (in_features, out_features).
    w1_t = 0.02 * jax.random.normal(k1, (n_embd, hidden), jnp.float32)
    b1 = 0.02 * jax.random.normal(kb1, (1, hidden), jnp.float32)
    w2_t = 0.02 * jax.random.normal(k2, (hidden, n_embd), jnp.float32)
    b2 = 0.02 * jax.random.normal(kb2, (1, n_embd), jnp.float32)

    out = feed_forward(x, w1_t, b1, w2_t, b2)
    out = jax.block_until_ready(out)
    assert out.shape == (B, T, n_embd)

    out2 = out.reshape(-1, n_embd)
    x2 = x.reshape(-1, n_embd)

    # Tight check vs a reference using the same bf16-operand recipe.
    ref16 = reference_bf16(x2, w1_t, b1, w2_t, b2)
    assert jnp.allclose(out2, ref16, atol=5e-3, rtol=5e-3), "mismatch vs bf16 reference"

    # Sanity check vs the full-f32 PyTorch-equivalent math (bf16-loosened tol).
    ref32 = reference_f32(x2, w1_t, b1, w2_t, b2)
    assert jnp.allclose(out2, ref32, atol=3e-2, rtol=3e-2), "mismatch vs f32 reference"

    print("KERNEL_OK")
</pallas_src>

<mosaic_0001>
module attributes {stable_mosaic.version = 11 : i64} {
  func.func @ffn_kernel(%arg0: i32, %arg1: memref<64x384xf32, #tpu.memory_space<vmem>>, %arg2: memref<384x1536xbf16, #tpu.memory_space<vmem>>, %arg3: memref<1x1536xf32, #tpu.memory_space<vmem>>, %arg4: memref<1536x384xbf16, #tpu.memory_space<vmem>>, %arg5: memref<1x384xf32, #tpu.memory_space<vmem>>, %arg6: memref<64x384xf32, #tpu.memory_space<vmem>>) attributes {dimension_semantics = [#tpu.dimension_semantics<parallel>], iteration_bounds = array<i64: 2>, scalar_prefetch = 0 : i64, scratch_operands = 0 : i64, tpu.core_type = #tpu.core_type<tc>, window_params = [{transform_indices = @transform_0, window_bounds = array<i64: 64, 384>}, {pipeline_mode = #tpu.pipeline_mode<synchronous>, transform_indices = @transform_1, window_bounds = array<i64: 384, 1536>}, {pipeline_mode = #tpu.pipeline_mode<synchronous>, transform_indices = @transform_2, window_bounds = array<i64: 1, 1536>}, {pipeline_mode = #tpu.pipeline_mode<synchronous>, transform_indices = @transform_3, window_bounds = array<i64: 1536, 384>}, {pipeline_mode = #tpu.pipeline_mode<synchronous>, transform_indices = @transform_4, window_bounds = array<i64: 1, 384>}, {transform_indices = @transform_5, window_bounds = array<i64: 64, 384>}]} {
    %c0 = arith.constant 0 : index
    %c0_0 = arith.constant 0 : index
    %0 = vector.load %arg1[%c0, %c0_0] : memref<64x384xf32, #tpu.memory_space<vmem>>, vector<64x384xf32>
    %1 = arith.truncf %0 : vector<64x384xf32> to vector<64x384xbf16>
    %c0_1 = arith.constant 0 : index
    %c0_2 = arith.constant 0 : index
    %2 = vector.load %arg2[%c0_1, %c0_2] : memref<384x1536xbf16, #tpu.memory_space<vmem>>, vector<384x1536xbf16>
    %cst = arith.constant dense<0.000000e+00> : vector<64x1536xf32>
    %3 = tpu.matmul %1, %2, %cst {dimension_numbers = #tpu.dot_dimension_numbers<[1], [0], [0], [1], [0, 0, 1, 1], [], []>} : vector<64x384xbf16>, vector<384x1536xbf16>, vector<64x1536xf32> -> vector<64x1536xf32>
    %c0_3 = arith.constant 0 : index
    %c0_4 = arith.constant 0 : index
    %4 = vector.load %arg3[%c0_3, %c0_4] : memref<1x1536xf32, #tpu.memory_space<vmem>>, vector<1x1536xf32>
    %5 = vector.broadcast %4 : vector<1x1536xf32> to vector<64x1536xf32>
    %6 = arith.addf %3, %5 : vector<64x1536xf32>
    %cst_5 = arith.constant 0.000000e+00 : f32
    %7 = vector.broadcast %cst_5 : f32 to vector<64x1536xf32>
    %8 = arith.maximumf %6, %7 : vector<64x1536xf32>
    %9 = arith.truncf %8 : vector<64x1536xf32> to vector<64x1536xbf16>
    %c0_6 = arith.constant 0 : index
    %c0_7 = arith.constant 0 : index
    %10 = vector.load %arg4[%c0_6, %c0_7] : memref<1536x384xbf16, #tpu.memory_space<vmem>>, vector<1536x384xbf16>
    %cst_8 = arith.constant dense<0.000000e+00> : vector<64x384xf32>
    %11 = tpu.matmul %9, %10, %cst_8 {dimension_numbers = #tpu.dot_dimension_numbers<[1], [0], [0], [1], [0, 0, 1, 1], [], []>} : vector<64x1536xbf16>, vector<1536x384xbf16>, vector<64x384xf32> -> vector<64x384xf32>
    %c0_9 = arith.constant 0 : index
    %c0_10 = arith.constant 0 : index
    %12 = vector.load %arg5[%c0_9, %c0_10] : memref<1x384xf32, #tpu.memory_space<vmem>>, vector<1x384xf32>
    %13 = vector.broadcast %12 : vector<1x384xf32> to vector<64x384xf32>
    %14 = arith.addf %11, %13 : vector<64x384xf32>
    %c0_11 = arith.constant 0 : index
    %c0_12 = arith.constant 0 : index
    %15 = vector.load %arg6[%c0_11, %c0_12] : memref<64x384xf32, #tpu.memory_space<vmem>>, vector<64x384xf32>
    tpu.vector_store %arg6[%c0_11, %c0_12], %14 {strides = array<i32>} : memref<64x384xf32, #tpu.memory_space<vmem>>, vector<64x384xf32>,
    return
  }
  func.func @transform_0(%arg0: i32) -> (i32, i32) {
    %c0_i32 = arith.constant 0 : i32
    %c0_i32_0 = arith.constant 0 : i32
    return %arg0, %c0_i32 : i32, i32
  }
  func.func @transform_1(%arg0: i32) -> (i32, i32) {
    %c0_i32 = arith.constant 0 : i32
    %c0_i32_0 = arith.constant 0 : i32
    %c0_i32_1 = arith.constant 0 : i32
    return %c0_i32, %c0_i32_0 : i32, i32
  }
  func.func @transform_2(%arg0: i32) -> (i32, i32) {
    %c0_i32 = arith.constant 0 : i32
    %c0_i32_0 = arith.constant 0 : i32
    %c0_i32_1 = arith.constant 0 : i32
    return %c0_i32, %c0_i32_0 : i32, i32
  }
  func.func @transform_3(%arg0: i32) -> (i32, i32) {
    %c0_i32 = arith.constant 0 : i32
    %c0_i32_0 = arith.constant 0 : i32
    %c0_i32_1 = arith.constant 0 : i32
    return %c0_i32, %c0_i32_0 : i32, i32
  }
  func.func @transform_4(%arg0: i32) -> (i32, i32) {
    %c0_i32 = arith.constant 0 : i32
    %c0_i32_0 = arith.constant 0 : i32
    %c0_i32_1 = arith.constant 0 : i32
    return %c0_i32, %c0_i32_0 : i32, i32
  }
  func.func @transform_5(%arg0: i32) -> (i32, i32) {
    %c0_i32 = arith.constant 0 : i32
    %c0_i32_0 = arith.constant 0 : i32
    return %arg0, %c0_i32 : i32, i32
  }
}

</mosaic_0001>

<bundles_post_ra>
// kernel: feed_forward.1
= control target key start
LH: loop header
LB: loop body
LE: loop exit
PB: predicated region body
PF: predicated region fallthrough
CT: control target
= control target key end

     0   :  { %10 = vsyncpa [#allocation3], 0  ;;  %s10818_s0 = inlined_call_operand.vmem [shape: f32[128,384], index: 0, kind: input, shape index: {}]   ;;  %s10819_s1 = inlined_call_operand.vmem [shape: bf16[384,1536], index: 1, kind: input, shape index: {}]   ;;  %s10820_s2 = inlined_call_operand.vmem [shape: f32[1,1536], index: 2, kind: input, shape index: {}]   ;;  %s10821_s3 = inlined_call_operand.vmem [shape: bf16[1536,384], index: 3, kind: input, shape index: {}]   ;;  %s10822_s4 = inlined_call_operand.vmem [shape: f32[1,384], index: 4, kind: input, shape index: {}]   ;;  %s10823_s5 = inlined_call_operand.hbm [shape: f32[128,384], index: 5, kind: output, shape index: {}]  }
   0x1   :  { %12 = vsyncpa [#allocation3 + $0x1], 0  ;;  %s7729_s18 = smov 0   ;;  %s7731_s19 = smov 0  }
   0x2   :  { %s7733_s20 = smov 0   ;;  %s7735_s21 = smov 0  }
   0x3 LB: > { %s7750_s22 = sadd.s32 4294967295, %s7693_s21   ;;  %s5944_s23 = sadd.s32 4294967294, %s7693_s21   ;;  %s7693_s21 = sphi %s7735_s21, %s10963_s21   ;;  %s7689_s20 = sphi %s7733_s20, %s10962_s20   ;;  %s7685_s19 = sphi %s7731_s19, %s10961_s19   ;;  %s7681_s18 = sphi %s7729_s18, %s10960_s18  }
   0x4   : > { %s7754_s24 = sadd.s32 1, %s7693_s21   ;;  %s135_s25 = sadd.s32 1, %s7689_s20 }
   0x5   : > { %s132_s26 = ssub.s32 %s7693_s21, %s7754_s24  ;;  %p145_p0 = scmp.ne.s32.totalorder %s7689_s20, %s7685_s19 }
   0x6   : > { %p133_p1 = scmp.eq.s32.totalorder %s132_s26, 0  ;;  %p146_p2 = scmp.eq.s32.totalorder %s7750_s22, 1 }
   0x7   : > { %p151_p3 = scmp.ne.s32.totalorder %s7685_s19, %s7681_s18  ;;  %p152_p4 = scmp.eq.s32.totalorder %s5944_s23, 1 }
   0x8   : > { %s7765_s27 = scalar_select %p133_p1, %s7689_s20, %s135_s25  }
   0x9   : > { %p7767_p5 = por %p146_p2, %p145_p0  ;;  %p7771_p6 = por %p152_p4, %p151_p3 }
   0xa   : > { %p5947_p7 = scmp.ge.s32.totalorder %s7693_s21, 1  ;;  %p192_p8 = scmp.lt.s32.totalorder %s7693_s21, 3 }
   0xc   : > { %p193_p9 = pnand %p5947_p7, %p192_p8 }
   0xe   : > { %196 = sbr.rel (%p193_p9) target bundleno = 854 (0x356), region = 40 }
  0x13   : > { %v6816_v0 = vld [vmem:[%s10819_s1 + $0x2a4] ss:$48 sps:$4 sm:$0xff]   ;;  %v7695_v2 = vmov 0   ;;  %v6820_v3 = vld [vmem:[%s10819_s1 + $0x2a0] ss:$48 sps:$4 sm:$0xff]   ;;  %s5948_s17 = sshll.u32 %s7750_s22, 3 }
  0x14   : > { %v6818_v1 = vld [vmem:[%s10819_s1 + $0x8a4] ss:$48 sps:$4 sm:$0xff]   ;;  %2163 = vmatprep.mubr.bf16.mxu1 %v7695_v2  ;;  %2058 = vmatprep.subr.bf16.mxu0 %v6816_v0  ;;  %v6821_v4 = vld [vmem:[%s10819_s1 + $0x8a0] ss:$48 sps:$4 sm:$0xff]   ;;  %p222_p10 = scmp.lt.s32.totalorder %s5948_s17, 15  ;;  %s218_s11 = sand.u32 1, %s7685_s19  }
  0x15   : > { %2131 = vmatprep.subr.bf16.mxu1 %v6818_v1  ;;  %v6822_v5 = vld [vmem:[%s10819_s1 + $0x244] ss:$48 sps:$4 sm:$0xff]   ;;  %2059 = vmatpush1.bf16.msra.mxu0 %v6820_v3  ;;  %v6826_v7 = vld [vmem:[%s10819_s1 + $0x240] ss:$48 sps:$4 sm:$0xff]   ;;  %v6868_v36 = vld [vmem:[%s10819_s1 + $0x2ac] ss:$48 sps:$4 sm:$0xff]  }
  0x16   : > { %2132 = vmatpush1.bf16.msra.mxu1 %v6821_v4  ;;  %v6824_v6 = vld [vmem:[%s10819_s1 + $0x844] ss:$48 sps:$4 sm:$0xff]   ;;  %2060 = vmatprep.subr.bf16.mxu0 %v6822_v5  ;;  %v6827_v8 = vld [vmem:[%s10819_s1 + $0x840] ss:$48 sps:$4 sm:$0xff]   ;;  %s10965_s17 = smov (!%p222_p10, %s5948_s17), 15  ;;  %s6773_s13 = smul.u32 3072, %s7750_s22 }
  0x17   : > { %2133 = vmatprep.subr.bf16.mxu1 %v6824_v6  ;;  %v6828_v9 = vld [vmem:[%s10819_s1 + $0x1e4] ss:$48 sps:$4 sm:$0xff]   ;;  %v6832_v11 = vld [vmem:[%s10819_s1 + $0x1e0] ss:$48 sps:$4 sm:$0xff]   ;;  %s6772_s9 = smul.u32 24, %s10965_s17  ;;  %s10778_s17 = scalar_lea.sflag [#allocation3], %s218_s11 }
  0x18   : > { %v6830_v10 = vld [vmem:[%s10819_s1 + $0x7e4] ss:$48 sps:$4 sm:$0xff]   ;;  %v6833_v12 = vld [vmem:[%s10819_s1 + $0x7e0] ss:$48 sps:$4 sm:$0xff]   ;;  %v6866_v38 = vld [vmem:[%s10819_s1 + $0x2a8] ss:$48 sps:$4 sm:$0xff]   ;;  %s10773_s23 = scalar_lea.hbm %s10823_s5, %s6773_s13 }
  0x19   : > { %2061 = vmatpush1.bf16.msra.mxu0 %v6826_v7  ;;  %v6834_v13 = vld [vmem:[%s10819_s1 + $0x184] ss:$48 sps:$4 sm:$0xff]   ;;  %v6838_v15 = vld [vmem:[%s10819_s1 + $0x180] ss:$48 sps:$4 sm:$0xff]   ;;  %s7869_s26 = scalar_lea.vmem %s10818_s0, %s6772_s9  ;;  %v6874_v41 = vld [vmem:[%s10819_s1 + $0x24c] ss:$48 sps:$4 sm:$0xff]  }
  0x1a   : > { %2134 = vmatpush1.bf16.msra.mxu1 %v6827_v8  ;;  %2062 = vmatprep.subr.bf16.mxu0 %v6828_v9  ;;  %v6836_v14 = vld [vmem:[%s10819_s1 + $0x784] ss:$48 sps:$4 sm:$0xff]   ;;  %v6839_v16 = vld [vmem:[%s10819_s1 + $0x780] ss:$48 sps:$4 sm:$0xff]   ;;  %v235_v34 = vld [vmem:[%s7869_s26 + $0x28] sm:$0xff]  ;;  %s6771_s9 = smul.u32 192, %s218_s11 }
  0x1b   : > { %2135 = vmatprep.subr.bf16.mxu1 %v6830_v10  ;;  %v6840_v17 = vld [vmem:[%s10819_s1 + $0x124] ss:$48 sps:$4 sm:$0xff]   ;;  %v6844_v19 = vld [vmem:[%s10819_s1 + $0x120] ss:$48 sps:$4 sm:$0xff]   ;;  %v6872_v42 = vld [vmem:[%s10819_s1 + $0x248] ss:$48 sps:$4 sm:$0xff]  }
  0x1c   : > { %v6842_v18 = vld [vmem:[%s10819_s1 + $0x724] ss:$48 sps:$4 sm:$0xff]   ;;  %v6845_v20 = vld [vmem:[%s10819_s1 + $0x720] ss:$48 sps:$4 sm:$0xff]   ;;  %v6880_v45 = vld [vmem:[%s10819_s1 + $0x1ec] ss:$48 sps:$4 sm:$0xff]  }
  0x1d   : > { %2063 = vmatpush1.bf16.msra.mxu0 %v6832_v11  ;;  %v6846_v21 = vld [vmem:[%s10819_s1 + $0xc4] ss:$48 sps:$4 sm:$0xff]   ;;  %v6850_v23 = vld [vmem:[%s10819_s1 + $0xc0] ss:$48 sps:$4 sm:$0xff]   ;;  %v6878_v46 = vld [vmem:[%s10819_s1 + $0x1e8] ss:$48 sps:$4 sm:$0xff]  }
  0x1e   : > { %2136 = vmatpush1.bf16.msra.mxu1 %v6833_v12  ;;  %2064 = vmatprep.subr.bf16.mxu0 %v6834_v13  ;;  %v6848_v22 = vld [vmem:[%s10819_s1 + $0x6c4] ss:$48 sps:$4 sm:$0xff]   ;;  %v6851_v24 = vld [vmem:[%s10819_s1 + $0x6c0] ss:$48 sps:$4 sm:$0xff]   ;;  %v6886_v49 = vld [vmem:[%s10819_s1 + $0x18c] ss:$48 sps:$4 sm:$0xff]  }
  0x1f   : > { %2137 = vmatprep.subr.bf16.mxu1 %v6836_v14  ;;  %v6852_v25 = vld [vmem:[%s10819_s1 + $0x64] ss:$48 sps:$4 sm:$0xff]   ;;  %v6856_v27 = vld [vmem:[%s10819_s1 + $0x60] ss:$48 sps:$4 sm:$0xff]   ;;  %v231_v50 = vld [vmem:[%s7869_s26 + $0x8] sm:$0xff]  ;;  %s10537_s12 = scalar_lea.vmem [#allocation2], %s6771_s9 }
  0x20   : > { %v6854_v26 = vld [vmem:[%s10819_s1 + $0x664] ss:$48 sps:$4 sm:$0xff]   ;;  %v6857_v28 = vld [vmem:[%s10819_s1 + $0x660] ss:$48 sps:$4 sm:$0xff]   ;;  %v6884_v52 = vld [vmem:[%s10819_s1 + $0x188] ss:$48 sps:$4 sm:$0xff]  }
  0x21   : > { %2065 = vmatpush1.bf16.msra.mxu0 %v6838_v15  ;;  %v6858_v29 = vld [vmem:[%s10819_s1 + $0x4] ss:$48 sps:$4 sm:$0xff]   ;;  %v6862_v31 = vld [vmem:[%s10819_s1] ss:$48 sps:$4 sm:$0xff]   ;;  %v6892_v56 = vld [vmem:[%s10819_s1 + $0x12c] ss:$48 sps:$4 sm:$0xff]  }
  0x22   : > { %2138 = vmatpush1.bf16.msra.mxu1 %v6839_v16  ;;  %2066 = vmatprep.subr.bf16.mxu0 %v6840_v17  ;;  %v6860_v30 = vld [vmem:[%s10819_s1 + $0x604] ss:$48 sps:$4 sm:$0xff]   ;;  %v6863_v32 = vld [vmem:[%s10819_s1 + $0x600] ss:$48 sps:$4 sm:$0xff]   ;;  %v6890_v57 = vld [vmem:[%s10819_s1 + $0x128] ss:$48 sps:$4 sm:$0xff]  }
  0x23   : > { %2139 = vmatprep.subr.bf16.mxu1 %v6842_v18  ;;  %v232_v33 = vld [vmem:[%s7869_s26 + $0x10] sm:$0xff]  ;;  %v234_v51 = vld [vmem:[%s7869_s26 + $0x20] sm:$0xff]  ;;  %v241_v60 = vld [vmem:[%s7869_s26 + $0x58] sm:$0xff]  ;;  %s5882_s14 = sshll.u32 %s10537_s12, 4  ;;  %s7696_s25 = smov [#allocation2]   ;;  %s10768_s14 = int_to_ptr.vmem [resolvable:$true] %s5882_s14 }
  0x24   : > { %v6864_v35 = vld [vmem:[%s10819_s1 + $0x5a4] ss:$48 sps:$4 sm:$0xff]   ;;  %v7888_v37 = vpack.c.bf16 %v235_v34, %v232_v33  ;;  %v6869_v39 = vld [vmem:[%s10819_s1 + $0x5a0] ss:$48 sps:$4 sm:$0xff]   ;;  %v7936_v54 = vpack.c.bf16 %v234_v51, %v231_v50  ;;  %v6898_v63 = vld [vmem:[%s10819_s1 + $0xcc] ss:$48 sps:$4 sm:$0xff]  }
  0x25   : > { %2067 = vmatpush1.bf16.msra.mxu0 %v6844_v19  ;;  %v6870_v40 = vld [vmem:[%s10819_s1 + $0x544] ss:$48 sps:$4 sm:$0xff]   ;;  %v6875_v43 = vld [vmem:[%s10819_s1 + $0x540] ss:$48 sps:$4 sm:$0xff]   ;;  %v6896_v0 = vld [vmem:[%s10819_s1 + $0xc8] ss:$48 sps:$4 sm:$0xff]  }
  0x26   : > { %2140 = vmatpush1.bf16.msra.mxu1 %v6845_v20  ;;  %2068 = vmatprep.subr.bf16.mxu0 %v6846_v21  ;;  %v6876_v44 = vld [vmem:[%s10819_s1 + $0x4e4] ss:$48 sps:$4 sm:$0xff]   ;;  %v6881_v47 = vld [vmem:[%s10819_s1 + $0x4e0] ss:$48 sps:$4 sm:$0xff]   ;;  %v6904_v4 = vld [vmem:[%s10819_s1 + $0x6c] ss:$48 sps:$4 sm:$0xff]  }
  0x27   : > { %2141 = vmatprep.subr.bf16.mxu1 %v6848_v22  ;;  %v6882_v48 = vld [vmem:[%s10819_s1 + $0x484] ss:$48 sps:$4 sm:$0xff]   ;;  %v6887_v53 = vld [vmem:[%s10819_s1 + $0x480] ss:$48 sps:$4 sm:$0xff]   ;;  %2090 = vmatprep.mubr.bf16.mxu0 %v7936_v54  ;;  %v247_v6 = vld [vmem:[%s7869_s26 + $0x88] sm:$0xff]  ;;  %s7633_s22 = scalar_lea.vmem %s10768_s14, 3072 }
  0x28   : > { %v6888_v55 = vld [vmem:[%s10819_s1 + $0x424] ss:$48 sps:$4 sm:$0xff]   ;;  %v6893_v58 = vld [vmem:[%s10819_s1 + $0x420] ss:$48 sps:$4 sm:$0xff]   ;;  %v6902_v7 = vld [vmem:[%s10819_s1 + $0x68] ss:$48 sps:$4 sm:$0xff]   ;;  %p7634_p11 = scmp.ne.s32.totalorder %s10768_s14, %s7633_s22 }
  0x29   : > { %2069 = vmatpush1.bf16.msra.mxu0 %v6850_v23  ;;  %v238_v59 = vld [vmem:[%s7869_s26 + $0x40] sm:$0xff]  ;;  %v244_v5 = vld [vmem:[%s7869_s26 + $0x70] sm:$0xff]  ;;  %v6910_v11 = vld [vmem:[%s10819_s1 + $0xc] ss:$48 sps:$4 sm:$0xff]   ;;  %s7637_s30 = sshll.u32 %s7696_s25, 4  ;;  %s7638_s30 = int_to_ptr.vmem [resolvable:$false] %s7637_s30 }
  0x2a   : > { %2142 = vmatpush1.bf16.msra.mxu1 %v6851_v24  ;;  %2070 = vmatprep.subr.bf16.mxu0 %v6852_v25  ;;  %v6894_v61 = vld [vmem:[%s10819_s1 + $0x3c4] ss:$48 sps:$4 sm:$0xff]   ;;  %v7956_v62 = vpack.c.bf16 %v241_v60, %v238_v59  ;;  %v6899_v1 = vld [vmem:[%s10819_s1 + $0x3c0] ss:$48 sps:$4 sm:$0xff]   ;;  %v7983_v9 = vpack.c.bf16 %v247_v6, %v244_v5  ;;  %v6908_v12 = vld [vmem:[%s10819_s1 + $0x8] ss:$48 sps:$4 sm:$0xff]   ;;  %p7635_p12 = pnand %p7634_p11, %p7767_p5  ;;  %p7640_p0 = scmp.lt.s32.totalorder %s10768_s14, %s7638_s30 }
  0x2b   : > { %2143 = vmatprep.subr.bf16.mxu1 %v6854_v26  ;;  %v6900_v3 = vld [vmem:[%s10819_s1 + $0x364] ss:$48 sps:$4 sm:$0xff]   ;;  %v6905_v8 = vld [vmem:[%s10819_s1 + $0x360] ss:$48 sps:$4 sm:$0xff]   ;;  %v233_v15 = vld [vmem:[%s7869_s26 + $0x18] sm:$0xff]  ;;  %s7639_s6 = scalar_lea.vmem %s7638_s30, 6144 }
  0x2c   : > { %v6906_v10 = vld [vmem:[%s10819_s1 + $0x304] ss:$48 sps:$4 sm:$0xff]   ;;  %v6911_v13 = vld [vmem:[%s10819_s1 + $0x300] ss:$48 sps:$4 sm:$0xff]   ;;  %v6914_v16 = vld [vmem:[%s10819_s1 + $0x5ac] ss:$48 sps:$4 sm:$0xff]   ;;  %p7636_p13 = pneg %p7635_p12  ;;  %p7641_p1 = scmp.lt.s32.totalorder %s7639_s6, %s7633_s22 }
  0x2d   : > { %2071 = vmatpush1.bf16.msra.mxu0 %v6856_v27  ;;  %v230_v14 = vld [vmem:[%s7869_s26] sm:$0xff]  ;;  %v6917_v17 = vld [vmem:[%s10819_s1 + $0x8ac] ss:$48 sps:$4 sm:$0xff]   ;;  %v6912_v18 = vld [vmem:[%s10819_s1 + $0x5a8] ss:$48 sps:$4 sm:$0xff]  }
  0x2e   : > { %2144 = vmatpush1.bf16.msra.mxu1 %v6857_v28  ;;  %2072 = vmatprep.subr.bf16.mxu0 %v6858_v29  ;;  %v250_v19 = vld [vmem:[%s7869_s26 + $0xa0] sm:$0xff]  ;;  %v253_v20 = vld [vmem:[%s7869_s26 + $0xb8] sm:$0xff]  ;;  %v8012_v21 = vpack.c.bf16 %v233_v15, %v230_v14  ;;  %v240_v23 = vld [vmem:[%s7869_s26 + $0x50] sm:$0xff]  ;;  %p7642_p2 = por %p7641_p1, %p7640_p0 }
  0x2f   : > { %2145 = vmatprep.subr.bf16.mxu1 %v6860_v30  ;;  %v237_v22 = vld [vmem:[%s7869_s26 + $0x38] sm:$0xff]  ;;  %v8016_v24 = vpack.c.bf16 %v253_v20, %v250_v19  ;;  %v6963_v14 = vld [vmem:[%s10819_s1 + $0x8b0] ss:$48 sps:$4 sm:$0xff]   ;;  %v6968_v15 = vld [vmem:[%s10819_s1 + $0x254] ss:$48 sps:$4 sm:$0xff]  }
  0x30   : > { %v6915_v25 = vld [vmem:[%s10819_s1 + $0x8a8] ss:$48 sps:$4 sm:$0xff]   ;;  %v6920_v26 = vld [vmem:[%s10819_s1 + $0x54c] ss:$48 sps:$4 sm:$0xff]   ;;  %v8033_v30 = vpack.c.bf16 %v240_v23, %v237_v22  ;;  %v6974_v19 = vld [vmem:[%s10819_s1 + $0x1f4] ss:$48 sps:$4 sm:$0xff]   ;;  %p7643_p3 = pnand %p7642_p2, %p7636_p13 }
  0x31   : > { %2073 = vmatpush1.bf16.msra.mxu0 %v6862_v31  ;;  %v6923_v27 = vld [vmem:[%s10819_s1 + $0x84c] ss:$48 sps:$4 sm:$0xff]   ;;  %v6918_v28 = vld [vmem:[%s10819_s1 + $0x548] ss:$48 sps:$4 sm:$0xff]   ;;  %v236_v31 = vld [vmem:[%s7869_s26 + $0x30] sm:$0xff] }
  0x32   : > { %2146 = vmatpush1.bf16.msra.mxu1 %v6863_v32  ;;  %2074 = vmatprep.subr.bf16.mxu0 %v6864_v35  ;;  %v6921_v29 = vld [vmem:[%s10819_s1 + $0x848] ss:$48 sps:$4 sm:$0xff]   ;;  %v6926_v33 = vld [vmem:[%s10819_s1 + $0x4ec] ss:$48 sps:$4 sm:$0xff]   ;;  %v6977_v20 = vld [vmem:[%s10819_s1 + $0x7f4] ss:$48 sps:$4 sm:$0xff]  }
  0x33   : > { %2204 = vmatprep.subr.bf16.mxu1 %v6868_v36  ;;  %v239_v32 = vld [vmem:[%s7869_s26 + $0x48] sm:$0xff]  ;;  %v6972_v22 = vld [vmem:[%s10819_s1 + $0x1f0] ss:$48 sps:$4 sm:$0xff]  }
  0x34   : > { %v6929_v34 = vld [vmem:[%s10819_s1 + $0x7ec] ss:$48 sps:$4 sm:$0xff]   ;;  %v6924_v35 = vld [vmem:[%s10819_s1 + $0x4e8] ss:$48 sps:$4 sm:$0xff]   ;;  %v6975_v23 = vld [vmem:[%s10819_s1 + $0x7f0] ss:$48 sps:$4 sm:$0xff]  }
  0x35   : > { %2164 = vmatmul.mubr.bf16.vlgmr.msra.gmra.mxu1 %v7888_v37  ;;  %2075 = vmatpush2.bf16.msra.mxu0 %v6869_v39  ;;  %v6927_v36 = vld [vmem:[%s10819_s1 + $0x7e8] ss:$48 sps:$4 sm:$0xff]   ;;  %v6956_v6 = vld [vmem:[%s10819_s1 + $0x30c] ss:$48 sps:$4 sm:$0xff]  }
  0x36   : > { %2205 = vmatpush1.bf16.msra.mxu1 %v6866_v38  ;;  %2076 = vmatprep.subr.bf16.mxu0 %v6870_v40  ;;  %v8053_v38 = vpack.c.bf16 %v239_v32, %v236_v31  ;;  %v243_v39 = vld [vmem:[%s7869_s26 + $0x68] sm:$0xff]  ;;  %v246_v40 = vld [vmem:[%s7869_s26 + $0x80] sm:$0xff] }
  0x37   : > { %2206 = vmatprep.subr.bf16.mxu1 %v6874_v41  ;;  %2173 = vmatprep.mubr.bf16.mxu1 %v7695_v2  ;;  %v6932_v41 = vld [vmem:[%s10819_s1 + $0x48c] ss:$48 sps:$4 sm:$0xff]   ;;  %v6936_v50 = vld [vmem:[%s10819_s1 + $0x428] ss:$48 sps:$4 sm:$0xff]   ;;  %v6989_v31 = vld [vmem:[%s10819_s1 + $0x734] ss:$48 sps:$4 sm:$0xff]  }
  0x38   : > { %v6939_v51 = vld [vmem:[%s10819_s1 + $0x728] ss:$48 sps:$4 sm:$0xff]   ;;  %v6984_v32 = vld [vmem:[%s10819_s1 + $0x130] ss:$48 sps:$4 sm:$0xff]  }
  0x39   : > { %2077 = vmatpush2.bf16.msra.mxu0 %v6875_v43  ;;  %v6930_v43 = vld [vmem:[%s10819_s1 + $0x488] ss:$48 sps:$4 sm:$0xff]  }
  0x3a   : > { %2207 = vmatpush1.bf16.msra.mxu1 %v6872_v42  ;;  %2078 = vmatprep.subr.bf16.mxu0 %v6876_v44  ;;  %v6935_v42 = vld [vmem:[%s10819_s1 + $0x78c] ss:$48 sps:$4 sm:$0xff]   ;;  %v6933_v44 = vld [vmem:[%s10819_s1 + $0x788] ss:$48 sps:$4 sm:$0xff]  }
  0x3b   : > { %2208 = vmatprep.subr.bf16.mxu1 %v6880_v45  ;;  %v8069_v45 = vpack.c.bf16 %v246_v40, %v243_v39  ;;  %v6945_v59 = vld [vmem:[%s10819_s1 + $0x6c8] ss:$48 sps:$4 sm:$0xff]   ;;  %v6993_v39 = vld [vmem:[%s10819_s1 + $0x6d0] ss:$48 sps:$4 sm:$0xff]   ;;  %v6998_v40 = vld [vmem:[%s10819_s1 + $0x74] ss:$48 sps:$4 sm:$0xff]  }
  0x3c   : > { %v6951_v5 = vld [vmem:[%s10819_s1 + $0x668] ss:$48 sps:$4 sm:$0xff]  }
  0x3d   : > { %2079 = vmatpush2.bf16.msra.mxu0 %v6881_v47  ;;  %2174 = vmatmul.mubr.bf16.gmra.mxu1 %v7956_v62  ;;  %v245_v47 = vld [vmem:[%s7869_s26 + $0x78] sm:$0xff] }
  0x3e   : > { %2209 = vmatpush1.bf16.msra.mxu1 %v6878_v46  ;;  %2080 = vmatprep.subr.bf16.mxu0 %v6882_v48  ;;  %v242_v46 = vld [vmem:[%s7869_s26 + $0x60] sm:$0xff]  ;;  %v6938_v48 = vld [vmem:[%s10819_s1 + $0x42c] ss:$48 sps:$4 sm:$0xff]  }
  0x3f   : > { %2210 = vmatprep.subr.bf16.mxu1 %v6886_v49  ;;  %2183 = vmatprep.mubr.bf16.mxu1 %v7695_v2  ;;  %v6941_v49 = vld [vmem:[%s10819_s1 + $0x72c] ss:$48 sps:$4 sm:$0xff]  }
  0x41   : > { %2081 = vmatpush2.bf16.msra.mxu0 %v6887_v53  ;;  %v249_v53 = vld [vmem:[%s7869_s26 + $0x98] sm:$0xff] }
  0x42   : > { %2211 = vmatpush1.bf16.msra.mxu1 %v6884_v52  ;;  %2082 = vmatprep.subr.bf16.mxu0 %v6888_v55  ;;  %v8087_v52 = vpack.c.bf16 %v245_v47, %v242_v46  ;;  %v252_v55 = vld [vmem:[%s7869_s26 + $0xb0] sm:$0xff] }
  0x43   : > { %2212 = vmatprep.subr.bf16.mxu1 %v6892_v56  ;;  %v6944_v56 = vld [vmem:[%s10819_s1 + $0x3cc] ss:$48 sps:$4 sm:$0xff]   ;;  %v8103_v60 = vpack.c.bf16 %v252_v55, %v249_v53  ;;  %v7007_v46 = vld [vmem:[%s10819_s1 + $0x614] ss:$48 sps:$4 sm:$0xff]   ;;  %v7002_v47 = vld [vmem:[%s10819_s1 + $0x10] ss:$48 sps:$4 sm:$0xff]  }
  0x44   : > { %v7011_v53 = vld [vmem:[%s10819_s1 + $0x2b8] ss:$48 sps:$4 sm:$0xff]   ;;  %v7016_v55 = vld [vmem:[%s10819_s1 + $0x554] ss:$48 sps:$4 sm:$0xff]  }
  0x45   : > { %2083 = vmatpush2.bf16.msra.mxu0 %v6893_v58  ;;  %2184 = vmatmul.mubr.bf16.gmra.mxu1 %v7983_v9  ;;  %v6942_v58 = vld [vmem:[%s10819_s1 + $0x3c8] ss:$48 sps:$4 sm:$0xff]  }
  0x46   : > { %2213 = vmatpush1.bf16.msra.mxu1 %v6890_v57  ;;  %2084 = vmatprep.subr.bf16.mxu0 %v6894_v61  ;;  %v6947_v57 = vld [vmem:[%s10819_s1 + $0x6cc] ss:$48 sps:$4 sm:$0xff]   ;;  %v248_v61 = vld [vmem:[%s7869_s26 + $0x90] sm:$0xff] }
  0x47   : > { %2214 = vmatprep.subr.bf16.mxu1 %v6898_v63  ;;  %2193 = vmatprep.mubr.bf16.mxu1 %v7695_v2  ;;  %v251_v63 = vld [vmem:[%s7869_s26 + $0xa8] sm:$0xff] }
  0x49   : > { %2085 = vmatpush2.bf16.msra.mxu0 %v6899_v1  ;;  %v6953_v1 = vld [vmem:[%s10819_s1 + $0x66c] ss:$48 sps:$4 sm:$0xff]  }
  0x4a   : > { %2215 = vmatpush1.bf16.msra.mxu1 %v6896_v0  ;;  %2086 = vmatprep.subr.bf16.mxu0 %v6900_v3  ;;  %v6950_v0 = vld [vmem:[%s10819_s1 + $0x36c] ss:$48 sps:$4 sm:$0xff]   ;;  %v8115_v3 = vpack.c.bf16 %v251_v63, %v248_v61  ;;  %v7020_v63 = vld [vmem:[%s10819_s1 + $0x4f0] ss:$48 sps:$4 sm:$0xff]  }
  0x4b   : > { %2216 = vmatprep.subr.bf16.mxu1 %v6904_v4  ;;  %v6948_v4 = vld [vmem:[%s10819_s1 + $0x368] ss:$48 sps:$4 sm:$0xff]   ;;  %v7025_v61 = vld [vmem:[%s10819_s1 + $0x1fc] ss:$48 sps:$4 sm:$0xff]  }
  0x4d   : > { %2087 = vmatpush2.bf16.msra.mxu0 %v6905_v8  ;;  %2194 = vmatmul.mubr.bf16.gmra.mxu1 %v8016_v24  ;;  %v6954_v8 = vld [vmem:[%s10819_s1 + $0x308] ss:$48 sps:$4 sm:$0xff]  }
  0x4e   : > { %2217 = vmatpush1.bf16.msra.mxu1 %v6902_v7  ;;  %2088 = vmatprep.subr.bf16.mxu0 %v6906_v10  ;;  %v6959_v7 = vld [vmem:[%s10819_s1 + $0x60c] ss:$48 sps:$4 sm:$0xff]   ;;  %v6957_v10 = vld [vmem:[%s10819_s1 + $0x608] ss:$48 sps:$4 sm:$0xff]  }
  0x4f   : > { %2218 = vmatprep.subr.bf16.mxu1 %v6910_v11  ;;  %2236 = vmatprep.mubr.bf16.mxu1 %v7936_v54  ;;  %v6962_v11 = vld [vmem:[%s10819_s1 + $0x2b4] ss:$48 sps:$4 sm:$0xff]  }
  0x51   : > { %2089 = vmatpush2.bf16.msra.mxu0 %v6911_v13  ;;  %v6960_v13 = vld [vmem:[%s10819_s1 + $0x2b0] ss:$48 sps:$4 sm:$0xff]  }
  0x52   : > { %2219 = vmatpush1.bf16.msra.mxu1 %v6908_v12  ;;  %2277 = vmatprep.subr.bf16.mxu0 %v6917_v17  ;;  %v6965_v12 = vld [vmem:[%s10819_s1 + $0x8b4] ss:$48 sps:$4 sm:$0xff]   ;;  %v6966_v17 = vld [vmem:[%s10819_s1 + $0x250] ss:$48 sps:$4 sm:$0xff]  }
  0x53   : > { %2220 = vmatprep.subr.bf16.mxu1 %v6914_v16  ;;  %v6971_v16 = vld [vmem:[%s10819_s1 + $0x854] ss:$48 sps:$4 sm:$0xff]  }
  0x54   : > { %2091 = vmatmul.mubr.bf16.vlgmr.msra.gmra.mxu0 %v8012_v21 }
  0x55   : > { %2278 = vmatpush1.bf16.msra.mxu0 %v6915_v25  ;;  %2100 = vmatprep.mubr.bf16.mxu0 %v8033_v30  ;;  %v6980_v25 = vld [vmem:[%s10819_s1 + $0x194] ss:$48 sps:$4 sm:$0xff]  }
  0x56   : > { %2221 = vmatpush2.bf16.msra.mxu1 %v6912_v18  ;;  %2279 = vmatprep.subr.bf16.mxu0 %v6923_v27  ;;  %v6969_v18 = vld [vmem:[%s10819_s1 + $0x850] ss:$48 sps:$4 sm:$0xff]  }
  0x57   : > { %2222 = vmatprep.subr.bf16.mxu1 %v6920_v26  ;;  %v6983_v26 = vld [vmem:[%s10819_s1 + $0x794] ss:$48 sps:$4 sm:$0xff]   ;;  %v6978_v27 = vld [vmem:[%s10819_s1 + $0x190] ss:$48 sps:$4 sm:$0xff]  }
  0x59   : > { %2280 = vmatpush1.bf16.msra.mxu0 %v6921_v29  ;;  %v6986_v29 = vld [vmem:[%s10819_s1 + $0x134] ss:$48 sps:$4 sm:$0xff]  }
  0x5a   : > { %2223 = vmatpush2.bf16.msra.mxu1 %v6918_v28  ;;  %2281 = vmatprep.subr.bf16.mxu0 %v6929_v34  ;;  %v6981_v28 = vld [vmem:[%s10819_s1 + $0x790] ss:$48 sps:$4 sm:$0xff]   ;;  %v6992_v34 = vld [vmem:[%s10819_s1 + $0xd4] ss:$48 sps:$4 sm:$0xff]  }
  0x5b   : > { %2224 = vmatprep.subr.bf16.mxu1 %v6926_v33  ;;  %v6987_v33 = vld [vmem:[%s10819_s1 + $0x730] ss:$48 sps:$4 sm:$0xff]  }
  0x5c   : > { %2101 = vmatmul.mubr.bf16.gmra.mxu0 %v8053_v38 }
  0x5d   : > { %2282 = vmatpush1.bf16.msra.mxu0 %v6927_v36  ;;  %2110 = vmatprep.mubr.bf16.mxu0 %v8069_v45  ;;  %v6990_v36 = vld [vmem:[%s10819_s1 + $0xd0] ss:$48 sps:$4 sm:$0xff]  }
  0x5e   : > { %2225 = vmatpush2.bf16.msra.mxu1 %v6924_v35  ;;  %2283 = vmatprep.subr.bf16.mxu0 %v6935_v42  ;;  %v6995_v35 = vld [vmem:[%s10819_s1 + $0x6d4] ss:$48 sps:$4 sm:$0xff]   ;;  %v6996_v42 = vld [vmem:[%s10819_s1 + $0x70] ss:$48 sps:$4 sm:$0xff]  }
  0x5f   : > { %2226 = vmatprep.subr.bf16.mxu1 %v6932_v41  ;;  %v7001_v41 = vld [vmem:[%s10819_s1 + $0x674] ss:$48 sps:$4 sm:$0xff]  }
  0x61   : > { %2284 = vmatpush1.bf16.msra.mxu0 %v6933_v44  ;;  %v7004_v44 = vld [vmem:[%s10819_s1 + $0x14] ss:$48 sps:$4 sm:$0xff]  }
  0x62   : > { %2227 = vmatpush2.bf16.msra.mxu1 %v6930_v43  ;;  %2285 = vmatprep.subr.bf16.mxu0 %v6941_v49  ;;  %v6999_v43 = vld [vmem:[%s10819_s1 + $0x670] ss:$48 sps:$4 sm:$0xff]   ;;  %v7010_v49 = vld [vmem:[%s10819_s1 + $0x5b4] ss:$48 sps:$4 sm:$0xff]  }
  0x63   : > { %2228 = vmatprep.subr.bf16.mxu1 %v6938_v48  ;;  %v7005_v48 = vld [vmem:[%s10819_s1 + $0x610] ss:$48 sps:$4 sm:$0xff]  }
  0x64   : > { %2111 = vmatmul.mubr.bf16.gmra.mxu0 %v8087_v52 }
  0x65   : > { %2286 = vmatpush1.bf16.msra.mxu0 %v6939_v51  ;;  %2120 = vmatprep.mubr.bf16.mxu0 %v8103_v60  ;;  %v7008_v51 = vld [vmem:[%s10819_s1 + $0x5b0] ss:$48 sps:$4 sm:$0xff]  }
  0x66   : > { %2229 = vmatpush2.bf16.msra.mxu1 %v6936_v50  ;;  %2287 = vmatprep.subr.bf16.mxu0 %v6947_v57  ;;  %v7013_v50 = vld [vmem:[%s10819_s1 + $0x2bc] ss:$48 sps:$4 sm:$0xff]   ;;  %v7014_v57 = vld [vmem:[%s10819_s1 + $0x550] ss:$48 sps:$4 sm:$0xff]  }
  0x67   : > { %2230 = vmatprep.subr.bf16.mxu1 %v6944_v56  ;;  %v7019_v56 = vld [vmem:[%s10819_s1 + $0x25c] ss:$48 sps:$4 sm:$0xff]  }
  0x69   : > { %2288 = vmatpush1.bf16.msra.mxu0 %v6945_v59  ;;  %v7022_v59 = vld [vmem:[%s10819_s1 + $0x4f4] ss:$48 sps:$4 sm:$0xff]  }
  0x6a   : > { %2231 = vmatpush2.bf16.msra.mxu1 %v6942_v58  ;;  %2289 = vmatprep.subr.bf16.mxu0 %v6953_v1  ;;  %v7017_v58 = vld [vmem:[%s10819_s1 + $0x258] ss:$48 sps:$4 sm:$0xff]   ;;  %v7028_v1 = vld [vmem:[%s10819_s1 + $0x494] ss:$48 sps:$4 sm:$0xff]  }
  0x6b   : > { %2232 = vmatprep.subr.bf16.mxu1 %v6950_v0  ;;  %v7023_v0 = vld [vmem:[%s10819_s1 + $0x1f8] ss:$48 sps:$4 sm:$0xff]  }
  0x6c   : > { %2121 = vmatmul.mubr.bf16.gmra.mxu0 %v8115_v3 }
  0x6d   : > { %2290 = vmatpush1.bf16.msra.mxu0 %v6951_v5  ;;  %2309 = vmatprep.mubr.bf16.mxu0 %v7695_v2  ;;  %v7026_v5 = vld [vmem:[%s10819_s1 + $0x490] ss:$48 sps:$4 sm:$0xff]  }
  0x6e   : > { %2233 = vmatpush2.bf16.msra.mxu1 %v6948_v4  ;;  %2291 = vmatprep.subr.bf16.mxu0 %v6959_v7  ;;  %v7031_v4 = vld [vmem:[%s10819_s1 + $0x19c] ss:$48 sps:$4 sm:$0xff]   ;;  %v7034_v7 = vld [vmem:[%s10819_s1 + $0x434] ss:$48 sps:$4 sm:$0xff]  }
  0x6f   : > { %2234 = vmatprep.subr.bf16.mxu1 %v6956_v6  ;;  %v7029_v6 = vld [vmem:[%s10819_s1 + $0x198] ss:$48 sps:$4 sm:$0xff]  }
  0x71   : > { %2292 = vmatpush1.bf16.msra.mxu0 %v6957_v10  ;;  %v7032_v10 = vld [vmem:[%s10819_s1 + $0x430] ss:$48 sps:$4 sm:$0xff]  }
  0x72   : > { %2235 = vmatpush2.bf16.msra.mxu1 %v6954_v8  ;;  %2350 = vmatprep.subr.bf16.mxu0 %v6962_v11  ;;  %v7037_v8 = vld [vmem:[%s10819_s1 + $0x13c] ss:$48 sps:$4 sm:$0xff]   ;;  %v7035_v11 = vld [vmem:[%s10819_s1 + $0x138] ss:$48 sps:$4 sm:$0xff]  }
  0x73   : > { %2423 = vmatprep.subr.bf16.mxu1 %v6965_v12  ;;  %v7040_v12 = vld [vmem:[%s10819_s1 + $0x3d4] ss:$48 sps:$4 sm:$0xff]  }
  0x74   : > { %2310 = vmatmul.mubr.bf16.vlgmr.msra.gmra.mxu0 %v7888_v37 }
  0x75   : > { %2237 = vmatmul.mubr.bf16.vlgmr.msra.gmra.mxu1 %v8012_v21  ;;  %2351 = vmatpush1.bf16.msra.mxu0 %v6960_v13  ;;  %v7043_v13 = vld [vmem:[%s10819_s1 + $0xdc] ss:$48 sps:$4 sm:$0xff]  }
  0x76   : > { %2424 = vmatpush1.bf16.msra.mxu1 %v6963_v14  ;;  %2352 = vmatprep.subr.bf16.mxu0 %v6968_v15  ;;  %v7038_v14 = vld [vmem:[%s10819_s1 + $0x3d0] ss:$48 sps:$4 sm:$0xff]   ;;  %v7041_v15 = vld [vmem:[%s10819_s1 + $0xd8] ss:$48 sps:$4 sm:$0xff]  }
  0x77   : > { %2425 = vmatprep.subr.bf16.mxu1 %v6971_v16  ;;  %2246 = vmatprep.mubr.bf16.mxu1 %v8033_v30  ;;  %v7046_v16 = vld [vmem:[%s10819_s1 + $0x374] ss:$48 sps:$4 sm:$0xff]  }
  0x78   : > { %2319 = vmatprep.mubr.bf16.mxu0 %v7695_v2 }
  0x79   : > { %2353 = vmatpush1.bf16.msra.mxu0 %v6966_v17  ;;  %v7049_v17 = vld [vmem:[%s10819_s1 + $0x7c] ss:$48 sps:$4 sm:$0xff]  }
  0x7a   : > { %2426 = vmatpush1.bf16.msra.mxu1 %v6969_v18  ;;  %2354 = vmatprep.subr.bf16.mxu0 %v6974_v19  ;;  %v7044_v18 = vld [vmem:[%s10819_s1 + $0x370] ss:$48 sps:$4 sm:$0xff]   ;;  %v7047_v19 = vld [vmem:[%s10819_s1 + $0x78] ss:$48 sps:$4 sm:$0xff]  }
  0x7b   : > { %2427 = vmatprep.subr.bf16.mxu1 %v6977_v20  ;;  %v7052_v20 = vld [vmem:[%s10819_s1 + $0x314] ss:$48 sps:$4 sm:$0xff]  }
  0x7c   : > { %2320 = vmatmul.mubr.bf16.gmra.mxu0 %v7956_v62 }
  0x7d   : > { %2247 = vmatmul.mubr.bf16.gmra.mxu1 %v8053_v38  ;;  %2355 = vmatpush1.bf16.msra.mxu0 %v6972_v22  ;;  %v7055_v22 = vld [vmem:[%s10819_s1 + $0x1c] ss:$48 sps:$4 sm:$0xff]  }
  0x7e   : > { %2428 = vmatpush1.bf16.msra.mxu1 %v6975_v23  ;;  %2356 = vmatprep.subr.bf16.mxu0 %v6980_v25  ;;  %v7050_v23 = vld [vmem:[%s10819_s1 + $0x310] ss:$48 sps:$4 sm:$0xff]   ;;  %v7053_v25 = vld [vmem:[%s10819_s1 + $0x18] ss:$48 sps:$4 sm:$0xff]  }
  0x7f   : > { %2429 = vmatprep.subr.bf16.mxu1 %v6983_v26  ;;  %2256 = vmatprep.mubr.bf16.mxu1 %v8069_v45  ;;  %v7058_v26 = vld [vmem:[%s10819_s1 + $0x5bc] ss:$48 sps:$4 sm:$0xff]  }
  0x80   : > { %2329 = vmatprep.mubr.bf16.mxu0 %v7695_v2 }
  0x81   : > { %2357 = vmatpush1.bf16.msra.mxu0 %v6978_v27  ;;  %v7061_v27 = vld [vmem:[%s10819_s1 + $0x8bc] ss:$48 sps:$4 sm:$0xff]  }
  0x82   : > { %2430 = vmatpush1.bf16.msra.mxu1 %v6981_v28  ;;  %2358 = vmatprep.subr.bf16.mxu0 %v6986_v29  ;;  %v7056_v28 = vld [vmem:[%s10819_s1 + $0x5b8] ss:$48 sps:$4 sm:$0xff]  }
  0x83   : > { %2431 = vmatprep.subr.bf16.mxu1 %v6989_v31  ;;  %v7059_v29 = vld [vmem:[%s10819_s1 + $0x8b8] ss:$48 sps:$4 sm:$0xff]   ;;  %v7064_v31 = vld [vmem:[%s10819_s1 + $0x55c] ss:$48 sps:$4 sm:$0xff]  }
  0x84   : > { %2330 = vmatmul.mubr.bf16.gmra.mxu0 %v7983_v9 }
  0x85   : > { %2257 = vmatmul.mubr.bf16.gmra.mxu1 %v8087_v52  ;;  %2359 = vmatpush1.bf16.msra.mxu0 %v6984_v32  ;;  %v7067_v32 = vld [vmem:[%s10819_s1 + $0x85c] ss:$48 sps:$4 sm:$0xff]  }
  0x86   : > { %2432 = vmatpush1.bf16.msra.mxu1 %v6987_v33  ;;  %2360 = vmatprep.subr.bf16.mxu0 %v6992_v34  ;;  %v7062_v33 = vld [vmem:[%s10819_s1 + $0x558] ss:$48 sps:$4 sm:$0xff]  }
  0x87   : > { %2433 = vmatprep.subr.bf16.mxu1 %v6995_v35  ;;  %2266 = vmatprep.mubr.bf16.mxu1 %v8103_v60  ;;  %v7065_v34 = vld [vmem:[%s10819_s1 + $0x858] ss:$48 sps:$4 sm:$0xff]   ;;  %v7070_v35 = vld [vmem:[%s10819_s1 + $0x4fc] ss:$48 sps:$4 sm:$0xff]  }
  0x88   : > { %2339 = vmatprep.mubr.bf16.mxu0 %v7695_v2 }
  0x89   : > { %2361 = vmatpush1.bf16.msra.mxu0 %v6990_v36  ;;  %v7073_v36 = vld [vmem:[%s10819_s1 + $0x7fc] ss:$48 sps:$4 sm:$0xff]  }
  0x8a   : > { %2434 = vmatpush1.bf16.msra.mxu1 %v6993_v39  ;;  %2362 = vmatprep.subr.bf16.mxu0 %v6998_v40  ;;  %v7068_v39 = vld [vmem:[%s10819_s1 + $0x4f8] ss:$48 sps:$4 sm:$0xff]  }
  0x8b   : > { %2435 = vmatprep.subr.bf16.mxu1 %v7001_v41  ;;  %v7071_v40 = vld [vmem:[%s10819_s1 + $0x7f8] ss:$48 sps:$4 sm:$0xff]   ;;  %v7076_v41 = vld [vmem:[%s10819_s1 + $0x49c] ss:$48 sps:$4 sm:$0xff]  }
  0x8c   : > { %2340 = vmatmul.mubr.bf16.gmra.mxu0 %v8016_v24 }
  0x8d   : > { %2267 = vmatmul.mubr.bf16.gmra.mxu1 %v8115_v3  ;;  %2363 = vmatpush1.bf16.msra.mxu0 %v6996_v42  ;;  %v7079_v42 = vld [vmem:[%s10819_s1 + $0x79c] ss:$48 sps:$4 sm:$0xff]  }
  0x8e   : > { %2436 = vmatpush1.bf16.msra.mxu1 %v6999_v43  ;;  %2364 = vmatprep.subr.bf16.mxu0 %v7004_v44  ;;  %v7074_v43 = vld [vmem:[%s10819_s1 + $0x498] ss:$48 sps:$4 sm:$0xff]  }
  0x8f   : > { %2437 = vmatprep.subr.bf16.mxu1 %v7007_v46  ;;  %2455 = vmatprep.mubr.bf16.mxu1 %v7695_v2  ;;  %v7077_v44 = vld [vmem:[%s10819_s1 + $0x798] ss:$48 sps:$4 sm:$0xff]   ;;  %v7082_v46 = vld [vmem:[%s10819_s1 + $0x43c] ss:$48 sps:$4 sm:$0xff]  }
  0x90   : > { %2382 = vmatprep.mubr.bf16.mxu0 %v7936_v54 }
  0x91   : > { %2365 = vmatpush1.bf16.msra.mxu0 %v7002_v47  ;;  %v7085_v47 = vld [vmem:[%s10819_s1 + $0x73c] ss:$48 sps:$4 sm:$0xff]  }
  0x92   : > { %2438 = vmatpush1.bf16.msra.mxu1 %v7005_v48  ;;  %2366 = vmatprep.subr.bf16.mxu0 %v7010_v49  ;;  %v7080_v48 = vld [vmem:[%s10819_s1 + $0x438] ss:$48 sps:$4 sm:$0xff]  }
  0x93   : > { %2496 = vmatprep.subr.bf16.mxu1 %v7013_v50  ;;  %v7083_v49 = vld [vmem:[%s10819_s1 + $0x738] ss:$48 sps:$4 sm:$0xff]   ;;  %v7088_v50 = vld [vmem:[%s10819_s1 + $0x3dc] ss:$48 sps:$4 sm:$0xff]  }
  0x95   : > { %2456 = vmatmul.mubr.bf16.vlgmr.msra.gmra.mxu1 %v7888_v37  ;;  %2367 = vmatpush2.bf16.msra.mxu0 %v7008_v51  ;;  %v7091_v51 = vld [vmem:[%s10819_s1 + $0x6dc] ss:$48 sps:$4 sm:$0xff]  }
  0x96   : > { %2497 = vmatpush1.bf16.msra.mxu1 %v7011_v53  ;;  %2368 = vmatprep.subr.bf16.mxu0 %v7016_v55  ;;  %v7086_v53 = vld [vmem:[%s10819_s1 + $0x3d8] ss:$48 sps:$4 sm:$0xff]  }
  0x97   : > { %2498 = vmatprep.subr.bf16.mxu1 %v7019_v56  ;;  %2465 = vmatprep.mubr.bf16.mxu1 %v7695_v2  ;;  %v7089_v55 = vld [vmem:[%s10819_s1 + $0x6d8] ss:$48 sps:$4 sm:$0xff]   ;;  %v7094_v56 = vld [vmem:[%s10819_s1 + $0x37c] ss:$48 sps:$4 sm:$0xff]  }
  0x99   : > { %2369 = vmatpush2.bf16.msra.mxu0 %v7014_v57  ;;  %v7097_v57 = vld [vmem:[%s10819_s1 + $0x67c] ss:$48 sps:$4 sm:$0xff]  }
  0x9a   : > { %2499 = vmatpush1.bf16.msra.mxu1 %v7017_v58  ;;  %2370 = vmatprep.subr.bf16.mxu0 %v7022_v59  ;;  %v7092_v58 = vld [vmem:[%s10819_s1 + $0x378] ss:$48 sps:$4 sm:$0xff]  }
  0x9b   : > { %2500 = vmatprep.subr.bf16.mxu1 %v7025_v61  ;;  %v7095_v59 = vld [vmem:[%s10819_s1 + $0x678] ss:$48 sps:$4 sm:$0xff]   ;;  %v7100_v61 = vld [vmem:[%s10819_s1 + $0x31c] ss:$48 sps:$4 sm:$0xff]  }
  0x9d   : > { %2466 = vmatmul.mubr.bf16.gmra.mxu1 %v7956_v62  ;;  %2371 = vmatpush2.bf16.msra.mxu0 %v7020_v63  ;;  %v7103_v63 = vld [vmem:[%s10819_s1 + $0x61c] ss:$48 sps:$4 sm:$0xff]  }
  0x9e   : > { %2501 = vmatpush1.bf16.msra.mxu1 %v7023_v0  ;;  %2372 = vmatprep.subr.bf16.mxu0 %v7028_v1  ;;  %v7098_v0 = vld [vmem:[%s10819_s1 + $0x318] ss:$48 sps:$4 sm:$0xff]  }
  0x9f   : > { %2502 = vmatprep.subr.bf16.mxu1 %v7031_v4  ;;  %2475 = vmatprep.mubr.bf16.mxu1 %v7695_v2  ;;  %v7101_v1 = vld [vmem:[%s10819_s1 + $0x618] ss:$48 sps:$4 sm:$0xff]   ;;  %v7106_v4 = vld [vmem:[%s10819_s1 + $0x2c4] ss:$48 sps:$4 sm:$0xff]  }
  0xa1   : > { %2373 = vmatpush2.bf16.msra.mxu0 %v7026_v5  ;;  %v7109_v5 = vld [vmem:[%s10819_s1 + $0x8c4] ss:$48 sps:$4 sm:$0xff]  }
  0xa2   : > { %2503 = vmatpush1.bf16.msra.mxu1 %v7029_v6  ;;  %2374 = vmatprep.subr.bf16.mxu0 %v7034_v7  ;;  %v7104_v6 = vld [vmem:[%s10819_s1 + $0x2c0] ss:$48 sps:$4 sm:$0xff]  }
  0xa3   : > { %2504 = vmatprep.subr.bf16.mxu1 %v7037_v8  ;;  %v7107_v7 = vld [vmem:[%s10819_s1 + $0x8c0] ss:$48 sps:$4 sm:$0xff]   ;;  %v7112_v8 = vld [vmem:[%s10819_s1 + $0x264] ss:$48 sps:$4 sm:$0xff]  }
  0xa5   : > { %2476 = vmatmul.mubr.bf16.gmra.mxu1 %v7983_v9  ;;  %2375 = vmatpush2.bf16.msra.mxu0 %v7032_v10  ;;  %v7115_v10 = vld [vmem:[%s10819_s1 + $0x864] ss:$48 sps:$4 sm:$0xff]  }
  0xa6   : > { %2505 = vmatpush1.bf16.msra.mxu1 %v7035_v11  ;;  %2376 = vmatprep.subr.bf16.mxu0 %v7040_v12  ;;  %v7110_v11 = vld [vmem:[%s10819_s1 + $0x260] ss:$48 sps:$4 sm:$0xff]  }
  0xa7   : > { %2506 = vmatprep.subr.bf16.mxu1 %v7043_v13  ;;  %2485 = vmatprep.mubr.bf16.mxu1 %v7695_v2  ;;  %v7113_v12 = vld [vmem:[%s10819_s1 + $0x860] ss:$48 sps:$4 sm:$0xff]   ;;  %v7118_v13 = vld [vmem:[%s10819_s1 + $0x204] ss:$48 sps:$4 sm:$0xff]  }
  0xa9   : > { %2377 = vmatpush2.bf16.msra.mxu0 %v7038_v14  ;;  %v7121_v14 = vld [vmem:[%s10819_s1 + $0x804] ss:$48 sps:$4 sm:$0xff]  }
  0xaa   : > { %2507 = vmatpush1.bf16.msra.mxu1 %v7041_v15  ;;  %2378 = vmatprep.subr.bf16.mxu0 %v7046_v16  ;;  %v7116_v15 = vld [vmem:[%s10819_s1 + $0x200] ss:$48 sps:$4 sm:$0xff]  }
  0xab   : > { %2508 = vmatprep.subr.bf16.mxu1 %v7049_v17  ;;  %v7119_v16 = vld [vmem:[%s10819_s1 + $0x800] ss:$48 sps:$4 sm:$0xff]   ;;  %v7124_v17 = vld [vmem:[%s10819_s1 + $0x1a4] ss:$48 sps:$4 sm:$0xff]  }
  0xad   : > { %2486 = vmatmul.mubr.bf16.gmra.mxu1 %v8016_v24  ;;  %2379 = vmatpush2.bf16.msra.mxu0 %v7044_v18  ;;  %v7127_v18 = vld [vmem:[%s10819_s1 + $0x7a4] ss:$48 sps:$4 sm:$0xff]  }
  0xae   : > { %2509 = vmatpush1.bf16.msra.mxu1 %v7047_v19  ;;  %2380 = vmatprep.subr.bf16.mxu0 %v7052_v20  ;;  %v7122_v19 = vld [vmem:[%s10819_s1 + $0x1a0] ss:$48 sps:$4 sm:$0xff]  }
  0xaf   : > { %2510 = vmatprep.subr.bf16.mxu1 %v7055_v22  ;;  %2528 = vmatprep.mubr.bf16.mxu1 %v7936_v54  ;;  %v7125_v20 = vld [vmem:[%s10819_s1 + $0x7a0] ss:$48 sps:$4 sm:$0xff]   ;;  %v7130_v22 = vld [vmem:[%s10819_s1 + $0x144] ss:$48 sps:$4 sm:$0xff]  }
  0xb1   : > { %2381 = vmatpush2.bf16.msra.mxu0 %v7050_v23  ;;  %v7133_v23 = vld [vmem:[%s10819_s1 + $0x744] ss:$48 sps:$4 sm:$0xff]  }
  0xb2   : > { %2511 = vmatpush1.bf16.msra.mxu1 %v7053_v25  ;;  %2569 = vmatprep.subr.bf16.mxu0 %v7061_v27  ;;  %v7128_v25 = vld [vmem:[%s10819_s1 + $0x140] ss:$48 sps:$4 sm:$0xff]   ;;  %v7136_v27 = vld [vmem:[%s10819_s1 + $0xe4] ss:$48 sps:$4 sm:$0xff]  }
  0xb3   : > { %2512 = vmatprep.subr.bf16.mxu1 %v7058_v26  ;;  %v7131_v26 = vld [vmem:[%s10819_s1 + $0x740] ss:$48 sps:$4 sm:$0xff]  }
  0xb4   : > { %2383 = vmatmul.mubr.bf16.vlgmr.msra.gmra.mxu0 %v8012_v21 }
  0xb5   : > { %2570 = vmatpush1.bf16.msra.mxu0 %v7059_v29  ;;  %2392 = vmatprep.mubr.bf16.mxu0 %v8033_v30  ;;  %v7134_v29 = vld [vmem:[%s10819_s1 + $0xe0] ss:$48 sps:$4 sm:$0xff]  }
  0xb6   : > { %2513 = vmatpush2.bf16.msra.mxu1 %v7056_v28  ;;  %2571 = vmatprep.subr.bf16.mxu0 %v7067_v32  ;;  %v7139_v28 = vld [vmem:[%s10819_s1 + $0x6e4] ss:$48 sps:$4 sm:$0xff]  }
  0xb7   : > { %2514 = vmatprep.subr.bf16.mxu1 %v7064_v31  ;;  %v7137_v31 = vld [vmem:[%s10819_s1 + $0x6e0] ss:$48 sps:$4 sm:$0xff]   ;;  %v7142_v32 = vld [vmem:[%s10819_s1 + $0x84] ss:$48 sps:$4 sm:$0xff]  }
  0xb9   : > { %2572 = vmatpush1.bf16.msra.mxu0 %v7065_v34  ;;  %v7140_v34 = vld [vmem:[%s10819_s1 + $0x80] ss:$48 sps:$4 sm:$0xff]  }
  0xba   : > { %2515 = vmatpush2.bf16.msra.mxu1 %v7062_v33  ;;  %2573 = vmatprep.subr.bf16.mxu0 %v7073_v36  ;;  %v7145_v33 = vld [vmem:[%s10819_s1 + $0x684] ss:$48 sps:$4 sm:$0xff]  }
  0xbb   : > { %2516 = vmatprep.subr.bf16.mxu1 %v7070_v35  ;;  %v7143_v35 = vld [vmem:[%s10819_s1 + $0x680] ss:$48 sps:$4 sm:$0xff]   ;;  %v7148_v36 = vld [vmem:[%s10819_s1 + $0x24] ss:$48 sps:$4 sm:$0xff]  }
  0xbc   : > { %2393 = vmatmul.mubr.bf16.gmra.mxu0 %v8053_v38 }
  0xbd   : > { %2574 = vmatpush1.bf16.msra.mxu0 %v7071_v40  ;;  %2402 = vmatprep.mubr.bf16.mxu0 %v8069_v45  ;;  %v7146_v40 = vld [vmem:[%s10819_s1 + $0x20] ss:$48 sps:$4 sm:$0xff]  }
  0xbe   : > { %2517 = vmatpush2.bf16.msra.mxu1 %v7068_v39  ;;  %2575 = vmatprep.subr.bf16.mxu0 %v7079_v42  ;;  %v7151_v39 = vld [vmem:[%s10819_s1 + $0x624] ss:$48 sps:$4 sm:$0xff]  }
  0xbf   : > { %2518 = vmatprep.subr.bf16.mxu1 %v7076_v41  ;;  %v7149_v41 = vld [vmem:[%s10819_s1 + $0x620] ss:$48 sps:$4 sm:$0xff]   ;;  %v7154_v42 = vld [vmem:[%s10819_s1 + $0x5c4] ss:$48 sps:$4 sm:$0xff]  }
  0xc1   : > { %2576 = vmatpush1.bf16.msra.mxu0 %v7077_v44  ;;  %v7152_v44 = vld [vmem:[%s10819_s1 + $0x5c0] ss:$48 sps:$4 sm:$0xff]  }
  0xc2   : > { %2519 = vmatpush2.bf16.msra.mxu1 %v7074_v43  ;;  %2577 = vmatprep.subr.bf16.mxu0 %v7085_v47  ;;  %v7157_v43 = vld [vmem:[%s10819_s1 + $0x2cc] ss:$48 sps:$4 sm:$0xff]   ;;  %v7160_v47 = vld [vmem:[%s10819_s1 + $0x564] ss:$48 sps:$4 sm:$0xff]  }
  0xc3   : > { %2520 = vmatprep.subr.bf16.mxu1 %v7082_v46  ;;  %v7155_v46 = vld [vmem:[%s10819_s1 + $0x2c8] ss:$48 sps:$4 sm:$0xff]  }
  0xc4   : > { %2403 = vmatmul.mubr.bf16.gmra.mxu0 %v8087_v52 }
  0xc5   : > { %2578 = vmatpush1.bf16.msra.mxu0 %v7083_v49  ;;  %2412 = vmatprep.mubr.bf16.mxu0 %v8103_v60  ;;  %v7158_v49 = vld [vmem:[%s10819_s1 + $0x560] ss:$48 sps:$4 sm:$0xff]  }
  0xc6   : > { %2521 = vmatpush2.bf16.msra.mxu1 %v7080_v48  ;;  %2579 = vmatprep.subr.bf16.mxu0 %v7091_v51  ;;  %v7163_v48 = vld [vmem:[%s10819_s1 + $0x26c] ss:$48 sps:$4 sm:$0xff]   ;;  %v7166_v51 = vld [vmem:[%s10819_s1 + $0x504] ss:$48 sps:$4 sm:$0xff]  }
  0xc7   : > { %2522 = vmatprep.subr.bf16.mxu1 %v7088_v50  ;;  %v7161_v50 = vld [vmem:[%s10819_s1 + $0x268] ss:$48 sps:$4 sm:$0xff]  }
  0xc9   : > { %2580 = vmatpush1.bf16.msra.mxu0 %v7089_v55 }
  0xca   : > { %2523 = vmatpush2.bf16.msra.mxu1 %v7086_v53  ;;  %2581 = vmatprep.subr.bf16.mxu0 %v7097_v57  ;;  %v7169_v53 = vld [vmem:[%s10819_s1 + $0x20c] ss:$48 sps:$4 sm:$0xff]   ;;  %v7167_v57 = vld [vmem:[%s10819_s1 + $0x208] ss:$48 sps:$4 sm:$0xff]  }
  0xcb   : > { %2524 = vmatprep.subr.bf16.mxu1 %v7094_v56  ;;  %v7164_v56 = vld [vmem:[%s10819_s1 + $0x500] ss:$48 sps:$4 sm:$0xff]  }
  0xcc   : > { %2413 = vmatmul.mubr.bf16.gmra.mxu0 %v8115_v3 }
  0xcd   : > { %2582 = vmatpush1.bf16.msra.mxu0 %v7095_v59  ;;  %2601 = vmatprep.mubr.bf16.mxu0 %v7695_v2  ;;  %v7175_v59 = vld [vmem:[%s10819_s1 + $0x1ac] ss:$48 sps:$4 sm:$0xff]  }
  0xce   : > { %2525 = vmatpush2.bf16.msra.mxu1 %v7092_v58  ;;  %2583 = vmatprep.subr.bf16.mxu0 %v7103_v63  ;;  %v7172_v58 = vld [vmem:[%s10819_s1 + $0x4a4] ss:$48 sps:$4 sm:$0xff]   ;;  %v7170_v63 = vld [vmem:[%s10819_s1 + $0x4a0] ss:$48 sps:$4 sm:$0xff]  }
  0xcf   : > { %2526 = vmatprep.subr.bf16.mxu1 %v7100_v61 }
  0xd1   : > { %2584 = vmatpush1.bf16.msra.mxu0 %v7101_v1  ;;  %v7178_v1 = vld [vmem:[%s10819_s1 + $0x444] ss:$48 sps:$4 sm:$0xff]  }
  0xd2   : > { %2527 = vmatpush2.bf16.msra.mxu1 %v7098_v0  ;;  %2642 = vmatprep.subr.bf16.mxu0 %v7106_v4  ;;  %v7173_v0 = vld [vmem:[%s10819_s1 + $0x1a8] ss:$48 sps:$4 sm:$0xff]   ;;  %v7181_v4 = vld [vmem:[%s10819_s1 + $0x14c] ss:$48 sps:$4 sm:$0xff]  }
  0xd3   : > { %2715 = vmatprep.subr.bf16.mxu1 %v7109_v5 }
  0xd4   : > { %2602 = vmatmul.mubr.bf16.vlgmr.msra.gmra.mxu0 %v7888_v37 }
  0xd5   : > { %2529 = vmatmul.mubr.bf16.vlgmr.msra.gmra.mxu1 %v8012_v21  ;;  %2643 = vmatpush1.bf16.msra.mxu0 %v7104_v6  ;;  %v7176_v6 = vld [vmem:[%s10819_s1 + $0x440] ss:$48 sps:$4 sm:$0xff]  }
  0xd6   : > { %2716 = vmatpush1.bf16.msra.mxu1 %v7107_v7  ;;  %2644 = vmatprep.subr.bf16.mxu0 %v7112_v8  ;;  %v7179_v7 = vld [vmem:[%s10819_s1 + $0x148] ss:$48 sps:$4 sm:$0xff]   ;;  %v7184_v8 = vld [vmem:[%s10819_s1 + $0x3e4] ss:$48 sps:$4 sm:$0xff]  }
  0xd7   : > { %2717 = vmatprep.subr.bf16.mxu1 %v7115_v10  ;;  %2538 = vmatprep.mubr.bf16.mxu1 %v8033_v30  ;;  %v7187_v10 = vld [vmem:[%s10819_s1 + $0xec] ss:$48 sps:$4 sm:$0xff]  }
  0xd8   : > { %2611 = vmatprep.mubr.bf16.mxu0 %v7695_v2 }
  0xd9   : > { %2645 = vmatpush1.bf16.msra.mxu0 %v7110_v11 }
  0xda   : > { %2718 = vmatpush1.bf16.msra.mxu1 %v7113_v12  ;;  %2646 = vmatprep.subr.bf16.mxu0 %v7118_v13  ;;  %v7182_v12 = vld [vmem:[%s10819_s1 + $0x3e0] ss:$48 sps:$4 sm:$0xff]   ;;  %v7185_v13 = vld [vmem:[%s10819_s1 + $0xe8] ss:$48 sps:$4 sm:$0xff]  }
  0xdb   : > { %2719 = vmatprep.subr.bf16.mxu1 %v7121_v14  ;;  %v558_v14 = vlaneseq }
  0xdc   : > { %2612 = vmatmul.mubr.bf16.gmra.mxu0 %v7956_v62 }
  0xdd   : > { %2539 = vmatmul.mubr.bf16.gmra.mxu1 %v8053_v38  ;;  %2647 = vmatpush1.bf16.msra.mxu0 %v7116_v15  ;;  %v7190_v15 = vld [vmem:[%s10819_s1 + $0x384] ss:$48 sps:$4 sm:$0xff]  }
  0xde   : > { %2720 = vmatpush1.bf16.msra.mxu1 %v7119_v16  ;;  %2648 = vmatprep.subr.bf16.mxu0 %v7124_v17  ;;  %v7193_v16 = vld [vmem:[%s10819_s1 + $0x8c] ss:$48 sps:$4 sm:$0xff]  }
  0xdf   : > { %2721 = vmatprep.subr.bf16.mxu1 %v7127_v18  ;;  %2548 = vmatprep.mubr.bf16.mxu1 %v8069_v45  ;;  %v7188_v18 = vld [vmem:[%s10819_s1 + $0x380] ss:$48 sps:$4 sm:$0xff]  }
  0xe0   : > { %2621 = vmatprep.mubr.bf16.mxu0 %v7695_v2 }
  0xe1   : > { %2649 = vmatpush1.bf16.msra.mxu0 %v7122_v19  ;;  %v7191_v19 = vld [vmem:[%s10819_s1 + $0x88] ss:$48 sps:$4 sm:$0xff]  }
  0xe2   : > { %2722 = vmatpush1.bf16.msra.mxu1 %v7125_v20  ;;  %2650 = vmatprep.subr.bf16.mxu0 %v7130_v22  ;;  %v8669_v20 = vshrl.u32 %v558_v14, 7  ;;  %v7196_v22 = vld [vmem:[%s10819_s1 + $0x324] ss:$48 sps:$4 sm:$0xff]  }
  0xe3   : > { %2723 = vmatprep.subr.bf16.mxu1 %v7133_v23  ;;  %v7199_v23 = vld [vmem:[%s10819_s1 + $0x2c] ss:$48 sps:$4 sm:$0xff]  }
  0xe4   : > { %2622 = vmatmul.mubr.bf16.gmra.mxu0 %v7983_v9  ;;  %10851 = vst [vmem:[#allocation5_spill] sm:$0xff] %v8669_v20 }
  0xe5   : > { %2549 = vmatmul.mubr.bf16.gmra.mxu1 %v8087_v52  ;;  %2651 = vmatpush1.bf16.msra.mxu0 %v7128_v25 }
  0xe6   : > { %2724 = vmatpush1.bf16.msra.mxu1 %v7131_v26  ;;  %2652 = vmatprep.subr.bf16.mxu0 %v7136_v27  ;;  %v7194_v26 = vld [vmem:[%s10819_s1 + $0x320] ss:$48 sps:$4 sm:$0xff]   ;;  %v7197_v27 = vld [vmem:[%s10819_s1 + $0x28] ss:$48 sps:$4 sm:$0xff]  }
  0xe7   : > { %2725 = vmatprep.subr.bf16.mxu1 %v7139_v28  ;;  %2558 = vmatprep.mubr.bf16.mxu1 %v8103_v60  ;;  %v8689_v28 = vld [vmem:[%s10820_s2] sm:$0xff] }
  0xe8   : > { %2631 = vmatprep.mubr.bf16.mxu0 %v7695_v2 }
  0xe9   : > { %2653 = vmatpush1.bf16.msra.mxu0 %v7134_v29  ;;  %v8692_v29 = vsub.s32 0, %v8669_v20 }
  0xea   : > { %2726 = vmatpush1.bf16.msra.mxu1 %v7137_v31  ;;  %2654 = vmatprep.subr.bf16.mxu0 %v7142_v32  ;;  %v7202_v31 = vld [vmem:[%s10819_s1 + $0x5cc] ss:$48 sps:$4 sm:$0xff]  }
  0xeb   : > { %2727 = vmatprep.subr.bf16.mxu1 %v7145_v33  ;;  %10852 = vst [vmem:[#allocation6_spill] sm:$0xff] %v8692_v29  ;;  %v7205_v32 = vld [vmem:[%s10819_s1 + $0x8cc] ss:$48 sps:$4 sm:$0xff]  }
  0xec   : > { %2632 = vmatmul.mubr.bf16.gmra.mxu0 %v8016_v24 }
  0xed   : > { %2559 = vmatmul.mubr.bf16.gmra.mxu1 %v8115_v3  ;;  %2655 = vmatpush1.bf16.msra.mxu0 %v7140_v34  ;;  %v7200_v34 = vld [vmem:[%s10819_s1 + $0x5c8] ss:$48 sps:$4 sm:$0xff]  }
  0xee   : > { %2728 = vmatpush1.bf16.msra.mxu1 %v7143_v35  ;;  %2656 = vmatprep.subr.bf16.mxu0 %v7148_v36  ;;  %v8708_v35 = vrot.slane %v8689_v28, %v8692_v29  ;;  %v7203_v36 = vld [vmem:[%s10819_s1 + $0x8c8] ss:$48 sps:$4 sm:$0xff]  }
  0xef   : > { %2729 = vmatprep.subr.bf16.mxu1 %v7151_v39  ;;  %2747 = vmatprep.mubr.bf16.mxu1 %v7695_v2  ;;  %v7211_v39 = vld [vmem:[%s10819_s1 + $0x86c] ss:$48 sps:$4 sm:$0xff]  }
  0xf0   : > { %2674 = vmatprep.mubr.bf16.mxu0 %v7936_v54 }
  0xf1   : > { %2657 = vmatpush1.bf16.msra.mxu0 %v7146_v40 }
  0xf2   : > { %2730 = vmatpush1.bf16.msra.mxu1 %v7149_v41  ;;  %2658 = vmatprep.subr.bf16.mxu0 %v7154_v42  ;;  %v7206_v42 = vld [vmem:[%s10819_s1 + $0x568] ss:$48 sps:$4 sm:$0xff]  }
  0xf3   : > { %2788 = vmatprep.subr.bf16.mxu1 %v7157_v43 }
  0xf5   : > { %2748 = vmatmul.mubr.bf16.vlgmr.msra.gmra.mxu1 %v7888_v37  ;;  %2659 = vmatpush2.bf16.msra.mxu0 %v7152_v44  ;;  %v8601_v55 = vpop.f32.mrf.mxu1  ;;  %v7209_v44 = vld [vmem:[%s10819_s1 + $0x868] ss:$48 sps:$4 sm:$0xff]  }
  0xf6   : > { %2789 = vmatpush1.bf16.msra.mxu1 %v7155_v46  ;;  %2660 = vmatprep.subr.bf16.mxu0 %v7160_v47  ;;  %v7214_v47 = vld [vmem:[%s10819_s1 + $0x50c] ss:$48 sps:$4 sm:$0xff]  }
  0xf7   : > { %2790 = vmatprep.subr.bf16.mxu1 %v7163_v48  ;;  %2757 = vmatprep.mubr.bf16.mxu1 %v7695_v2  ;;  %v8615_v61 = vpop.f32.mrf.mxu1  ;;  %v7217_v48 = vld [vmem:[%s10819_s1 + $0x80c] ss:$48 sps:$4 sm:$0xff]  }
  0xf9   : > { %2661 = vmatpush2.bf16.msra.mxu0 %v7158_v49  ;;  %v8631_v5 = vpop.f32.mrf.mxu1 }
  0xfa   : > { %2791 = vmatpush1.bf16.msra.mxu1 %v7161_v50  ;;  %2662 = vmatprep.subr.bf16.mxu0 %v7166_v51 }
  0xfb   : > { %2792 = vmatprep.subr.bf16.mxu1 %v7169_v53  ;;  %v8645_v11 = vpop.f32.mrf.mxu1  ;;  %v7212_v53 = vld [vmem:[%s10819_s1 + $0x508] ss:$48 sps:$4 sm:$0xff]  }
  0xfd   : > { %2758 = vmatmul.mubr.bf16.gmra.mxu1 %v7956_v62  ;;  %2663 = vmatpush2.bf16.msra.mxu0 %v7164_v56  ;;  %v8660_v17 = vpop.f32.mrf.mxu1  ;;  %v8745_v56 = vsub.s32 1, %v8669_v20 }
  0xfe   : > { %2793 = vmatpush1.bf16.msra.mxu1 %v7167_v57  ;;  %2664 = vmatprep.subr.bf16.mxu0 %v7172_v58  ;;  %v7215_v58 = vld [vmem:[%s10819_s1 + $0x808] ss:$48 sps:$4 sm:$0xff]  }
  0xff   : > { %2794 = vmatprep.subr.bf16.mxu1 %v7175_v59  ;;  %2767 = vmatprep.mubr.bf16.mxu1 %v7695_v2  ;;  %v8677_v25 = vpop.f32.mrf.mxu1 }
 0x101   : > { %2665 = vmatpush2.bf16.msra.mxu0 %v7170_v63  ;;  %v8700_v33 = vpop.f32.mrf.mxu1  ;;  %v7223_v63 = vld [vmem:[%s10819_s1 + $0x7ac] ss:$48 sps:$4 sm:$0xff]  }
 0x102   : > { %2795 = vmatpush1.bf16.msra.mxu1 %v7173_v0  ;;  %2666 = vmatprep.subr.bf16.mxu0 %v7178_v1 }
 0x103   : > { %2796 = vmatprep.subr.bf16.mxu1 %v7181_v4  ;;  %v8719_v40 = vpop.f32.mrf.mxu1 }
 0x105   : > { %2768 = vmatmul.mubr.bf16.gmra.mxu1 %v7983_v9  ;;  %2667 = vmatpush2.bf16.msra.mxu0 %v7176_v6  ;;  %v8737_v49 = vpop.f32.mrf.mxu1  ;;  %v7218_v6 = vld [vmem:[%s10819_s1 + $0x4a8] ss:$48 sps:$4 sm:$0xff]  }
 0x106   : > { %2797 = vmatpush1.bf16.msra.mxu1 %v7179_v7  ;;  %2668 = vmatprep.subr.bf16.mxu0 %v7184_v8  ;;  %v8766_v8 = vrot.slane %v8689_v28, %v8745_v56 }
 0x107   : > { %2798 = vmatprep.subr.bf16.mxu1 %v7187_v10  ;;  %2777 = vmatprep.mubr.bf16.mxu1 %v7695_v2  ;;  %v2187_v0 = vpop.f32.mrf.mxu1 }
 0x109   : > { %2669 = vmatpush2.bf16.msra.mxu0 %v7182_v12  ;;  %v2189_v14 = vpop.f32.mrf.mxu1 }
 0x10a   : > { %2799 = vmatpush1.bf16.msra.mxu1 %v7185_v13  ;;  %2670 = vmatprep.subr.bf16.mxu0 %v7190_v15  ;;  %v7226_v15 = vld [vmem:[%s10819_s1 + $0x44c] ss:$48 sps:$4 sm:$0xff]  }
 0x10b   : > { %2800 = vmatprep.subr.bf16.mxu1 %v7193_v16  ;;  %v7229_v16 = vld [vmem:[%s10819_s1 + $0x74c] ss:$48 sps:$4 sm:$0xff]  }
 0x10d   : > { %2778 = vmatmul.mubr.bf16.gmra.mxu1 %v8016_v24  ;;  %2671 = vmatpush2.bf16.msra.mxu0 %v7188_v18 }
 0x10e   : > { %2801 = vmatpush1.bf16.msra.mxu1 %v7191_v19  ;;  %2672 = vmatprep.subr.bf16.mxu0 %v7196_v22 }
 0x10f   : > { %2802 = vmatprep.subr.bf16.mxu1 %v7199_v23  ;;  %2820 = vmatprep.mubr.bf16.mxu1 %v7936_v54  ;;  %v7208_v54 = vld [vmem:[%s10819_s1 + $0x56c] ss:$48 sps:$4 sm:$0xff]  }
 0x111   : > { %2673 = vmatpush2.bf16.msra.mxu0 %v7194_v26  ;;  %v7224_v26 = vld [vmem:[%s10819_s1 + $0x448] ss:$48 sps:$4 sm:$0xff]  }
 0x112   : > { %2803 = vmatpush1.bf16.msra.mxu1 %v7197_v27  ;;  %2861 = vmatprep.subr.bf16.mxu0 %v7205_v32 }
 0x113   : > { %2804 = vmatprep.subr.bf16.mxu1 %v7202_v31 }
 0x114   : > { %v2092_v41 = vpop.f32.mrf.mxu0  ;;  %2675 = vmatmul.mubr.bf16.vlgmr.msra.gmra.mxu0 %v8012_v21 }
 0x115   : > { %v2093_v43 = vadd.f32 %v2092_v41, %v8708_v35  ;;  %2862 = vmatpush1.bf16.msra.mxu0 %v7203_v36  ;;  %2684 = vmatprep.mubr.bf16.mxu0 %v8033_v30  ;;  %v7232_v36 = vld [vmem:[%s10819_s1 + $0x3ec] ss:$48 sps:$4 sm:$0xff]   ;;  %v7230_v41 = vld [vmem:[%s10819_s1 + $0x3e8] ss:$48 sps:$4 sm:$0xff]  }
 0x116   : > { %2805 = vmatpush2.bf16.msra.mxu1 %v7200_v34  ;;  %v8729_v46 = vpop.f32.mrf.mxu0  ;;  %2863 = vmatprep.subr.bf16.mxu0 %v7211_v39  ;;  %v8795_v34 = vpop.f32.mrf.mxu1 }
 0x117   : > { %2806 = vmatprep.subr.bf16.mxu1 %v7208_v54  ;;  %v2166_v50 = vadd.f32 %v8601_v55, %v2093_v43  ;;  %v7220_v55 = vld [vmem:[%s10819_s1 + $0x4ac] ss:$48 sps:$4 sm:$0xff]  }
 0x118   : > { %v2096_v51 = vpop.f32.mrf.mxu0 }
 0x119   : > { %v2097_v57 = vadd.f32 %v2096_v51, %v8708_v35  ;;  %2864 = vmatpush1.bf16.msra.mxu0 %v7209_v44  ;;  %v2934_v7 = vmax.f32 %v2166_v50, 0.0  ;;  %v2195_v50 = vpop.f32.mrf.mxu1  ;;  %v7241_v51 = vld [vmem:[%s10819_s1 + $0x68c] ss:$48 sps:$4 sm:$0xff]  }
 0x11a   : > { %2807 = vmatpush2.bf16.msra.mxu1 %v7206_v42  ;;  %v8751_v59 = vpop.f32.mrf.mxu0  ;;  %2865 = vmatprep.subr.bf16.mxu0 %v7217_v48 }
 0x11b   : > { %2808 = vmatprep.subr.bf16.mxu1 %v7214_v47  ;;  %v2170_v1 = vadd.f32 %v8631_v5, %v2097_v57  ;;  %v7221_v5 = vld [vmem:[%s10819_s1 + $0x7a8] ss:$48 sps:$4 sm:$0xff]  }
 0x11c   : > { %v2102_v4 = vpop.f32.mrf.mxu0  ;;  %2685 = vmatmul.mubr.bf16.gmra.mxu0 %v8053_v38  ;;  %v7233_v47 = vld [vmem:[%s10819_s1 + $0x6e8] ss:$48 sps:$4 sm:$0xff]  }
 0x11d   : > { %v2946_v10 = vmax.f32 %v2170_v1, 0.0  ;;  %v2103_v12 = vadd.f32 %v2102_v4, %v8708_v35  ;;  %2866 = vmatpush1.bf16.msra.mxu0 %v7215_v58  ;;  %2694 = vmatprep.mubr.bf16.mxu0 %v8069_v45  ;;  %v7239_v1 = vld [vmem:[%s10819_s1 + $0x688] ss:$48 sps:$4 sm:$0xff]  }
 0x11e   : > { %2809 = vmatpush2.bf16.msra.mxu1 %v7212_v53  ;;  %v2104_v13 = vpop.f32.mrf.mxu0  ;;  %2867 = vmatprep.subr.bf16.mxu0 %v7223_v63  ;;  %v7236_v63 = vld [vmem:[%s10819_s1 + $0x388] ss:$48 sps:$4 sm:$0xff]  }
 0x11f   : > { %2810 = vmatprep.subr.bf16.mxu1 %v7220_v55  ;;  %v8778_v18 = vpack.c.bf16 %v2946_v10, %v2934_v7  ;;  %v2176_v19 = vadd.f32 %v8660_v17, %v2103_v12  ;;  %v2105_v22 = vadd.f32 %v2104_v13, %v8766_v8  ;;  %v7227_v17 = vld [vmem:[%s10819_s1 + $0x748] ss:$48 sps:$4 sm:$0xff]   ;;  %v7247_v7 = vld [vmem:[%s10819_s1 + $0x62c] ss:$48 sps:$4 sm:$0xff]   ;;  %v2197_v10 = vpop.f32.mrf.mxu1 }
 0x120   : > { %v2106_v23 = vpop.f32.mrf.mxu0 }
 0x121   : > { %10853 = vst [vmem:[#allocation7_spill] sm:$0xff] %v8778_v18  ;;  %v8787_v27 = vadd.f32 %v8677_v25, %v2105_v22  ;;  %v2107_v31 = vadd.f32 %v2106_v23, %v8708_v35  ;;  %2868 = vmatpush1.bf16.msra.mxu0 %v7221_v5  ;;  %v7235_v25 = vld [vmem:[%s10819_s1 + $0x6ec] ss:$48 sps:$4 sm:$0xff]   ;;  %v2958_v42 = vmax.f32 %v2176_v19, 0.0 }
 0x122   : > { %2811 = vmatpush2.bf16.msra.mxu1 %v7218_v6  ;;  %v8793_v32 = vpop.f32.mrf.mxu0  ;;  %2869 = vmatprep.subr.bf16.mxu0 %v7229_v16  ;;  %v7250_v16 = vld [vmem:[%s10821_s3 + $0xac] ss:$12 sps:$4 sm:$0xff]  }
 0x123   : > { %2812 = vmatprep.subr.bf16.mxu1 %v7226_v15  ;;  %v2180_v54 = vadd.f32 %v8700_v33, %v2107_v31  ;;  %v7238_v33 = vld [vmem:[%s10819_s1 + $0x38c] ss:$48 sps:$4 sm:$0xff]   ;;  %v7245_v15 = vld [vmem:[%s10819_s1 + $0x628] ss:$48 sps:$4 sm:$0xff]  }
 0x124   : > { %v2112_v39 = vpop.f32.mrf.mxu0  ;;  %2695 = vmatmul.mubr.bf16.gmra.mxu0 %v8087_v52 }
 0x125   : > { %v2970_v43 = vmax.f32 %v2180_v54, 0.0  ;;  %v2113_v44 = vadd.f32 %v2112_v39, %v8708_v35  ;;  %2870 = vmatpush1.bf16.msra.mxu0 %v7227_v17  ;;  %2704 = vmatprep.mubr.bf16.mxu0 %v8103_v60  ;;  %v7248_v39 = vld [vmem:[%s10821_s3 + $0xa8] ss:$12 sps:$4 sm:$0xff]  }
 0x126   : > { %2813 = vmatpush2.bf16.msra.mxu1 %v7224_v26  ;;  %v2114_v48 = vpop.f32.mrf.mxu0  ;;  %2871 = vmatprep.subr.bf16.mxu0 %v7235_v25  ;;  %v2199_v26 = vpop.f32.mrf.mxu1 }
 0x127   : > { %2814 = vmatprep.subr.bf16.mxu1 %v7232_v36  ;;  %v2186_v53 = vadd.f32 %v8737_v49, %v2113_v44  ;;  %v2115_v57 = vadd.f32 %v2114_v48, %v8766_v8  ;;  %v8821_v58 = vpack.c.bf16 %v2970_v43, %v2958_v42  ;;  %v7244_v49 = vld [vmem:[%s10819_s1 + $0x32c] ss:$48 sps:$4 sm:$0xff]   ;;  %v7256_v44 = vld [vmem:[%s10821_s3 + $0x94] ss:$12 sps:$4 sm:$0xff]  }
 0x128   : > { %v2116_v55 = vpop.f32.mrf.mxu0  ;;  %v8873_v48 = vpop.f32.mrf.mxu1 }
 0x129   : > { %10854 = vst [vmem:[#allocation8_spill] sm:$0xff] %v8821_v58  ;;  %v8829_v4 = vadd.f32 %v2187_v0, %v2115_v57  ;;  %v2117_v6 = vadd.f32 %v2116_v55, %v8708_v35  ;;  %2872 = vmatpush1.bf16.msra.mxu0 %v7233_v47  ;;  %v7242_v0 = vld [vmem:[%s10819_s1 + $0x328] ss:$48 sps:$4 sm:$0xff]   ;;  %v2982_v19 = vmax.f32 %v2186_v53, 0.0  ;;  %v7259_v47 = vld [vmem:[%s10821_s3 + $0x214] ss:$12 sps:$4 sm:$0xff]  }
 0x12a   : > { %2815 = vmatpush2.bf16.msra.mxu1 %v7230_v41  ;;  %v8838_v12 = vpop.f32.mrf.mxu0  ;;  %2873 = vmatprep.subr.bf16.mxu0 %v7241_v51  ;;  %v7251_v41 = vld [vmem:[%s10821_s3 + $0x228] ss:$12 sps:$4 sm:$0xff]   ;;  %v7257_v51 = vld [vmem:[%s10821_s3 + $0x210] ss:$12 sps:$4 sm:$0xff]  }
 0x12b   : > { %2816 = vmatprep.subr.bf16.mxu1 %v7238_v33  ;;  %v2190_v5 = vadd.f32 %v2189_v14, %v2117_v6  ;;  %v7253_v14 = vld [vmem:[%s10821_s3 + $0x22c] ss:$12 sps:$4 sm:$0xff]   ;;  %v7262_v57 = vld [vmem:[%s10821_s3 + $0x7c] ss:$12 sps:$4 sm:$0xff]  }
 0x12c   : > { %v2122_v13 = vpop.f32.mrf.mxu0  ;;  %2705 = vmatmul.mubr.bf16.gmra.mxu0 %v8115_v3 }
 0x12d   : > { %v2994_v22 = vmax.f32 %v2190_v5, 0.0  ;;  %v2123_v23 = vadd.f32 %v2122_v13, %v8708_v35  ;;  %2874 = vmatpush1.bf16.msra.mxu0 %v7239_v1  ;;  %2893 = vmatprep.mubr.bf16.mxu0 %v7695_v2  ;;  %v7265_v1 = vld [vmem:[%s10821_s3 + $0x1fc] ss:$12 sps:$4 sm:$0xff]   ;;  %v7268_v5 = vld [vmem:[%s10821_s3 + $0x64] ss:$12 sps:$4 sm:$0xff]  }
 0x12e   : > { %2817 = vmatpush2.bf16.msra.mxu1 %v7236_v63  ;;  %v2124_v31 = vpop.f32.mrf.mxu0  ;;  %2875 = vmatprep.subr.bf16.mxu0 %v7247_v7 }
 0x12f   : > { %2818 = vmatprep.subr.bf16.mxu1 %v7244_v49  ;;  %v2196_v17 = vadd.f32 %v2195_v50, %v2123_v23  ;;  %v2125_v36 = vadd.f32 %v2124_v31, %v8766_v8  ;;  %v8856_v25 = vpack.c.bf16 %v2994_v22, %v2982_v19  ;;  %v7269_v19 = vld [vmem:[%s10821_s3 + $0x1e0] ss:$12 sps:$4 sm:$0xff]  }
 0x130   : > { %v2126_v54 = vpop.f32.mrf.mxu0  ;;  %v7274_v23 = vld [vmem:[%s10821_s3 + $0x4c] ss:$12 sps:$4 sm:$0xff]  }
 0x131   : > { %10855 = vst [vmem:[#allocation9_spill] sm:$0xff] %v8856_v25  ;;  %v8864_v42 = vadd.f32 %v2197_v10, %v2125_v36  ;;  %v2127_v43 = vadd.f32 %v2126_v54, %v8708_v35  ;;  %2876 = vmatpush1.bf16.msra.mxu0 %v7245_v15  ;;  %v7254_v35 = vld [vmem:[%s10821_s3 + $0x90] ss:$12 sps:$4 sm:$0xff]   ;;  %v3006_v55 = vmax.f32 %v2196_v17, 0.0  ;;  %v7272_v17 = vld [vmem:[%s10821_s3 + $0x48] ss:$12 sps:$4 sm:$0xff]  }
 0x132   : > { %2819 = vmatpush2.bf16.msra.mxu1 %v7242_v0  ;;  %5015 = vmatprep.subr.bf16.mxu0 %v7250_v16  ;;  %v8875_v33 = vpop.f32.mrf.mxu0  ;;  %v10824_v0 = vsub.s32 3, %v8669_v20  ;;  %v7266_v16 = vld [vmem:[%s10821_s3 + $0x60] ss:$12 sps:$4 sm:$0xff]   ;;  %v7275_v36 = vld [vmem:[%s10821_s3 + $0x1c8] ss:$12 sps:$4 sm:$0xff]  }
 0x133   : > { %5088 = vmatprep.subr.bf16.mxu1 %v7253_v14  ;;  %v2200_v50 = vadd.f32 %v2199_v26, %v2127_v43  ;;  %v7277_v14 = vld [vmem:[%s10821_s3 + $0x1cc] ss:$12 sps:$4 sm:$0xff]  }
 0x134   : > { %2894 = vmatmul.mubr.bf16.vlgmr.msra.gmra.mxu0 %v7888_v37  ;;  %v8893_v49 = vpop.f32.mrf.mxu0  ;;  %v7260_v37 = vld [vmem:[%s10821_s3 + $0x78] ss:$12 sps:$4 sm:$0xff]   ;;  %v8933_v26 = vrot.slane %v8689_v28, %v10824_v0 }
 0x135   : > { %v8883_v53 = vpop.f32.mrf.mxu1  ;;  %2821 = vmatmul.mubr.bf16.vlgmr.msra.gmra.mxu1 %v8012_v21  ;;  %v3018_v63 = vmax.f32 %v2200_v50, 0.0  ;;  %5016 = vmatpush1.bf16.msra.mxu0 %v7248_v39  ;;  %v7263_v21 = vld [vmem:[%s10821_s3 + $0x1f8] ss:$12 sps:$4 sm:$0xff]  }
 0x136   : > { %5089 = vmatpush1.bf16.msra.mxu1 %v7251_v41  ;;  %5017 = vmatprep.subr.bf16.mxu0 %v7256_v44  ;;  %v2313_v15 = vpop.f32.mrf.mxu0  ;;  %v2095_v41 = vadd.f32 %v8729_v46, %v8766_v8  ;;  %v7335_v0 = vld [vmem:[%s10821_s3 + $0x258] ss:$12 sps:$4 sm:$0xff]  }
 0x137   : > { %v2240_v6 = vpop.f32.mrf.mxu1  ;;  %5090 = vmatprep.subr.bf16.mxu1 %v7259_v47  ;;  %2830 = vmatprep.mubr.bf16.mxu1 %v8033_v30  ;;  %v8903_v7 = vpack.c.bf16 %v3018_v63, %v3006_v55  ;;  %v7271_v30 = vld [vmem:[%s10821_s3 + $0x1e4] ss:$12 sps:$4 sm:$0xff]   ;;  %v7289_v63 = vld [vmem:[%s10821_s3 + $0x19c] ss:$12 sps:$4 sm:$0xff]  }
 0x138   : > { %2903 = vmatprep.mubr.bf16.mxu0 %v7695_v2  ;;  %v2241_v43 = vadd.f32 %v2240_v6, %v8933_v26  ;;  %v2168_v55 = vadd.f32 %v8615_v61, %v2095_v41  ;;  %v7299_v41 = vld [vmem:[%s10821_s3 + $0x2e8] ss:$12 sps:$4 sm:$0xff]  }
 0x139   : > { %10856 = vst [vmem:[#allocation10_spill] sm:$0xff] %v8903_v7  ;;  %v8905_v10 = vpop.f32.mrf.mxu1  ;;  %5018 = vmatpush1.bf16.msra.mxu0 %v7254_v35  ;;  %v7278_v35 = vld [vmem:[%s10821_s3 + $0x30] ss:$12 sps:$4 sm:$0xff]  }
 0x13a   : > { %5091 = vmatpush1.bf16.msra.mxu1 %v7257_v51  ;;  %5019 = vmatprep.subr.bf16.mxu0 %v7262_v57  ;;  %v7281_v51 = vld [vmem:[%s10821_s3 + $0x1b0] ss:$12 sps:$4 sm:$0xff]  }
 0x13b   : > { %v2244_v13 = vpop.f32.mrf.mxu1  ;;  %5092 = vmatprep.subr.bf16.mxu1 %v7265_v1  ;;  %v2314_v1 = vadd.f32 %v2313_v15, %v2241_v43  ;;  %v7304_v43 = vld [vmem:[%s10821_s3 + $0x154] ss:$12 sps:$4 sm:$0xff]  }
 0x13c   : > { %2904 = vmatmul.mubr.bf16.gmra.mxu0 %v7956_v62  ;;  %v2099_v62 = vadd.f32 %v8751_v59, %v8766_v8  ;;  %v2245_v54 = vadd.f32 %v2244_v13, %v8933_v26  ;;  %v7280_v59 = vld [vmem:[%s10821_s3 + $0x34] ss:$12 sps:$4 sm:$0xff]  }
 0x13d   : > { %v8920_v22 = vpop.f32.mrf.mxu1  ;;  %2831 = vmatmul.mubr.bf16.gmra.mxu1 %v8053_v38  ;;  %5020 = vmatpush1.bf16.msra.mxu0 %v7260_v37  ;;  %v8939_v38 = vpop.f32.mrf.mxu0  ;;  %v2937_v13 = vmax.f32 %v2314_v1, 0.0  ;;  %v7313_v1 = vld [vmem:[%s10821_s3 + $0x2bc] ss:$12 sps:$4 sm:$0xff]  }
 0x13e   : > { %5093 = vmatpush1.bf16.msra.mxu1 %v7263_v21  ;;  %5021 = vmatprep.subr.bf16.mxu0 %v7268_v5  ;;  %v2172_v47 = vadd.f32 %v8645_v11, %v2099_v62  ;;  %v7286_v11 = vld [vmem:[%s10821_s3 + $0x1c] ss:$12 sps:$4 sm:$0xff]   ;;  %v7287_v5 = vld [vmem:[%s10821_s3 + $0x198] ss:$12 sps:$4 sm:$0xff]  }
 0x13f   : > { %v8935_v31 = vpop.f32.mrf.mxu1  ;;  %5094 = vmatprep.subr.bf16.mxu1 %v7271_v30  ;;  %2840 = vmatprep.mubr.bf16.mxu1 %v8069_v45  ;;  %v7283_v45 = vld [vmem:[%s10821_s3 + $0x1b4] ss:$12 sps:$4 sm:$0xff]   ;;  %v2317_v50 = vpop.f32.mrf.mxu0  ;;  %v2935_v30 = vmax.f32 %v2168_v55, 0.0 }
 0x140   : > { %2913 = vmatprep.mubr.bf16.mxu0 %v7695_v2  ;;  %v2318_v46 = vadd.f32 %v2317_v50, %v2245_v54  ;;  %v7307_v50 = vld [vmem:[%s10821_s3 + $0x2d4] ss:$12 sps:$4 sm:$0xff]  }
 0x141   : > { %v8950_v39 = vpop.f32.mrf.mxu1  ;;  %5022 = vmatpush1.bf16.msra.mxu0 %v7266_v16  ;;  %v8981_v6 = vpop.f32.mrf.mxu0  ;;  %v7290_v16 = vld [vmem:[%s10821_s3] ss:$12 sps:$4 sm:$0xff]  }
 0x142   : > { %5095 = vmatpush1.bf16.msra.mxu1 %v7269_v19  ;;  %5023 = vmatprep.subr.bf16.mxu0 %v7274_v23  ;;  %v2949_v61 = vmax.f32 %v2318_v46, 0.0  ;;  %v7292_v19 = vld [vmem:[%s10821_s3 + $0x4] ss:$12 sps:$4 sm:$0xff]  }
 0x143   : > { %v8961_v44 = vpop.f32.mrf.mxu1  ;;  %5096 = vmatprep.subr.bf16.mxu1 %v7277_v14  ;;  %v8995_v15 = vpop.f32.mrf.mxu0  ;;  %v7295_v23 = vld [vmem:[%s10821_s3 + $0x184] ss:$12 sps:$4 sm:$0xff]  }
 0x144   : > { %2914 = vmatmul.mubr.bf16.gmra.mxu0 %v7983_v9  ;;  %v2947_v9 = vmax.f32 %v2172_v47, 0.0  ;;  %v9014_v62 = vpack.c.bf16 %v2949_v61, %v2937_v13  ;;  %v7305_v46 = vld [vmem:[%s10821_s3 + $0x2d0] ss:$12 sps:$4 sm:$0xff]   ;;  %v7311_v61 = vld [vmem:[%s10821_s3 + $0x2b8] ss:$12 sps:$4 sm:$0xff]  }
 0x145   : > { %v8970_v57 = vpop.f32.mrf.mxu1  ;;  %2841 = vmatmul.mubr.bf16.gmra.mxu1 %v8087_v52  ;;  %5024 = vmatpush1.bf16.msra.mxu0 %v7272_v17  ;;  %v7284_v52 = vld [vmem:[%s10821_s3 + $0x18] ss:$12 sps:$4 sm:$0xff]   ;;  %v7293_v17 = vld [vmem:[%s10821_s3 + $0x180] ss:$12 sps:$4 sm:$0xff]   ;;  %v9023_v54 = vpop.f32.mrf.mxu0 }
 0x146   : > { %5097 = vmatpush1.bf16.msra.mxu1 %v7275_v36  ;;  %5025 = vmatprep.subr.bf16.mxu0 %v7280_v59  ;;  %10858 = vst [vmem:[#allocation12_spill] sm:$0xff] %v9014_v62  ;;  %v7298_v36 = vld [vmem:[%s10821_s3 + $0x16c] ss:$12 sps:$4 sm:$0xff]   ;;  %v7319_v13 = vld [vmem:[%s10821_s3 + $0x2a4] ss:$12 sps:$4 sm:$0xff]  }
 0x147   : > { %v8983_v37 = vpop.f32.mrf.mxu1  ;;  %5098 = vmatprep.subr.bf16.mxu1 %v7283_v45  ;;  %2850 = vmatprep.mubr.bf16.mxu1 %v8103_v60  ;;  %v7296_v45 = vld [vmem:[%s10821_s3 + $0x168] ss:$12 sps:$4 sm:$0xff]   ;;  %v9042_v47 = vpop.f32.mrf.mxu0 }
 0x148   : > { %2923 = vmatprep.mubr.bf16.mxu0 %v7695_v2  ;;  %v8999_v2 = vpack.c.bf16 %v2947_v9, %v2935_v30  ;;  %v9067_v9 = vsub.s32 2, %v8669_v20  ;;  %v7316_v30 = vld [vmem:[%s10821_s3 + $0x124] ss:$12 sps:$4 sm:$0xff]  }
 0x149   : > { %v8990_v21 = vpop.f32.mrf.mxu1  ;;  %5026 = vmatpush1.bf16.msra.mxu0 %v7278_v35  ;;  %v9058_v55 = vpop.f32.mrf.mxu0 }
 0x14a   : > { %5099 = vmatpush1.bf16.msra.mxu1 %v7281_v51  ;;  %5027 = vmatprep.subr.bf16.mxu0 %v7286_v11  ;;  %10857 = vst [vmem:[#allocation11_spill] sm:$0xff] %v8999_v2  ;;  %v7302_v51 = vld [vmem:[%s10821_s3 + $0x150] ss:$12 sps:$4 sm:$0xff]   ;;  %10859 = vst [vmem:[#allocation13_spill] sm:$0xff] %v9067_v9 }
 0x14b   : > { %v8997_v60 = vpop.f32.mrf.mxu1  ;;  %5100 = vmatprep.subr.bf16.mxu1 %v7289_v63  ;;  %v7310_v11 = vld [vmem:[%s10821_s3 + $0x13c] ss:$12 sps:$4 sm:$0xff]   ;;  %v7308_v63 = vld [vmem:[%s10821_s3 + $0x138] ss:$12 sps:$4 sm:$0xff]  }
 0x14c   : > { %2924 = vmatmul.mubr.bf16.gmra.mxu0 %v8016_v24  ;;  %v7301_v24 = vld [vmem:[%s10821_s3 + $0x2ec] ss:$12 sps:$4 sm:$0xff]  }
 0x14d   : > { %v9010_v14 = vpop.f32.mrf.mxu1  ;;  %2851 = vmatmul.mubr.bf16.gmra.mxu1 %v8115_v3  ;;  %5028 = vmatpush1.bf16.msra.mxu0 %v7284_v52 }
 0x14e   : > { %5047 = vmatprep.mubr.bf16.mxu0 %v8999_v2  ;;  %5101 = vmatpush1.bf16.msra.mxu1 %v7287_v5 }
 0x14f   : > { %5120 = vmatprep.mubr.bf16.mxu1 %v9014_v62  ;;  %v9026_v3 = vpop.f32.mrf.mxu1  ;;  %5029 = vmatprep.subr.bf16.mxu0 %v7292_v19 }
 0x150   : > { %5102 = vmatprep.subr.bf16.mxu1 %v7295_v23  ;;  %v7314_v23 = vld [vmem:[%s10821_s3 + $0x120] ss:$12 sps:$4 sm:$0xff]  }
 0x151   : > { %v9031_v59 = vpop.f32.mrf.mxu1  ;;  %5030 = vmatpush1.bf16.msra.mxu0 %v7290_v16  ;;  %v9081_v16 = vpop.f32.mrf.mxu0 }
 0x152   : > { %5103 = vmatpush1.bf16.msra.mxu1 %v7293_v17  ;;  %5031 = vmatprep.subr.bf16.mxu0 %v7298_v36  ;;  %v7317_v17 = vld [vmem:[%s10821_s3 + $0x2a0] ss:$12 sps:$4 sm:$0xff]  }
 0x153   : > { %5104 = vmatprep.subr.bf16.mxu1 %v7301_v24  ;;  %v9047_v35 = vpop.f32.mrf.mxu1  ;;  %v7322_v36 = vld [vmem:[%s10821_s3 + $0x10c] ss:$12 sps:$4 sm:$0xff]  }
 0x154   : > { %v7325_v24 = vld [vmem:[%s10821_s3 + $0x28c] ss:$12 sps:$4 sm:$0xff]  }
 0x155   : > { %5032 = vmatpush2.bf16.msra.mxu0 %v7296_v45  ;;  %v9069_v52 = vpop.f32.mrf.mxu1  ;;  %v9097_v45 = vpop.f32.mrf.mxu0 }
 0x156   : > { %5105 = vmatpush2.bf16.msra.mxu1 %v7299_v41  ;;  %5033 = vmatprep.subr.bf16.mxu0 %v7304_v43  ;;  %v7320_v43 = vld [vmem:[%s10821_s3 + $0x108] ss:$12 sps:$4 sm:$0xff]  }
 0x157   : > { %5106 = vmatprep.subr.bf16.mxu1 %v7307_v50  ;;  %v9083_v19 = vpop.f32.mrf.mxu1  ;;  %v7323_v50 = vld [vmem:[%s10821_s3 + $0x288] ss:$12 sps:$4 sm:$0xff]  }
 0x159   : > { %5034 = vmatpush2.bf16.msra.mxu0 %v7302_v51  ;;  %v9099_v41 = vpop.f32.mrf.mxu1  ;;  %v7328_v51 = vld [vmem:[%s10821_s3 + $0xf4] ss:$12 sps:$4 sm:$0xff]  }
 0x15a   : > { %5107 = vmatpush2.bf16.msra.mxu1 %v7305_v46  ;;  %5035 = vmatprep.subr.bf16.mxu0 %v7310_v11  ;;  %v7331_v46 = vld [vmem:[%s10821_s3 + $0x274] ss:$12 sps:$4 sm:$0xff]   ;;  %v9113_v11 = vpop.f32.mrf.mxu0 }
 0x15b   : > { %5108 = vmatprep.subr.bf16.mxu1 %v7313_v1  ;;  %v9119_v1 = vpop.f32.mrf.mxu1 }
 0x15d   : > { %5036 = vmatpush2.bf16.msra.mxu0 %v7308_v63  ;;  %v9117_v63 = vrot.slane %v8689_v28, %v9067_v9  ;;  %v7334_v28 = vld [vmem:[%s10821_s3 + $0xdc] ss:$12 sps:$4 sm:$0xff]  }
 0x15e   : > { %5109 = vmatpush2.bf16.msra.mxu1 %v7311_v61  ;;  %5037 = vmatprep.subr.bf16.mxu0 %v7316_v30  ;;  %v7326_v61 = vld [vmem:[%s10821_s3 + $0xf0] ss:$12 sps:$4 sm:$0xff]  }
 0x15f   : > { %5110 = vmatprep.subr.bf16.mxu1 %v7319_v13  ;;  %v7329_v30 = vld [vmem:[%s10821_s3 + $0x270] ss:$12 sps:$4 sm:$0xff]   ;;  %v2109_v13 = vadd.f32 %v8793_v32, %v8766_v8  ;;  %v2239_v32 = vadd.f32 %v8883_v53, %v9117_v63 }
 0x160   : > { %v7340_v53 = vld [vmem:[%s10821_s3 + $0xc4] ss:$12 sps:$4 sm:$0xff]  }
 0x161   : > { %5038 = vmatpush2.bf16.msra.mxu0 %v7314_v23  ;;  %v2243_v23 = vadd.f32 %v8905_v10, %v9117_v63  ;;  %v2255_v10 = vadd.f32 %v8961_v44, %v8933_v26  ;;  %v7343_v44 = vld [vmem:[%s10821_s3 + $0x244] ss:$12 sps:$4 sm:$0xff]  }
 0x162   : > { %5111 = vmatpush2.bf16.msra.mxu1 %v7317_v17  ;;  %5039 = vmatprep.subr.bf16.mxu0 %v7322_v36  ;;  %v7337_v17 = vld [vmem:[%s10821_s3 + $0x25c] ss:$12 sps:$4 sm:$0xff]   ;;  %v9137_v36 = vpop.f32.mrf.mxu0 }
 0x163   : > { %5112 = vmatprep.subr.bf16.mxu1 %v7325_v24  ;;  %v9139_v24 = vpop.f32.mrf.mxu1 }
 0x164   : > { %v9161_v5 = vpop.f32.mrf.mxu0 }
 0x165   : > { %5040 = vmatpush2.bf16.msra.mxu0 %v7320_v43  ;;  %v7332_v43 = vld [vmem:[%s10821_s3 + $0xd8] ss:$12 sps:$4 sm:$0xff]   ;;  %v9163_v62 = vpop.f32.mrf.mxu1 }
 0x166   : > { %5113 = vmatpush2.bf16.msra.mxu1 %v7323_v50  ;;  %5041 = vmatprep.subr.bf16.mxu0 %v7328_v51  ;;  %v2182_v50 = vadd.f32 %v8719_v40, %v2109_v13  ;;  %v2316_v51 = vadd.f32 %v8939_v38, %v2243_v23  ;;  %v7338_v40 = vld [vmem:[%s10821_s3 + $0xc0] ss:$12 sps:$4 sm:$0xff]   ;;  %v2119_v38 = vadd.f32 %v8838_v12, %v8766_v8 }
 0x167   : > { %5114 = vmatprep.subr.bf16.mxu1 %v7331_v46  ;;  %v2251_v46 = vadd.f32 %v8935_v31, %v8933_v26  ;;  %v2959_v31 = vmax.f32 %v8787_v27, 0.0  ;;  %v2328_v13 = vadd.f32 %v9042_v47, %v2255_v10  ;;  %v7346_v23 = vld [vmem:[%s10821_s3 + $0x3ac] ss:$12 sps:$4 sm:$0xff]   ;;  %v2253_v27 = vadd.f32 %v8950_v39, %v9117_v63  ;;  %v9187_v47 = vpop.f32.mrf.mxu1 }
 0x168   : > { %v7349_v12 = vld [vmem:[%s10821_s3 + $0x52c] ss:$12 sps:$4 sm:$0xff]   ;;  %v2265_v39 = vadd.f32 %v8997_v60, %v8933_v26  ;;  %v7352_v60 = vld [vmem:[%s10821_s3 + $0x394] ss:$12 sps:$4 sm:$0xff]  }
 0x169   : > { %5042 = vmatpush2.bf16.msra.mxu0 %v7326_v61  ;;  %v2312_v61 = vadd.f32 %v8893_v49, %v2239_v32  ;;  %v2324_v2 = vadd.f32 %v8995_v15, %v2251_v46  ;;  %v9185_v49 = vpop.f32.mrf.mxu0  ;;  %v2192_v32 = vadd.f32 %v8795_v34, %v2119_v38  ;;  %v7344_v15 = vld [vmem:[%s10821_s3 + $0x3a8] ss:$12 sps:$4 sm:$0xff]   ;;  %v2261_v46 = vadd.f32 %v8983_v37, %v8933_v26 }
 0x16a   : > { %5115 = vmatpush2.bf16.msra.mxu1 %v7329_v30  ;;  %5043 = vmatprep.subr.bf16.mxu0 %v7334_v28  ;;  %v7341_v30 = vld [vmem:[%s10821_s3 + $0x240] ss:$12 sps:$4 sm:$0xff]   ;;  %v2971_v28 = vmax.f32 %v2182_v50, 0.0  ;;  %v2973_v50 = vmax.f32 %v2328_v13, 0.0  ;;  %v7347_v34 = vld [vmem:[%s10821_s3 + $0x528] ss:$12 sps:$4 sm:$0xff]   ;;  %v2129_v37 = vadd.f32 %v8875_v33, %v8766_v8 }
 0x16b   : > { %5116 = vmatprep.subr.bf16.mxu1 %v7337_v17  ;;  %v2948_v17 = vmax.f32 %v2316_v51, 0.0  ;;  %v2936_v10 = vmax.f32 %v2312_v61, 0.0  ;;  %v2961_v51 = vmax.f32 %v2324_v2, 0.0  ;;  %v7350_v61 = vld [vmem:[%s10821_s3 + $0x390] ss:$12 sps:$4 sm:$0xff]   ;;  %v2995_v13 = vmax.f32 %v2192_v32, 0.0 }
 0x16c   : > { %v9210_v2 = vpack.c.bf16 %v2971_v28, %v2959_v31  ;;  %v7355_v31 = vld [vmem:[%s10821_s3 + $0x514] ss:$12 sps:$4 sm:$0xff]   ;;  %v2334_v33 = vadd.f32 %v9081_v16, %v2261_v46  ;;  %v2263_v16 = vadd.f32 %v8990_v21, %v9117_v63  ;;  %v2275_v32 = vadd.f32 %v9047_v35, %v8933_v26  ;;  %v7359_v35 = vld [vmem:[%s10821_s3 + $0x4f8] ss:$12 sps:$4 sm:$0xff]  }
 0x16d   : > { %5044 = vmatpush2.bf16.msra.mxu0 %v7332_v43  ;;  %v2249_v43 = vadd.f32 %v8920_v22, %v9117_v63  ;;  %v9208_v22 = vpack.c.bf16 %v2948_v17, %v2936_v10  ;;  %v9218_v38 = vpack.c.bf16 %v2973_v50, %v2961_v51  ;;  %v2983_v17 = vmax.f32 %v8829_v4, 0.0  ;;  %v7361_v50 = vld [vmem:[%s10821_s3 + $0x4fc] ss:$12 sps:$4 sm:$0xff]  }
 0x16e   : > { %5117 = vmatpush2.bf16.msra.mxu1 %v7335_v0  ;;  %5045 = vmatprep.subr.bf16.mxu0 %v7340_v53  ;;  %v2326_v0 = vadd.f32 %v9023_v54, %v2253_v27  ;;  %v2347_v53 = vpop.f32.mrf.mxu0  ;;  %10861 = vst [vmem:[#allocation15_spill] sm:$0xff] %v9210_v2  ;;  %v2338_v54 = vadd.f32 %v9113_v11, %v2265_v39  ;;  %v7353_v11 = vld [vmem:[%s10821_s3 + $0x510] ss:$12 sps:$4 sm:$0xff]  }
 0x16f   : > { %5118 = vmatprep.subr.bf16.mxu1 %v7343_v44  ;;  %v9206_v44 = vpop.f32.mrf.mxu1  ;;  %10860 = vst [vmem:[#allocation14_spill] sm:$0xff] %v9208_v22  ;;  %10862 = vst [vmem:[#allocation16_spill] sm:$0xff] %v9218_v38  ;;  %v2202_v27 = vadd.f32 %v8873_v48, %v2129_v37  ;;  %v2259_v21 = vadd.f32 %v8970_v57, %v9117_v63  ;;  %v2271_v4 = vadd.f32 %v9026_v3, %v8933_v26  ;;  %v7356_v48 = vld [vmem:[%s10821_s3 + $0x378] ss:$12 sps:$4 sm:$0xff]  }
 0x170   : > { %v2972_v8 = vmax.f32 %v2326_v0, 0.0  ;;  %v2336_v57 = vadd.f32 %v9097_v45, %v2263_v16  ;;  %v9265_v46 = vpack.c.bf16 %v2995_v13, %v2983_v17  ;;  %v7364_v26 = vld [vmem:[%s10821_s3 + $0x364] ss:$12 sps:$4 sm:$0xff]   ;;  %v2348_v3 = vadd.f32 %v2347_v53, %v2275_v32  ;;  %v7362_v45 = vld [vmem:[%s10821_s3 + $0x360] ss:$12 sps:$4 sm:$0xff]  }
 0x171   : > { %5046 = vmatpush2.bf16.msra.mxu0 %v7338_v40  ;;  %v7367_v37 = vld [vmem:[%s10821_s3 + $0x4e4] ss:$12 sps:$4 sm:$0xff]   ;;  %v2344_v53 = vadd.f32 %v9161_v5, %v2271_v4  ;;  %v10866_v13 = vsub.s32 5, %v8669_v20  ;;  %v7370_v5 = vld [vmem:[%s10821_s3 + $0x34c] ss:$12 sps:$4 sm:$0xff]   ;;  %v3007_v17 = vmax.f32 %v8864_v42, 0.0 }
 0x172   : > { %5119 = vmatpush2.bf16.msra.mxu1 %v7341_v30  ;;  %5161 = vmatprep.subr.bf16.mxu0 %v7346_v23  ;;  %v2322_v30 = vadd.f32 %v8981_v6, %v2249_v43  ;;  %v7358_v23 = vld [vmem:[%s10821_s3 + $0x37c] ss:$12 sps:$4 sm:$0xff]   ;;  %v9237_v6 = vpop.f32.mrf.mxu1  ;;  %10864 = vst [vmem:[#allocation18_spill] sm:$0xff] %v9265_v46  ;;  %v7373_v32 = vld [vmem:[%s10821_s3 + $0x4cc] ss:$12 sps:$4 sm:$0xff]  }
 0x173   : > { %5234 = vmatprep.subr.bf16.mxu1 %v7349_v12  ;;  %v2997_v12 = vmax.f32 %v2338_v54, 0.0  ;;  %v3019_v54 = vmax.f32 %v2202_v27, 0.0  ;;  %v3021_v27 = vmax.f32 %v2348_v3, 0.0  ;;  %v7371_v42 = vld [vmem:[%s10821_s3 + $0x4c8] ss:$12 sps:$4 sm:$0xff]  }
 0x174   : > { %v9215_v40 = vpop.f32.mrf.mxu0  ;;  %5048 = vmatmul.mubr.bf16.vlgmr.msra.gmra.mxu0 %v8778_v18  ;;  %v2960_v39 = vmax.f32 %v2322_v30, 0.0  ;;  %v9260_v51 = vpop.f32.mrf.mxu1  ;;  %v7379_v3 = vld [vmem:[%s10821_s3 + $0x4b4] ss:$12 sps:$4 sm:$0xff]  }
 0x175   : > { %5121 = vmatmul.mubr.bf16.vlgmr.msra.gmra.mxu1 %v9208_v22  ;;  %5057 = vmatprep.mubr.bf16.mxu0 %v9210_v2 }
 0x176   : > { %5130 = vmatprep.mubr.bf16.mxu1 %v9218_v38  ;;  %5162 = vmatpush1.bf16.msra.mxu0 %v7344_v15  ;;  %v2386_v28 = vpop.f32.mrf.mxu0  ;;  %v2985_v15 = vmax.f32 %v2334_v33, 0.0  ;;  %v9262_v0 = vpack.c.bf16 %v2972_v8, %v2960_v39  ;;  %v9304_v33 = vpop.f32.mrf.mxu1  ;;  %v2269_v39 = vadd.f32 %v9010_v14, %v9117_v63  ;;  %v7419_v38 = vld [vmem:[%s10821_s3 + $0x588] ss:$12 sps:$4 sm:$0xff]  }
 0x177   : > { %5235 = vmatpush1.bf16.msra.mxu1 %v7347_v34  ;;  %5163 = vmatprep.subr.bf16.mxu0 %v7352_v60 }
 0x178   : > { %v9245_v10 = vpop.f32.mrf.mxu0  ;;  %5236 = vmatprep.subr.bf16.mxu1 %v7355_v31  ;;  %10863 = vst [vmem:[#allocation17_spill] sm:$0xff] %v9262_v0  ;;  %v9273_v60 = vpack.c.bf16 %v2997_v12, %v2985_v15  ;;  %v9286_v31 = vld [vmem:[%s10820_s2] sm:$0xff]  ;;  %v7368_v15 = vld [vmem:[%s10821_s3 + $0x348] ss:$12 sps:$4 sm:$0xff]  }
 0x179   : > { %v9291_v30 = vrot.slane %v9286_v31, %v10866_v13 }
 0x17a   : > { %5164 = vmatpush1.bf16.msra.mxu0 %v7350_v61  ;;  %v2390_v43 = vpop.f32.mrf.mxu0  ;;  %10865 = vst [vmem:[#allocation19_spill] sm:$0xff] %v9273_v60  ;;  %v2332_v61 = vadd.f32 %v9058_v55, %v2259_v21  ;;  %v7365_v55 = vld [vmem:[%s10821_s3 + $0x4e0] ss:$12 sps:$4 sm:$0xff]   ;;  %v3009_v21 = vmax.f32 %v2344_v53, 0.0 }
 0x17b   : > { %5237 = vmatpush1.bf16.msra.mxu1 %v7353_v11  ;;  %5165 = vmatprep.subr.bf16.mxu0 %v7358_v23  ;;  %v2996_v11 = vmax.f32 %v2336_v57, 0.0  ;;  %v2273_v23 = vadd.f32 %v9031_v59, %v9117_v63  ;;  %v2391_v16 = vadd.f32 %v2390_v43, %v9291_v30  ;;  %v2387_v59 = vadd.f32 %v2386_v28, %v9291_v30  ;;  %v7376_v28 = vld [vmem:[%s10821_s3 + $0x334] ss:$12 sps:$4 sm:$0xff]  }
 0x17c   : > { %v9270_v34 = vpop.f32.mrf.mxu0  ;;  %5058 = vmatmul.mubr.bf16.gmra.mxu0 %v8821_v58  ;;  %5238 = vmatprep.subr.bf16.mxu1 %v7361_v50  ;;  %v2984_v50 = vmax.f32 %v2332_v61, 0.0 }
 0x17d   : > { %5131 = vmatmul.mubr.bf16.gmra.mxu1 %v9262_v0  ;;  %5067 = vmatprep.mubr.bf16.mxu0 %v9265_v46  ;;  %v2346_v14 = vadd.f32 %v9185_v49, %v2273_v23  ;;  %v2464_v63 = vadd.f32 %v9119_v1, %v2391_v16  ;;  %v2342_v49 = vadd.f32 %v9137_v36, %v2269_v39  ;;  %v7380_v23 = vld [vmem:[%s10821_s3 + $0x318] ss:$12 sps:$4 sm:$0xff]  }
 0x17e   : > { %5140 = vmatprep.mubr.bf16.mxu1 %v9273_v60  ;;  %5166 = vmatpush1.bf16.msra.mxu0 %v7356_v48  ;;  %v9302_v8 = vpop.f32.mrf.mxu0  ;;  %v9326_v48 = vpop.f32.mrf.mxu1  ;;  %v9330_v43 = vpack.c.bf16 %v2996_v11, %v2984_v50  ;;  %v2460_v1 = vadd.f32 %v9083_v19, %v2387_v59  ;;  %v7383_v16 = vld [vmem:[%s10821_s3 + $0x498] ss:$12 sps:$4 sm:$0xff]  }
 0x17f   : > { %5239 = vmatpush1.bf16.msra.mxu1 %v7359_v35  ;;  %5167 = vmatprep.subr.bf16.mxu0 %v7364_v26  ;;  %v9328_v35 = vpack.c.bf16 %v3019_v54, %v3007_v17  ;;  %v9340_v26 = vpack.c.bf16 %v3021_v27, %v3009_v21  ;;  %v7382_v54 = vld [vmem:[%s10821_s3 + $0x31c] ss:$12 sps:$4 sm:$0xff]   ;;  %v3020_v61 = vmax.f32 %v2346_v14, 0.0  ;;  %v2951_v53 = vmax.f32 %v2464_v63, 0.0  ;;  %v7388_v39 = vld [vmem:[%s10821_s3 + $0x304] ss:$12 sps:$4 sm:$0xff]  }
 0x180   : > { %v9310_v12 = vpop.f32.mrf.mxu0  ;;  %5240 = vmatprep.subr.bf16.mxu1 %v7367_v37  ;;  %10868 = vst [vmem:[#allocation21_spill] sm:$0xff] %v9330_v43  ;;  %v7377_v37 = vld [vmem:[%s10821_s3 + $0x4b0] ss:$12 sps:$4 sm:$0xff]   ;;  %v9361_v36 = vpop.f32.mrf.mxu1  ;;  %v2939_v11 = vmax.f32 %v2460_v1, 0.0  ;;  %v588_v14 = vsub.s32 7, %v8669_v20  ;;  %v2397_v58 = vadd.f32 %v9302_v8, %v9291_v30 }
 0x181   : > { %10867 = vst [vmem:[#allocation20_spill] sm:$0xff] %v9328_v35  ;;  %10869 = vst [vmem:[#allocation22_spill] sm:$0xff] %v9340_v26  ;;  %v7391_v59 = vld [vmem:[%s10821_s3 + $0x484] ss:$12 sps:$4 sm:$0xff]   ;;  %v7397_v1 = vld [vmem:[%s10821_s3 + $0x5ec] ss:$12 sps:$4 sm:$0xff]  }
 0x182   : > { %5168 = vmatpush1.bf16.msra.mxu0 %v7362_v45  ;;  %v9324_v4 = vpop.f32.mrf.mxu0  ;;  %v7374_v45 = vld [vmem:[%s10821_s3 + $0x330] ss:$12 sps:$4 sm:$0xff]   ;;  %v9374_v17 = vpop.f32.mrf.mxu1  ;;  %v9380_v50 = vpack.c.bf16 %v2951_v53, %v2939_v11  ;;  %v9423_v53 = vrot.slane %v9286_v31, %v588_v14 }
 0x183   : > { %5241 = vmatpush1.bf16.msra.mxu1 %v7365_v55  ;;  %5169 = vmatprep.subr.bf16.mxu0 %v7370_v5  ;;  %v7385_v55 = vld [vmem:[%s10821_s3 + $0x49c] ss:$12 sps:$4 sm:$0xff]   ;;  %v3008_v5 = vmax.f32 %v2342_v49, 0.0 }
 0x184   : > { %v9337_v57 = vpop.f32.mrf.mxu0  ;;  %5068 = vmatmul.mubr.bf16.gmra.mxu0 %v8856_v25  ;;  %5242 = vmatprep.subr.bf16.mxu1 %v7373_v32  ;;  %10871 = vst [vmem:[#allocation24_spill] sm:$0xff] %v9380_v50  ;;  %v9400_v63 = vpop.f32.mrf.mxu1  ;;  %v7406_v14 = vld [vmem:[%s10821_s3 + $0x43c] ss:$12 sps:$4 sm:$0xff]  }
 0x185   : > { %5141 = vmatmul.mubr.bf16.gmra.mxu1 %v9330_v43  ;;  %5077 = vmatprep.mubr.bf16.mxu0 %v9328_v35  ;;  %v9378_v32 = vpack.c.bf16 %v3020_v61, %v3008_v5  ;;  %v7412_v43 = vld [vmem:[%s10821_s3 + $0x424] ss:$12 sps:$4 sm:$0xff]  }
 0x186   : > { %5150 = vmatprep.mubr.bf16.mxu1 %v9340_v26  ;;  %5170 = vmatpush1.bf16.msra.mxu0 %v7368_v15  ;;  %v9359_v19 = vpop.f32.mrf.mxu0  ;;  %v7386_v15 = vld [vmem:[%s10821_s3 + $0x300] ss:$12 sps:$4 sm:$0xff]  }
 0x187   : > { %5243 = vmatpush1.bf16.msra.mxu1 %v7371_v42  ;;  %5171 = vmatprep.subr.bf16.mxu0 %v7376_v28  ;;  %10870 = vst [vmem:[#allocation23_spill] sm:$0xff] %v9378_v32  ;;  %v7389_v42 = vld [vmem:[%s10821_s3 + $0x480] ss:$12 sps:$4 sm:$0xff]  }
 0x188   : > { %v9363_v13 = vpop.f32.mrf.mxu0  ;;  %5244 = vmatprep.subr.bf16.mxu1 %v7379_v3  ;;  %v7394_v3 = vld [vmem:[%s10821_s3 + $0x46c] ss:$12 sps:$4 sm:$0xff]  }
 0x18a   : > { %5172 = vmatpush1.bf16.msra.mxu0 %v7374_v45  ;;  %v9376_v27 = vpop.f32.mrf.mxu0  ;;  %v7392_v45 = vld [vmem:[%s10821_s3 + $0x468] ss:$12 sps:$4 sm:$0xff]  }
 0x18b   : > { %5245 = vmatpush1.bf16.msra.mxu1 %v7377_v37  ;;  %5173 = vmatprep.subr.bf16.mxu0 %v7382_v54  ;;  %v7395_v37 = vld [vmem:[%s10821_s3 + $0x5e8] ss:$12 sps:$4 sm:$0xff]   ;;  %v9418_v54 = vpop.f32.mrf.mxu1 }
 0x18c   : > { %v9385_v21 = vpop.f32.mrf.mxu0  ;;  %5078 = vmatmul.mubr.bf16.gmra.mxu0 %v8903_v7  ;;  %5246 = vmatprep.subr.bf16.mxu1 %v7385_v55  ;;  %v7400_v55 = vld [vmem:[%s10821_s3 + $0x454] ss:$12 sps:$4 sm:$0xff]  }
 0x18d   : > { %5151 = vmatmul.mubr.bf16.gmra.mxu1 %v9378_v32  ;;  %5193 = vmatprep.mubr.bf16.mxu0 %v9380_v50  ;;  %v7409_v32 = vld [vmem:[%s10821_s3 + $0x5bc] ss:$12 sps:$4 sm:$0xff]  }
 0x18e   : > { %5174 = vmatpush1.bf16.msra.mxu0 %v7380_v23  ;;  %v9402_v28 = vpop.f32.mrf.mxu0  ;;  %v7403_v23 = vld [vmem:[%s10821_s3 + $0x5d4] ss:$12 sps:$4 sm:$0xff]  }
 0x18f   : > { %5247 = vmatpush1.bf16.msra.mxu1 %v7383_v16  ;;  %5175 = vmatprep.subr.bf16.mxu0 %v7388_v39  ;;  %v7398_v16 = vld [vmem:[%s10821_s3 + $0x450] ss:$12 sps:$4 sm:$0xff]  }
 0x190   : > { %v9407_v49 = vpop.f32.mrf.mxu0  ;;  %5248 = vmatprep.subr.bf16.mxu1 %v7391_v59  ;;  %v7401_v39 = vld [vmem:[%s10821_s3 + $0x5d0] ss:$12 sps:$4 sm:$0xff]  }
 0x192   : > { %5176 = vmatpush1.bf16.msra.mxu0 %v7386_v15  ;;  %v9420_v61 = vpop.f32.mrf.mxu0 }
 0x193   : > { %5249 = vmatpush1.bf16.msra.mxu1 %v7389_v42  ;;  %5177 = vmatprep.subr.bf16.mxu0 %v7394_v3 }
 0x194   : > { %v9430_v11 = vpop.f32.mrf.mxu0  ;;  %5250 = vmatprep.subr.bf16.mxu1 %v7397_v1 }
 0x195   : > { %v9428_v5 = vpop.f32.mrf.mxu1 }
 0x196   : > { %5178 = vmatpush2.bf16.msra.mxu0 %v7392_v45  ;;  %v2605_v15 = vpop.f32.mrf.mxu0  ;;  %v7404_v45 = vld [vmem:[%s10821_s3 + $0x438] ss:$12 sps:$4 sm:$0xff]  }
 0x197   : > { %v2532_v59 = vpop.f32.mrf.mxu1  ;;  %5251 = vmatpush2.bf16.msra.mxu1 %v7395_v37  ;;  %5179 = vmatprep.subr.bf16.mxu0 %v7400_v55 }
 0x198   : > { %v2533_v42 = vadd.f32 %v2532_v59, %v9423_v53  ;;  %v9447_v1 = vpop.f32.mrf.mxu0  ;;  %5252 = vmatprep.subr.bf16.mxu1 %v7403_v23  ;;  %v7407_v23 = vld [vmem:[%s10821_s3 + $0x5b8] ss:$12 sps:$4 sm:$0xff]  }
 0x199   : > { %v9445_v3 = vpop.f32.mrf.mxu1 }
 0x19a   : > { %5180 = vmatpush2.bf16.msra.mxu0 %v7398_v16  ;;  %v2609_v55 = vpop.f32.mrf.mxu0  ;;  %v2606_v59 = vadd.f32 %v2605_v15, %v2533_v42  ;;  %v7415_v16 = vld [vmem:[%s10821_s3 + $0x5a4] ss:$12 sps:$4 sm:$0xff]   ;;  %v7410_v42 = vld [vmem:[%s10821_s3 + $0x420] ss:$12 sps:$4 sm:$0xff]  }
 0x19b   : > { %v2536_v37 = vpop.f32.mrf.mxu1  ;;  %5253 = vmatpush2.bf16.msra.mxu1 %v7401_v39  ;;  %5181 = vmatprep.subr.bf16.mxu0 %v7406_v14  ;;  %v576_v39 = vsub.s32 4, %v8669_v20 }
 0x19c   : > { %v2537_v26 = vadd.f32 %v2536_v37, %v9423_v53  ;;  %5254 = vmatprep.subr.bf16.mxu1 %v7409_v32  ;;  %v9464_v7 = vpop.f32.mrf.mxu0  ;;  %v2941_v60 = vmax.f32 %v2606_v59, 0.0  ;;  %v7413_v32 = vld [vmem:[%s10821_s3 + $0x5a0] ss:$12 sps:$4 sm:$0xff]  }
 0x19d   : > { %v9462_v50 = vpop.f32.mrf.mxu1  ;;  %v9489_v59 = vrot.slane %v9286_v31, %v576_v39  ;;  %v7424_v39 = vld [vmem:[%s10821_s3 + $0x3f4] ss:$12 sps:$4 sm:$0xff]  }
 0x19e   : > { %v2610_v15 = vadd.f32 %v2609_v55, %v2537_v26  ;;  %5182 = vmatpush2.bf16.msra.mxu0 %v7404_v45  ;;  %v9473_v37 = vpop.f32.mrf.mxu0  ;;  %v7418_v26 = vld [vmem:[%s10821_s3 + $0x40c] ss:$12 sps:$4 sm:$0xff]  }
 0x19f   : > { %v2542_v14 = vpop.f32.mrf.mxu1  ;;  %5255 = vmatpush2.bf16.msra.mxu1 %v7407_v23  ;;  %5183 = vmatprep.subr.bf16.mxu0 %v7412_v43  ;;  %v7421_v45 = vld [vmem:[%s10821_s3 + $0x58c] ss:$12 sps:$4 sm:$0xff]   ;;  %v584_v43 = vsub.s32 6, %v8669_v20  ;;  %v2470_v20 = vadd.f32 %v9163_v62, %v2397_v58  ;;  %v2399_v29 = vadd.f32 %v9310_v12, %v9489_v59  ;;  %v7439_v62 = vld [vmem:[%s10821_s3 + $0x544] ss:$12 sps:$4 sm:$0xff]  }
 0x1a0   : > { %v2953_v0 = vmax.f32 %v2610_v15, 0.0  ;;  %5256 = vmatprep.subr.bf16.mxu1 %v7415_v16  ;;  %v9483_v35 = vpop.f32.mrf.mxu0  ;;  %v7416_v15 = vld [vmem:[%s10821_s3 + $0x408] ss:$12 sps:$4 sm:$0xff]  }
 0x1a1   : > { %v9481_v55 = vpop.f32.mrf.mxu1  ;;  %v9516_v22 = vrot.slane %v9286_v31, %v584_v43  ;;  %v2401_v31 = vadd.f32 %v9324_v4, %v9291_v30 }
 0x1a2   : > { %v9492_v23 = vpack.c.bf16 %v2953_v0, %v2941_v60  ;;  %5184 = vmatpush2.bf16.msra.mxu0 %v7410_v42  ;;  %v2619_v16 = vpop.f32.mrf.mxu0  ;;  %v7427_v42 = vld [vmem:[%s10821_s3 + $0x574] ss:$12 sps:$4 sm:$0xff]  }
 0x1a3   : > { %v2546_v25 = vpop.f32.mrf.mxu1  ;;  %5257 = vmatpush2.bf16.msra.mxu1 %v7413_v32  ;;  %5185 = vmatprep.subr.bf16.mxu0 %v7418_v26  ;;  %v2385_v32 = vadd.f32 %v9215_v40, %v9489_v59  ;;  %v7422_v26 = vld [vmem:[%s10821_s3 + $0x3f0] ss:$12 sps:$4 sm:$0xff]   ;;  %v2535_v43 = vadd.f32 %v9445_v3, %v9516_v22  ;;  %v2531_v18 = vadd.f32 %v9428_v5, %v9516_v22  ;;  %v7428_v3 = vld [vmem:[%s10821_s3 + $0x3d8] ss:$12 sps:$4 sm:$0xff]  }
 0x1a4   : > { %10872 = vst [vmem:[#allocation25_spill] sm:$0xff] %v9492_v23  ;;  %5266 = vmatprep.mubr.bf16.mxu1 %v9492_v23  ;;  %5258 = vmatprep.subr.bf16.mxu1 %v7421_v45  ;;  %v9506_v60 = vpop.f32.mrf.mxu0  ;;  %v2389_v23 = vadd.f32 %v9245_v10, %v9489_v59  ;;  %v7425_v40 = vld [vmem:[%s10821_s3 + $0x570] ss:$12 sps:$4 sm:$0xff]   ;;  %v2547_v4 = vadd.f32 %v2546_v25, %v9423_v53  ;;  %v7431_v25 = vld [vmem:[%s10821_s3 + $0x558] ss:$12 sps:$4 sm:$0xff]  }
 0x1a5   : > { %v9504_v0 = vpop.f32.mrf.mxu1  ;;  %v7430_v10 = vld [vmem:[%s10821_s3 + $0x3dc] ss:$12 sps:$4 sm:$0xff]   ;;  %v2474_v5 = vadd.f32 %v9206_v44, %v2401_v31  ;;  %v7437_v44 = vld [vmem:[%s10821_s3 + $0x540] ss:$12 sps:$4 sm:$0xff]  }
 0x1a6   : > { %5186 = vmatpush2.bf16.msra.mxu0 %v7416_v15  ;;  %v9523_v46 = vpop.f32.mrf.mxu0  ;;  %v2462_v2 = vadd.f32 %v9099_v41, %v2389_v23  ;;  %v7436_v41 = vld [vmem:[%s10821_s3 + $0x3c4] ss:$12 sps:$4 sm:$0xff]   ;;  %v2608_v23 = vadd.f32 %v9447_v1, %v2535_v43  ;;  %v2395_v1 = vadd.f32 %v9270_v34, %v9489_v59  ;;  %v7442_v34 = vld [vmem:[%s10821_s3 + $0x6ac] ss:$12 sps:$4 sm:$0xff]  }
 0x1a7   : > { %v9521_v45 = vpop.f32.mrf.mxu1  ;;  %5259 = vmatpush2.bf16.msra.mxu1 %v7419_v38  ;;  %5187 = vmatprep.subr.bf16.mxu0 %v7424_v39  ;;  %v7433_v38 = vld [vmem:[%s10821_s3 + $0x55c] ss:$12 sps:$4 sm:$0xff]   ;;  %v2458_v39 = vadd.f32 %v9069_v52, %v2385_v32  ;;  %v2543_v52 = vadd.f32 %v2542_v14, %v9423_v53  ;;  %v2604_v32 = vadd.f32 %v9430_v11, %v2531_v18  ;;  %v7454_v43 = vld [vmem:[%s10821_s3 + $0x82c] ss:$12 sps:$4 sm:$0xff]  }
 0x1a8   : > { %5260 = vmatprep.subr.bf16.mxu1 %v7427_v42  ;;  %v9539_v8 = vpop.f32.mrf.mxu0  ;;  %v2950_v14 = vmax.f32 %v2462_v2, 0.0  ;;  %v2963_v2 = vmax.f32 %v2470_v20, 0.0  ;;  %v9583_v18 = vadd.f32 %v9187_v47, %v2399_v29  ;;  %v2411_v11 = vadd.f32 %v9376_v27, %v9291_v30 }
 0x1a9   : > { %v9537_v15 = vpop.f32.mrf.mxu1  ;;  %v2938_v12 = vmax.f32 %v2458_v39, 0.0  ;;  %v2407_v20 = vadd.f32 %v9359_v19, %v9291_v30  ;;  %v2952_v29 = vmax.f32 %v2608_v23, 0.0  ;;  %v2545_v47 = vadd.f32 %v9481_v55, %v9516_v22  ;;  %v7452_v23 = vld [vmem:[%s10821_s3 + $0x828] ss:$12 sps:$4 sm:$0xff]  }
 0x1aa   : > { %5188 = vmatpush2.bf16.msra.mxu0 %v7422_v26  ;;  %v2629_v9 = vpop.f32.mrf.mxu0  ;;  %v2620_v26 = vadd.f32 %v2619_v16, %v2547_v4  ;;  %v2616_v16 = vadd.f32 %v9473_v37, %v2543_v52  ;;  %v2940_v37 = vmax.f32 %v2604_v32, 0.0  ;;  %v2541_v39 = vadd.f32 %v9462_v50, %v9516_v22  ;;  %v7440_v52 = vld [vmem:[%s10821_s3 + $0x6a8] ss:$12 sps:$4 sm:$0xff]  }
 0x1ab   : > { %v2556_v42 = vpop.f32.mrf.mxu1  ;;  %5261 = vmatpush2.bf16.msra.mxu1 %v7425_v40  ;;  %5189 = vmatprep.subr.bf16.mxu0 %v7430_v10  ;;  %v7434_v40 = vld [vmem:[%s10821_s3 + $0x3c0] ss:$12 sps:$4 sm:$0xff]   ;;  %v2468_v55 = vadd.f32 %v9139_v24, %v2395_v1  ;;  %v2553_v50 = vadd.f32 %v9521_v45, %v9423_v53  ;;  %v2618_v24 = vadd.f32 %v9483_v35, %v2545_v47 }
 0x1ac   : > { %5262 = vmatprep.subr.bf16.mxu1 %v7433_v38  ;;  %v9580_v31 = vpop.f32.mrf.mxu0  ;;  %v2975_v38 = vmax.f32 %v2474_v5, 0.0  ;;  %v2977_v4 = vmax.f32 %v2620_v26, 0.0  ;;  %v2965_v5 = vmax.f32 %v2616_v16, 0.0  ;;  %v2480_v45 = vadd.f32 %v9260_v51, %v2407_v20  ;;  %v7460_v35 = vld [vmem:[%s10821_s3 + $0x814] ss:$12 sps:$4 sm:$0xff]  }
 0x1ad   : > { %v9564_v58 = vpop.f32.mrf.mxu1  ;;  %v2614_v32 = vadd.f32 %v9464_v7, %v2541_v39  ;;  %v7448_v7 = vld [vmem:[%s10821_s3 + $0x67c] ss:$12 sps:$4 sm:$0xff]   ;;  %v2962_v51 = vmax.f32 %v2468_v55, 0.0  ;;  %v2405_v16 = vadd.f32 %v9337_v57, %v9489_v59  ;;  %v2551_v39 = vadd.f32 %v9504_v0, %v9516_v22 }
 0x1ae   : > { %5190 = vmatpush2.bf16.msra.mxu0 %v7428_v3  ;;  %v2557_v3 = vadd.f32 %v2556_v42, %v9423_v53  ;;  %v9608_v19 = vpop.f32.mrf.mxu0  ;;  %v7445_v42 = vld [vmem:[%s10821_s3 + $0x694] ss:$12 sps:$4 sm:$0xff]  }
 0x1af   : > { %v9578_v10 = vpop.f32.mrf.mxu1  ;;  %5263 = vmatpush2.bf16.msra.mxu1 %v7431_v25  ;;  %5191 = vmatprep.subr.bf16.mxu0 %v7436_v41  ;;  %v9606_v25 = vpack.c.bf16 %v2950_v14, %v2938_v12  ;;  %v2484_v41 = vadd.f32 %v9326_v48, %v2411_v11  ;;  %v9621_v12 = vpack.c.bf16 %v2952_v29, %v2940_v37  ;;  %v2964_v29 = vmax.f32 %v2614_v32, 0.0 }
 0x1b0   : > { %5264 = vmatprep.subr.bf16.mxu1 %v7439_v62  ;;  %v2974_v62 = vmax.f32 %v9583_v18, 0.0  ;;  %v9624_v14 = vpack.c.bf16 %v2975_v38, %v2963_v2  ;;  %v2630_v26 = vadd.f32 %v2629_v9, %v2557_v3  ;;  %v9637_v1 = vpop.f32.mrf.mxu0  ;;  %v7458_v9 = vld [vmem:[%s10821_s3 + $0x810] ss:$12 sps:$4 sm:$0xff]   ;;  %v2409_v2 = vadd.f32 %v9363_v13, %v9489_v59 }
 0x1b1   : > { %v9598_v27 = vpop.f32.mrf.mxu1  ;;  %v2999_v18 = vmax.f32 %v2484_v41, 0.0  ;;  %v2626_v11 = vadd.f32 %v9523_v46, %v2553_v50  ;;  %v2555_v38 = vadd.f32 %v9537_v15, %v9516_v22  ;;  %v7466_v46 = vld [vmem:[%s10821_s3 + $0x7fc] ss:$12 sps:$4 sm:$0xff]   ;;  %v2987_v13 = vmax.f32 %v2480_v45, 0.0 }
 0x1b2   : > { %5192 = vmatpush2.bf16.msra.mxu0 %v7434_v40  ;;  %v9629_v40 = vpack.c.bf16 %v2977_v4, %v2965_v5  ;;  %v3001_v47 = vmax.f32 %v2630_v26, 0.0  ;;  %v9666_v37 = vpack.c.bf16 %v2974_v62, %v2962_v51  ;;  %v2417_v15 = vadd.f32 %v9402_v28, %v9291_v30  ;;  %v2639_v4 = vpop.f32.mrf.mxu0  ;;  %v7464_v28 = vld [vmem:[%s10821_s3 + $0x7f8] ss:$12 sps:$4 sm:$0xff]  }
 0x1b3   : > { %5265 = vmatpush2.bf16.msra.mxu1 %v7437_v44  ;;  %5307 = vmatprep.subr.bf16.mxu0 %v7442_v34  ;;  %v2566_v48 = vpop.f32.mrf.mxu1  ;;  %v7443_v44 = vld [vmem:[%s10821_s3 + $0x690] ss:$12 sps:$4 sm:$0xff]   ;;  %v2421_v34 = vadd.f32 %v9420_v61, %v9291_v30  ;;  %v7446_v61 = vld [vmem:[%s10821_s3 + $0x678] ss:$12 sps:$4 sm:$0xff]   ;;  %v2482_v3 = vadd.f32 %v9304_v33, %v2409_v2  ;;  %v2563_v55 = vadd.f32 %v9578_v10, %v9423_v53 }
 0x1b4   : > { %5380 = vmatprep.subr.bf16.mxu1 %v7454_v43  ;;  %v2976_v43 = vmax.f32 %v2618_v24, 0.0  ;;  %v2567_v57 = vadd.f32 %v2566_v48, %v9423_v53  ;;  %v9675_v41 = vpack.c.bf16 %v2999_v18, %v2987_v13  ;;  %v7451_v33 = vld [vmem:[%s10821_s3 + $0x664] ss:$12 sps:$4 sm:$0xff]   ;;  %v2478_v53 = vadd.f32 %v9237_v6, %v2405_v16  ;;  %v7449_v48 = vld [vmem:[%s10821_s3 + $0x660] ss:$12 sps:$4 sm:$0xff]  }
 0x1b5   : > { %5194 = vmatmul.mubr.bf16.vlgmr.msra.gmra.mxu0 %v9606_v25  ;;  %v9657_v20 = vpop.f32.mrf.mxu1  ;;  %v2494_v5 = vadd.f32 %v9418_v54, %v2421_v34  ;;  %v2490_v10 = vadd.f32 %v9374_v17, %v2417_v15  ;;  %v2998_v62 = vmax.f32 %v2482_v3, 0.0  ;;  %v2419_v6 = vadd.f32 %v9407_v49, %v9489_v59  ;;  %v7457_v49 = vld [vmem:[%s10821_s3 + $0x64c] ss:$12 sps:$4 sm:$0xff]   ;;  %v7490_v15 = vld [vmem:[%s10821_s3 + $0x79c] ss:$12 sps:$4 sm:$0xff]  }
 0x1b6   : > { %5267 = vmatmul.mubr.bf16.vlgmr.msra.gmra.mxu1 %v9621_v12  ;;  %5203 = vmatprep.mubr.bf16.mxu0 %v9624_v14  ;;  %v9678_v50 = vpack.c.bf16 %v2976_v43, %v2964_v29  ;;  %v2640_v0 = vadd.f32 %v2639_v4, %v2567_v57  ;;  %v2636_v24 = vadd.f32 %v9608_v19, %v2563_v55  ;;  %v7470_v19 = vld [vmem:[%s10821_s3 + $0x7e0] ss:$12 sps:$4 sm:$0xff]   ;;  %v2986_v26 = vmax.f32 %v2478_v53, 0.0  ;;  %v7482_v57 = vld [vmem:[%s10821_s3 + $0x7b0] ss:$12 sps:$4 sm:$0xff]  }
 0x1b7   : > { %5276 = vmatprep.mubr.bf16.mxu1 %v9629_v40  ;;  %5308 = vmatpush1.bf16.msra.mxu0 %v7440_v52  ;;  %v2989_v52 = vmax.f32 %v2626_v11, 0.0  ;;  %v9681_v30 = vpop.f32.mrf.mxu1  ;;  %v3023_v17 = vmax.f32 %v2494_v5, 0.0  ;;  %v2561_v51 = vadd.f32 %v9564_v58, %v9516_v22  ;;  %v2492_v18 = vadd.f32 %v9400_v63, %v2419_v6  ;;  %v7476_v63 = vld [vmem:[%s10821_s3 + $0x7c8] ss:$12 sps:$4 sm:$0xff]   ;;  %v7475_v5 = vld [vmem:[%s10821_s3 + $0x604] ss:$12 sps:$4 sm:$0xff]  }
 0x1b8   : > { %5309 = vmatprep.subr.bf16.mxu0 %v7445_v42  ;;  %5381 = vmatpush1.bf16.msra.mxu1 %v7452_v23  ;;  %v2628_v42 = vadd.f32 %v9539_v8, %v2555_v38  ;;  %v7472_v8 = vld [vmem:[%s10821_s3 + $0x7e4] ss:$12 sps:$4 sm:$0xff]   ;;  %v2624_v23 = vadd.f32 %v9506_v60, %v2551_v39  ;;  %v2565_v60 = vadd.f32 %v9598_v27, %v9516_v22  ;;  %v7478_v27 = vld [vmem:[%s10821_s3 + $0x7cc] ss:$12 sps:$4 sm:$0xff]   ;;  %v3013_v11 = vmax.f32 %v2636_v24, 0.0 }
 0x1b9   : > { %5382 = vmatprep.subr.bf16.mxu1 %v7460_v35  ;;  %v9691_v54 = vpack.c.bf16 %v3001_v47, %v2989_v52  ;;  %v9709_v32 = vpop.f32.mrf.mxu1  ;;  %v3025_v35 = vmax.f32 %v2640_v0, 0.0  ;;  %v9724_v2 = vpack.c.bf16 %v2998_v62, %v2986_v26  ;;  %v7463_v22 = vld [vmem:[%s10821_s3 + $0x634] ss:$12 sps:$4 sm:$0xff]   ;;  %v3022_v29 = vmax.f32 %v2492_v18, 0.0  ;;  %v7467_v52 = vld [vmem:[%s10821_s3 + $0x618] ss:$12 sps:$4 sm:$0xff]  }
 0x1ba   : > { %v3000_v45 = vmax.f32 %v2628_v42, 0.0  ;;  %v2638_v16 = vadd.f32 %v9637_v1, %v2565_v60  ;;  %v7484_v1 = vld [vmem:[%s10821_s3 + $0x7b4] ss:$12 sps:$4 sm:$0xff]   ;;  %v7488_v42 = vld [vmem:[%s10821_s3 + $0x798] ss:$12 sps:$4 sm:$0xff]  }
 0x1bb   : > { %5310 = vmatpush1.bf16.msra.mxu0 %v7443_v44  ;;  %v2415_v44 = vadd.f32 %v9385_v21, %v9489_v59  ;;  %v7455_v21 = vld [vmem:[%s10821_s3 + $0x648] ss:$12 sps:$4 sm:$0xff]   ;;  %v9733_v34 = vpop.f32.mrf.mxu1  ;;  %v9745_v38 = vpack.c.bf16 %v3025_v35, %v3013_v11  ;;  %v7473_v53 = vld [vmem:[%s10821_s3 + $0x600] ss:$12 sps:$4 sm:$0xff]  }
 0x1bc   : > { %5311 = vmatprep.subr.bf16.mxu0 %v7448_v7  ;;  %5383 = vmatpush1.bf16.msra.mxu1 %v7458_v9  ;;  %v3011_v7 = vmax.f32 %v2490_v10, 0.0  ;;  %v2988_v9 = vmax.f32 %v2624_v23, 0.0  ;;  %v3024_v47 = vmax.f32 %v2638_v16, 0.0  ;;  %v7481_v0 = vld [vmem:[%s10821_s3 + $0x76c] ss:$12 sps:$4 sm:$0xff]  }
 0x1bd   : > { %5204 = vmatmul.mubr.bf16.gmra.mxu0 %v9666_v37  ;;  %5384 = vmatprep.subr.bf16.mxu1 %v7466_v46  ;;  %v2488_v58 = vadd.f32 %v9361_v36, %v2415_v44  ;;  %v2634_v46 = vadd.f32 %v9580_v31, %v2561_v51  ;;  %v9753_v13 = vpop.f32.mrf.mxu1  ;;  %v7461_v36 = vld [vmem:[%s10821_s3 + $0x630] ss:$12 sps:$4 sm:$0xff]   ;;  %v7502_v10 = vld [vmem:[%s10821_s3 + $0x8ec] ss:$12 sps:$4 sm:$0xff]   ;;  %v9805_v23 = vld [vmem:[%s10820_s2 + $0x8] sm:$0xf] }
 0x1be   : > { %5277 = vmatmul.mubr.bf16.gmra.mxu1 %v9678_v50  ;;  %5213 = vmatprep.mubr.bf16.mxu0 %v9675_v41  ;;  %v9730_v59 = vpack.c.bf16 %v3000_v45, %v2988_v9  ;;  %v9735_v43 = vpack.c.bf16 %v3023_v17, %v3011_v7  ;;  %v7469_v31 = vld [vmem:[%s10821_s3 + $0x61c] ss:$12 sps:$4 sm:$0xff]   ;;  %v9814_v24 = vrot.slane %v9805_v23, %v8745_v56  ;;  %v7487_v17 = vld [vmem:[%s10821_s3 + $0x754] ss:$12 sps:$4 sm:$0xff]   ;;  %v7491_v16 = vld [vmem:[%s10821_s3 + $0x738] ss:$12 sps:$4 sm:$0xff]  }
 0x1bf   : > { %5286 = vmatprep.mubr.bf16.mxu1 %v9691_v54  ;;  %5312 = vmatpush1.bf16.msra.mxu0 %v7446_v61  ;;  %v3010_v61 = vmax.f32 %v2488_v58, 0.0  ;;  %v3012_v39 = vmax.f32 %v2634_v46, 0.0  ;;  %v9768_v4 = vpop.f32.mrf.mxu1  ;;  %v7479_v6 = vld [vmem:[%s10821_s3 + $0x768] ss:$12 sps:$4 sm:$0xff]   ;;  %v7485_v44 = vld [vmem:[%s10821_s3 + $0x750] ss:$12 sps:$4 sm:$0xff]  }
 0x1c0   : > { %5313 = vmatprep.subr.bf16.mxu0 %v7451_v33  ;;  %5385 = vmatpush1.bf16.msra.mxu1 %v7464_v28  ;;  %v7496_v33 = vld [vmem:[%s10821_s3 + $0x784] ss:$12 sps:$4 sm:$0xff]   ;;  %v7500_v45 = vld [vmem:[%s10821_s3 + $0x8e8] ss:$12 sps:$4 sm:$0xff]  }
 0x1c1   : > { %5386 = vmatprep.subr.bf16.mxu1 %v7472_v8  ;;  %v9770_v3 = vpack.c.bf16 %v3022_v29, %v3010_v61  ;;  %v9775_v55 = vpack.c.bf16 %v3024_v47, %v3012_v39  ;;  %v9788_v28 = vpop.f32.mrf.mxu1  ;;  %v7494_v8 = vld [vmem:[%s10821_s3 + $0x780] ss:$12 sps:$4 sm:$0xff]   ;;  %v7506_v7 = vld [vmem:[%s10821_s3 + $0x8d0] ss:$12 sps:$4 sm:$0xff]   ;;  %v7512_v58 = vld [vmem:[%s10821_s3 + $0x8b8] ss:$12 sps:$4 sm:$0xff]  }
 0x1c2   : > { %v7508_v60 = vld [vmem:[%s10821_s3 + $0x8d4] ss:$12 sps:$4 sm:$0xff]   ;;  %v7514_v9 = vld [vmem:[%s10821_s3 + $0x8bc] ss:$12 sps:$4 sm:$0xff]   ;;  %v7526_v39 = vld [vmem:[%s10821_s3 + $0x88c] ss:$12 sps:$4 sm:$0xff]  }
 0x1c3   : > { %5314 = vmatpush1.bf16.msra.mxu0 %v7449_v48  ;;  %v9807_v62 = vpop.f32.mrf.mxu1  ;;  %v7518_v61 = vld [vmem:[%s10821_s3 + $0x8a0] ss:$12 sps:$4 sm:$0xff]  }
 0x1c4   : > { %5315 = vmatprep.subr.bf16.mxu0 %v7457_v49  ;;  %5387 = vmatpush1.bf16.msra.mxu1 %v7470_v19 }
 0x1c5   : > { %5214 = vmatmul.mubr.bf16.gmra.mxu0 %v9724_v2  ;;  %5388 = vmatprep.subr.bf16.mxu1 %v7478_v27  ;;  %v9827_v19 = vpop.f32.mrf.mxu1  ;;  %v7493_v27 = vld [vmem:[%s10821_s3 + $0x73c] ss:$12 sps:$4 sm:$0xff]  }
 0x1c6   : > { %5287 = vmatmul.mubr.bf16.gmra.mxu1 %v9730_v59  ;;  %5223 = vmatprep.mubr.bf16.mxu0 %v9735_v43 }
 0x1c7   : > { %5296 = vmatprep.mubr.bf16.mxu1 %v9745_v38  ;;  %5316 = vmatpush1.bf16.msra.mxu0 %v7455_v21  ;;  %v9842_v18 = vpop.f32.mrf.mxu1 }
 0x1c8   : > { %5317 = vmatprep.subr.bf16.mxu0 %v7463_v22  ;;  %5389 = vmatpush1.bf16.msra.mxu1 %v7476_v63  ;;  %v7499_v63 = vld [vmem:[%s10821_s3 + $0x724] ss:$12 sps:$4 sm:$0xff]  }
 0x1c9   : > { %5390 = vmatprep.subr.bf16.mxu1 %v7484_v1  ;;  %v7520_v1 = vld [vmem:[%s10821_s3 + $0x8a4] ss:$12 sps:$4 sm:$0xff]   ;;  %v9861_v29 = vpop.f32.mrf.mxu1 }
 0x1cb   : > { %5318 = vmatpush1.bf16.msra.mxu0 %v7461_v36 }
 0x1cc   : > { %5319 = vmatprep.subr.bf16.mxu0 %v7469_v31  ;;  %5391 = vmatpush1.bf16.msra.mxu1 %v7482_v57  ;;  %v7497_v31 = vld [vmem:[%s10821_s3 + $0x720] ss:$12 sps:$4 sm:$0xff]  }
 0x1cd   : > { %5224 = vmatmul.mubr.bf16.gmra.mxu0 %v9770_v3  ;;  %5392 = vmatprep.subr.bf16.mxu1 %v7490_v15 }
 0x1ce   : > { %5297 = vmatmul.mubr.bf16.gmra.mxu1 %v9775_v55 }
 0x1cf   : > { %5320 = vmatpush1.bf16.msra.mxu0 %v7467_v52 }
 0x1d0   : > { %5321 = vmatprep.subr.bf16.mxu0 %v7475_v5  ;;  %5393 = vmatpush1.bf16.msra.mxu1 %v7488_v42  ;;  %v9877_v5 = vpop.f32.mrf.mxu1  ;;  %v7503_v42 = vld [vmem:[%s10821_s3 + $0x708] ss:$12 sps:$4 sm:$0xff]  }
 0x1d1   : > { %5394 = vmatprep.subr.bf16.mxu1 %v7496_v33 }
 0x1d3   : > { %5322 = vmatpush1.bf16.msra.mxu0 %v7473_v53  ;;  %v7511_v53 = vld [vmem:[%s10821_s3 + $0x6f4] ss:$12 sps:$4 sm:$0xff]  }
 0x1d4   : > { %v9816_v48 = vpop.f32.mrf.mxu0  ;;  %5323 = vmatprep.subr.bf16.mxu0 %v7481_v0  ;;  %5395 = vmatpush1.bf16.msra.mxu1 %v7494_v8  ;;  %v7524_v0 = vld [vmem:[%s10821_s3 + $0x888] ss:$12 sps:$4 sm:$0xff]  }
 0x1d5   : > { %5396 = vmatprep.subr.bf16.mxu1 %v7502_v10  ;;  %v7531_v8 = vld [vmem:[%s10821_s3 + $0x874] ss:$12 sps:$4 sm:$0xff]   ;;  %v10873_v10 = vld [vmem:[#allocation6_spill] sm:$0xff] }
 0x1d6   : > { %v2678_v49 = vpop.f32.mrf.mxu0 }
 0x1d7   : > { %5324 = vmatpush2.bf16.msra.mxu0 %v7479_v6  ;;  %v2679_v26 = vadd.f32 %v2678_v49, %v9814_v24  ;;  %v9896_v6 = vrot.slane %v9805_v23, %v10873_v10 }
 0x1d8   : > { %v2680_v35 = vpop.f32.mrf.mxu0  ;;  %5325 = vmatprep.subr.bf16.mxu0 %v7487_v17  ;;  %5397 = vmatpush2.bf16.msra.mxu1 %v7500_v45  ;;  %v9898_v45 = vpop.f32.mrf.mxu1 }
 0x1d9   : > { %5398 = vmatprep.subr.bf16.mxu1 %v7508_v60  ;;  %v2752_v11 = vadd.f32 %v9681_v30, %v2679_v26  ;;  %v7509_v60 = vld [vmem:[%s10821_s3 + $0x6f0] ss:$12 sps:$4 sm:$0xff]   ;;  %v2681_v49 = vadd.f32 %v2680_v35, %v9896_v6  ;;  %v2677_v35 = vadd.f32 %v9816_v48, %v9896_v6  ;;  %v7534_v48 = vld [vmem:[%s10821_s3 + $0x858] ss:$12 sps:$4 sm:$0xff]  }
 0x1da   : > { %v2682_v51 = vpop.f32.mrf.mxu0 }
 0x1db   : > { %5326 = vmatpush2.bf16.msra.mxu0 %v7485_v44  ;;  %v2683_v21 = vadd.f32 %v2682_v51, %v9814_v24  ;;  %v2943_v36 = vmax.f32 %v2752_v11, 0.0  ;;  %v7517_v44 = vld [vmem:[%s10821_s3 + $0x6dc] ss:$12 sps:$4 sm:$0xff]   ;;  %v9918_v51 = vpop.f32.mrf.mxu1 }
 0x1dc   : > { %v9849_v22 = vpop.f32.mrf.mxu0  ;;  %5327 = vmatprep.subr.bf16.mxu0 %v7493_v27  ;;  %5399 = vmatpush2.bf16.msra.mxu1 %v7506_v7  ;;  %v7529_v27 = vld [vmem:[%s10821_s3 + $0x870] ss:$12 sps:$4 sm:$0xff]  }
 0x1dd   : > { %v2756_v30 = vadd.f32 %v9733_v34, %v2683_v21  ;;  %5400 = vmatprep.subr.bf16.mxu1 %v7514_v9  ;;  %v7505_v34 = vld [vmem:[%s10821_s3 + $0x70c] ss:$12 sps:$4 sm:$0xff]   ;;  %v7536_v9 = vld [vmem:[%s10821_s3 + $0x85c] ss:$12 sps:$4 sm:$0xff]  }
 0x1de   : > { %v2688_v46 = vpop.f32.mrf.mxu0 }
 0x1df   : > { %v2955_v47 = vmax.f32 %v2756_v30, 0.0  ;;  %5328 = vmatpush2.bf16.msra.mxu0 %v7491_v16  ;;  %v2689_v21 = vadd.f32 %v2688_v46, %v9814_v24  ;;  %v7515_v16 = vld [vmem:[%s10821_s3 + $0x6d8] ss:$12 sps:$4 sm:$0xff]  }
 0x1e0   : > { %v2690_v57 = vpop.f32.mrf.mxu0  ;;  %5329 = vmatprep.subr.bf16.mxu0 %v7499_v63  ;;  %5401 = vmatpush2.bf16.msra.mxu1 %v7512_v58  ;;  %v2754_v63 = vadd.f32 %v9709_v32, %v2681_v49  ;;  %v7523_v30 = vld [vmem:[%s10821_s3 + $0x6c4] ss:$12 sps:$4 sm:$0xff]   ;;  %v2750_v32 = vadd.f32 %v9657_v20, %v2677_v35 }
 0x1e1   : > { %v9872_v15 = vpack.c.bf16 %v2955_v47, %v2943_v36  ;;  %5402 = vmatprep.subr.bf16.mxu1 %v7520_v1  ;;  %v7541_v46 = vld [vmem:[%s10821_s3 + $0x844] ss:$12 sps:$4 sm:$0xff]   ;;  %v9938_v36 = vpop.f32.mrf.mxu1 }
 0x1e2   : > { %v2692_v52 = vpop.f32.mrf.mxu0  ;;  %v7527_v20 = vld [vmem:[%s10821_s3 + $0x170] ss:$12 sps:$4 sm:$0xff]  }
 0x1e3   : > { %5330 = vmatpush2.bf16.msra.mxu0 %v7497_v31  ;;  %5339 = vmatprep.mubr.bf16.mxu0 %v9872_v15  ;;  %v2693_v7 = vadd.f32 %v2692_v52, %v9814_v24  ;;  %v2762_v31 = vadd.f32 %v9768_v4, %v2689_v21  ;;  %v7539_v4 = vld [vmem:[%s10821_s3 + $0x840] ss:$12 sps:$4 sm:$0xff]  }
 0x1e4   : > { %v9883_v33 = vpop.f32.mrf.mxu0  ;;  %5331 = vmatprep.subr.bf16.mxu0 %v7505_v34  ;;  %5403 = vmatpush2.bf16.msra.mxu1 %v7518_v61  ;;  %v7521_v34 = vld [vmem:[%s10821_s3 + $0x6c0] ss:$12 sps:$4 sm:$0xff]   ;;  %v2954_v61 = vmax.f32 %v2754_v63, 0.0 }
 0x1e5   : > { %5404 = vmatprep.subr.bf16.mxu1 %v7526_v39  ;;  %v2766_v1 = vadd.f32 %v9807_v62, %v2693_v7  ;;  %v2691_v62 = vadd.f32 %v2690_v57, %v9896_v6  ;;  %v7544_v57 = vld [vmem:[%s10821_s3 + $0x2f0] ss:$12 sps:$4 sm:$0xff]   ;;  %v10874_v7 = vld [vmem:[#allocation5_spill] sm:$0xff] }
 0x1e6   : > { %v2698_v17 = vpop.f32.mrf.mxu0 }
 0x1e7   : > { %5332 = vmatpush2.bf16.msra.mxu0 %v7503_v42  ;;  %v2979_v52 = vmax.f32 %v2766_v1, 0.0  ;;  %v2764_v21 = vadd.f32 %v9788_v28, %v2691_v62 }
 0x1e8   : > { %v9904_v26 = vpop.f32.mrf.mxu0  ;;  %5333 = vmatprep.subr.bf16.mxu0 %v7511_v53  ;;  %5405 = vmatpush2.bf16.msra.mxu1 %v7524_v0  ;;  %v2942_v53 = vmax.f32 %v2750_v32, 0.0  ;;  %v2687_v0 = vadd.f32 %v9849_v22, %v9896_v6  ;;  %v10876_v22 = vld [vmem:[#allocation13_spill] sm:$0xff] }
 0x1e9   : > { %5406 = vmatprep.subr.bf16.mxu1 %v7531_v8  ;;  %v2699_v8 = vadd.f32 %v2698_v17, %v9814_v24  ;;  %v9973_v17 = vrot.slane %v9805_v23, %v10876_v22 }
 0x1ea   : > { %v2702_v11 = vpop.f32.mrf.mxu0 }
 0x1eb   : > { %5334 = vmatpush2.bf16.msra.mxu0 %v7509_v60  ;;  %v2703_v42 = vadd.f32 %v2702_v11, %v9814_v24  ;;  %v2785_v60 = vpop.f32.mrf.mxu1  ;;  %v9968_v11 = vpack.c.bf16 %v2954_v61, %v2942_v53  ;;  %v2772_v28 = vadd.f32 %v9842_v18, %v2699_v8  ;;  %v2701_v61 = vadd.f32 %v9904_v26, %v9896_v6 }
 0x1ec   : > { %v9925_v58 = vpop.f32.mrf.mxu0  ;;  %5335 = vmatprep.subr.bf16.mxu0 %v7517_v44  ;;  %5407 = vmatpush2.bf16.msra.mxu1 %v7529_v27  ;;  %v2967_v44 = vmax.f32 %v2762_v31, 0.0  ;;  %v7528_v27 = vld [vmem:[%s10821_s3 + $0xb0] ss:$12 sps:$4 sm:$0xff]   ;;  %v2697_v53 = vadd.f32 %v9883_v33, %v9896_v6 }
 0x1ed   : > { %5408 = vmatprep.subr.bf16.mxu1 %v7536_v9  ;;  %v10875_v9 = vsub.s32 3, %v10874_v7 }
 0x1ee   : > { %v2708_v47 = vpop.f32.mrf.mxu0  ;;  %v9979_v1 = vpack.c.bf16 %v2979_v52, %v2967_v44 }
 0x1ef   : > { %5336 = vmatpush2.bf16.msra.mxu0 %v7515_v16  ;;  %v9966_v35 = vrot.slane %v9805_v23, %v10875_v9  ;;  %v2709_v44 = vadd.f32 %v2708_v47, %v9814_v24 }
 0x1f0   : > { %v9945_v39 = vpop.f32.mrf.mxu0  ;;  %5337 = vmatprep.subr.bf16.mxu0 %v7523_v30  ;;  %5409 = vmatpush2.bf16.msra.mxu1 %v7534_v48  ;;  %v7532_v30 = vld [vmem:[%s10821_s3 + $0x158] ss:$12 sps:$4 sm:$0xff]   ;;  %v2776_v48 = vadd.f32 %v9877_v5, %v2703_v42 }
 0x1f1   : > { %5410 = vmatprep.subr.bf16.mxu1 %v7541_v46  ;;  %v2760_v46 = vadd.f32 %v9753_v13, %v2687_v0  ;;  %v7533_v5 = vld [vmem:[%s10821_s3 + $0x98] ss:$12 sps:$4 sm:$0xff]   ;;  %v2991_v0 = vmax.f32 %v2772_v28, 0.0 }
 0x1f2   : > { %v2712_v49 = vpop.f32.mrf.mxu0 }
 0x1f3   : > { %5338 = vmatpush2.bf16.msra.mxu0 %v7521_v34  ;;  %v2978_v34 = vmax.f32 %v2764_v21, 0.0  ;;  %v2713_v52 = vadd.f32 %v2712_v49, %v9814_v24  ;;  %v7538_v49 = vld [vmem:[%s10821_s3 + $0x80] ss:$12 sps:$4 sm:$0xff]   ;;  %v7542_v24 = vld [vmem:[%s10821_s3 + $0x128] ss:$12 sps:$4 sm:$0xff]  }
 0x1f4   : > { %v2895_v63 = vpop.f32.mrf.mxu0  ;;  %6531 = vmatprep.subr.bf16.mxu0 %v7527_v20  ;;  %5411 = vmatpush2.bf16.msra.mxu1 %v7539_v4  ;;  %v7537_v20 = vld [vmem:[%s10821_s3 + $0x140] ss:$12 sps:$4 sm:$0xff]   ;;  %v3003_v4 = vmax.f32 %v2776_v48, 0.0 }
 0x1f5   : > { %v2822_v16 = vpop.f32.mrf.mxu1  ;;  %6571 = vmatprep.subr.bf16.mxu1 %v7544_v57  ;;  %v2966_v57 = vmax.f32 %v2760_v46, 0.0  ;;  %v2786_v47 = vadd.f32 %v2785_v60, %v2713_v52  ;;  %v7543_v60 = vld [vmem:[%s10821_s3 + $0x68] ss:$12 sps:$4 sm:$0xff]  }
 0x1f6   : > { %5340 = vmatmul.mubr.bf16.vlgmr.msra.gmra.mxu0 %v9968_v11  ;;  %v2897_v32 = vpop.f32.mrf.mxu0  ;;  %v2823_v13 = vadd.f32 %v2822_v16, %v9973_v17  ;;  %v2774_v16 = vadd.f32 %v9861_v29, %v2701_v61  ;;  %v10010_v28 = vpack.c.bf16 %v3003_v4, %v2991_v0  ;;  %v2782_v29 = vadd.f32 %v9918_v51, %v2709_v44  ;;  %v7545_v4 = vld [vmem:[%s10821_s3 + $0x110] ss:$12 sps:$4 sm:$0xff]  }
 0x1f7   : > { %v2824_v23 = vpop.f32.mrf.mxu1  ;;  %5349 = vmatprep.mubr.bf16.mxu0 %v9979_v1  ;;  %6532 = vmatpush3.bf16.msra.mxu0 %v7528_v27  ;;  %v10004_v21 = vpack.c.bf16 %v2978_v34, %v2966_v57  ;;  %v3027_v52 = vmax.f32 %v2786_v47, 0.0  ;;  %v2707_v0 = vadd.f32 %v9925_v58, %v9896_v6 }
 0x1f8   : > { %v2825_v31 = vadd.f32 %v2824_v23, %v9966_v35  ;;  %v2899_v62 = vpop.f32.mrf.mxu0  ;;  %6533 = vmatprep.subr.bf16.mxu0 %v7532_v30  ;;  %v2896_v30 = vadd.f32 %v2895_v63, %v2823_v13  ;;  %v2770_v23 = vadd.f32 %v9827_v19, %v2697_v53  ;;  %v3002_v13 = vmax.f32 %v2774_v16, 0.0  ;;  %v7546_v53 = vld [vmem:[%s10821_s3 + $0x230] ss:$12 sps:$4 sm:$0xff]  }
 0x1f9   : > { %v2826_v18 = vpop.f32.mrf.mxu1  ;;  %v2711_v19 = vadd.f32 %v9945_v39, %v9896_v6  ;;  %v7547_v6 = vld [vmem:[%s10821_s3 + $0x50] ss:$12 sps:$4 sm:$0xff]  }
 0x1fa   : > { %v2827_v42 = vadd.f32 %v2826_v18, %v9973_v17  ;;  %v2901_v8 = vpop.f32.mrf.mxu0  ;;  %v2898_v27 = vadd.f32 %v2897_v32, %v2825_v31  ;;  %v2944_v18 = vmax.f32 %v2896_v30, 0.0  ;;  %v2990_v39 = vmax.f32 %v2770_v23, 0.0 }
 0x1fb   : > { %v2828_v26 = vpop.f32.mrf.mxu1  ;;  %6534 = vmatpush3.bf16.msra.mxu0 %v7533_v5  ;;  %v2784_v30 = vadd.f32 %v9938_v36, %v2711_v19  ;;  %v2780_v36 = vadd.f32 %v9898_v45, %v2707_v0  ;;  %v7551_v45 = vld [vmem:[%s10821_s3 + $0x38] ss:$12 sps:$4 sm:$0xff]  }
 0x1fc   : > { %v2900_v7 = vadd.f32 %v2899_v62, %v2827_v42  ;;  %v2829_v9 = vadd.f32 %v2828_v26, %v9966_v35  ;;  %v2905_v48 = vpop.f32.mrf.mxu0  ;;  %6535 = vmatprep.subr.bf16.mxu0 %v7537_v20  ;;  %v2945_v63 = vmax.f32 %v2898_v27, 0.0  ;;  %v7548_v27 = vld [vmem:[%s10821_s3 + $0x2d8] ss:$12 sps:$4 sm:$0xff]   ;;  %v10044_v58 = vpack.c.bf16 %v3002_v13, %v2990_v39 }
 0x1fd   : > { %v2832_v33 = vpop.f32.mrf.mxu1  ;;  %v3026_v13 = vmax.f32 %v2784_v30, 0.0 }
 0x1fe   : > { %v2902_v46 = vadd.f32 %v2901_v8, %v2829_v9  ;;  %v2956_v32 = vmax.f32 %v2900_v7, 0.0  ;;  %5350 = vmatmul.mubr.bf16.gmra.mxu0 %v10004_v21  ;;  %v2907_v5 = vpop.f32.mrf.mxu0  ;;  %v2833_v62 = vadd.f32 %v2832_v33, %v9973_v17  ;;  %v3015_v7 = vmax.f32 %v2782_v29, 0.0 }
 0x1ff   : > { %v2834_v31 = vpop.f32.mrf.mxu1  ;;  %5359 = vmatprep.mubr.bf16.mxu0 %v10010_v28  ;;  %6536 = vmatpush3.bf16.msra.mxu0 %v7538_v49 }
 0x200   : > { %v2957_v34 = vmax.f32 %v2902_v46, 0.0  ;;  %v2835_v61 = vadd.f32 %v2834_v31, %v9966_v35  ;;  %v2909_v51 = vpop.f32.mrf.mxu0  ;;  %6537 = vmatprep.subr.bf16.mxu0 %v7542_v24  ;;  %v10034_v26 = vpack.c.bf16 %v2956_v32, %v2944_v18  ;;  %v2906_v33 = vadd.f32 %v2905_v48, %v2833_v62  ;;  %v7549_v46 = vld [vmem:[%s10821_s3 + $0xf8] ss:$12 sps:$4 sm:$0xff]  }
 0x201   : > { %v2836_v20 = vpop.f32.mrf.mxu1  ;;  %v10051_v32 = vpack.c.bf16 %v3027_v52, %v3015_v7  ;;  %v7550_v31 = vld [vmem:[%s10821_s3 + $0x218] ss:$12 sps:$4 sm:$0xff]  }
 0x202   : > { %v10026_v42 = vpack.c.bf16 %v2957_v34, %v2945_v63  ;;  %v2837_v57 = vadd.f32 %v2836_v20, %v9973_v17  ;;  %v2911_v44 = vpop.f32.mrf.mxu0  ;;  %v2908_v9 = vadd.f32 %v2907_v5, %v2835_v61  ;;  %v7552_v63 = vld [vmem:[%s10821_s3 + $0x2c0] ss:$12 sps:$4 sm:$0xff]   ;;  %v2968_v19 = vmax.f32 %v2906_v33, 0.0 }
 0x203   : > { %v2838_v8 = vpop.f32.mrf.mxu1  ;;  %6538 = vmatpush3.bf16.msra.mxu0 %v7543_v60 }
 0x204   : > { %v2910_v49 = vadd.f32 %v2909_v51, %v2837_v57  ;;  %v2839_v16 = vadd.f32 %v2838_v8, %v9966_v35  ;;  %5412 = vmatprep.mubr.bf16.mxu1 %v10026_v42  ;;  %v2915_v47 = vpop.f32.mrf.mxu0  ;;  %6539 = vmatprep.subr.bf16.mxu0 %v7545_v4  ;;  %v2969_v34 = vmax.f32 %v2908_v9, 0.0  ;;  %v7553_v51 = vld [vmem:[%s10821_s3 + $0xe0] ss:$12 sps:$4 sm:$0xff]  }
 0x205   : > { %v2842_v24 = vpop.f32.mrf.mxu1  ;;  %5413 = vmatmul.mubr.bf16.vlgmr.msra.gmra.mxu1 %v10034_v26  ;;  %v7554_v57 = vld [vmem:[%s10821_s3 + $0x200] ss:$12 sps:$4 sm:$0xff]  }
 0x206   : > { %v2912_v23 = vadd.f32 %v2911_v44, %v2839_v16  ;;  %6572 = vmatpush3.bf16.msra.mxu1 %v7546_v53  ;;  %v2980_v48 = vmax.f32 %v2910_v49, 0.0  ;;  %5360 = vmatmul.mubr.bf16.gmra.mxu0 %v10044_v58  ;;  %v2917_v29 = vpop.f32.mrf.mxu0  ;;  %v2843_v18 = vadd.f32 %v2842_v24, %v9973_v17  ;;  %v3014_v53 = vmax.f32 %v2780_v36, 0.0  ;;  %v7556_v44 = vld [vmem:[%s10821_s3 + $0x2a8] ss:$12 sps:$4 sm:$0xff]   ;;  %v7555_v49 = vld [vmem:[%s10821_s3 + $0x20] ss:$12 sps:$4 sm:$0xff]  }
 0x207   : > { %v2844_v5 = vpop.f32.mrf.mxu1  ;;  %6573 = vmatprep.subr.bf16.mxu1 %v7548_v27  ;;  %5369 = vmatprep.mubr.bf16.mxu0 %v10051_v32  ;;  %v7557_v24 = vld [vmem:[%s10821_s3 + $0xc8] ss:$12 sps:$4 sm:$0xff]  }
 0x208   : > { %v2981_v61 = vmax.f32 %v2912_v23, 0.0  ;;  %6540 = vmatpush3.bf16.msra.mxu0 %v7547_v6  ;;  %v2845_v60 = vadd.f32 %v2844_v5, %v9966_v35  ;;  %v2919_v20 = vpop.f32.mrf.mxu0  ;;  %v10076_v39 = vpack.c.bf16 %v2980_v48, %v2968_v19  ;;  %v10086_v16 = vpack.c.bf16 %v3026_v13, %v3014_v53  ;;  %v7558_v23 = vld [vmem:[%s10821_s3 + $0x1e8] ss:$12 sps:$4 sm:$0xff]   ;;  %v7560_v48 = vld [vmem:[%s10821_s3 + $0x290] ss:$12 sps:$4 sm:$0xff]  }
 0x209   : > { %v2846_v62 = vpop.f32.mrf.mxu1  ;;  %6541 = vmatprep.subr.bf16.mxu0 %v7549_v46  ;;  %v2916_v6 = vadd.f32 %v2915_v47, %v2843_v18  ;;  %v7562_v18 = vld [vmem:[%s10821_s3 + $0x470] ss:$12 sps:$4 sm:$0xff]   ;;  %v7564_v53 = vld [vmem:[%s10821_s3 + $0x278] ss:$12 sps:$4 sm:$0xff]  }
 0x20a   : > { %v10070_v4 = vpack.c.bf16 %v2981_v61, %v2969_v34  ;;  %v2847_v52 = vadd.f32 %v2846_v62, %v9973_v17  ;;  %6574 = vmatpush3.bf16.msra.mxu1 %v7550_v31  ;;  %v2921_v8 = vpop.f32.mrf.mxu0  ;;  %v2918_v27 = vadd.f32 %v2917_v29, %v2845_v60  ;;  %v7559_v61 = vld [vmem:[%s10821_s3 + $0x8] ss:$12 sps:$4 sm:$0xff]  }
 0x20b   : > { %v2848_v0 = vpop.f32.mrf.mxu1  ;;  %6575 = vmatprep.subr.bf16.mxu1 %v7552_v63  ;;  %v10877_v63 = vld [vmem:[#allocation11_spill] sm:$0xff]  ;;  %v2992_v60 = vmax.f32 %v2916_v6, 0.0 }
 0x20c   : > { %v2920_v7 = vadd.f32 %v2919_v20, %v2847_v52  ;;  %6542 = vmatpush3.bf16.msra.mxu0 %v7551_v45  ;;  %v2849_v9 = vadd.f32 %v2848_v0, %v9966_v35  ;;  %5422 = vmatprep.mubr.bf16.mxu1 %v10070_v4  ;;  %v2925_v33 = vpop.f32.mrf.mxu0  ;;  %v2993_v5 = vmax.f32 %v2918_v27, 0.0 }
 0x20d   : > { %v2852_v30 = vpop.f32.mrf.mxu1  ;;  %5423 = vmatmul.mubr.bf16.gmra.mxu1 %v10076_v39  ;;  %6543 = vmatprep.subr.bf16.mxu0 %v7553_v51  ;;  %v7561_v51 = vld [vmem:[%s10821_s3 + $0x1d0] ss:$12 sps:$4 sm:$0xff]  }
 0x20e   : > { %v2922_v46 = vadd.f32 %v2921_v8, %v2849_v9  ;;  %6576 = vmatpush3.bf16.msra.mxu1 %v7554_v57  ;;  %v3004_v31 = vmax.f32 %v2920_v7, 0.0  ;;  %5370 = vmatmul.mubr.bf16.gmra.mxu0 %v10086_v16  ;;  %v2927_v47 = vpop.f32.mrf.mxu0  ;;  %v2853_v45 = vadd.f32 %v2852_v30, %v9973_v17  ;;  %v7566_v9 = vld [vmem:[%s10821_s3 + $0x458] ss:$12 sps:$4 sm:$0xff]   ;;  %v10878_v30 = vld [vmem:[#allocation7_spill] sm:$0xff] }
 0x20f   : > { %v2854_v36 = vpop.f32.mrf.mxu1  ;;  %6577 = vmatprep.subr.bf16.mxu1 %v7556_v44  ;;  %5485 = vmatprep.mubr.bf16.mxu0 %v10877_v63  ;;  %v7572_v63 = vld [vmem:[%s10821_s3 + $0x248] ss:$12 sps:$4 sm:$0xff]  }
 0x210   : > { %v3005_v29 = vmax.f32 %v2922_v46, 0.0  ;;  %6544 = vmatpush3.bf16.msra.mxu0 %v7555_v49  ;;  %v2855_v34 = vadd.f32 %v2854_v36, %v9966_v35  ;;  %v2929_v19 = vpop.f32.mrf.mxu0  ;;  %v10114_v52 = vpack.c.bf16 %v3004_v31, %v2992_v60  ;;  %v2926_v27 = vadd.f32 %v2925_v33, %v2853_v45  ;;  %v7568_v33 = vld [vmem:[%s10821_s3 + $0x260] ss:$12 sps:$4 sm:$0xff]   ;;  %v7567_v31 = vld [vmem:[%s10821_s3 + $0x398] ss:$12 sps:$4 sm:$0xff]  }
 0x211   : > { %v2856_v13 = vpop.f32.mrf.mxu1  ;;  %6545 = vmatprep.subr.bf16.mxu0 %v7557_v24  ;;  %v10880_v60 = vld [vmem:[#allocation12_spill] sm:$0xff]  ;;  %v7573_v45 = vld [vmem:[%s10821_s3 + $0x188] ss:$12 sps:$4 sm:$0xff]  }
 0x212   : > { %v10108_v62 = vpack.c.bf16 %v3005_v29, %v2993_v5  ;;  %v2857_v20 = vadd.f32 %v2856_v13, %v9973_v17  ;;  %6578 = vmatpush3.bf16.msra.mxu1 %v7558_v23  ;;  %v2928_v0 = vadd.f32 %v2927_v47, %v2855_v34  ;;  %v7563_v17 = vld [vmem:[%s10821_s3 + $0x3b0] ss:$12 sps:$4 sm:$0xff]   ;;  %v2931_v7 = vpop.f32.mrf.mxu0  ;;  %v3016_v36 = vmax.f32 %v2926_v27, 0.0  ;;  %v7570_v47 = vld [vmem:[%s10821_s3 + $0x440] ss:$12 sps:$4 sm:$0xff]  }
 0x213   : > { %v2858_v57 = vpop.f32.mrf.mxu1  ;;  %6579 = vmatprep.subr.bf16.mxu1 %v7560_v48  ;;  %v10879_v23 = vld [vmem:[#allocation15_spill] sm:$0xff]  ;;  %v7569_v5 = vld [vmem:[%s10821_s3 + $0x1a0] ss:$12 sps:$4 sm:$0xff]   ;;  %v10881_v13 = vld [vmem:[#allocation8_spill] sm:$0xff] }
 0x214   : > { %v2930_v8 = vadd.f32 %v2929_v19, %v2857_v20  ;;  %6546 = vmatpush3.bf16.msra.mxu0 %v7559_v61  ;;  %v2859_v44 = vadd.f32 %v2858_v57, %v9966_v35  ;;  %5432 = vmatprep.mubr.bf16.mxu1 %v10108_v62  ;;  %v7565_v35 = vld [vmem:[%s10821_s3 + $0x1b8] ss:$12 sps:$4 sm:$0xff]   ;;  %v3017_v24 = vmax.f32 %v2928_v0, 0.0  ;;  %v7571_v34 = vld [vmem:[%s10821_s3 + $0x380] ss:$12 sps:$4 sm:$0xff]  }
 0x215   : > { %5433 = vmatmul.mubr.bf16.gmra.mxu1 %v10114_v52  ;;  %6611 = vmatprep.subr.bf16.mxu0 %v7562_v18  ;;  %v7574_v61 = vld [vmem:[%s10821_s3 + $0x428] ss:$12 sps:$4 sm:$0xff]   ;;  %v7576_v19 = vld [vmem:[%s10821_s3 + $0x5f0] ss:$12 sps:$4 sm:$0xff]   ;;  %v7582_v27 = vld [vmem:[%s10821_s3 + $0x518] ss:$12 sps:$4 sm:$0xff]  }
 0x216   : > { %v2932_v49 = vadd.f32 %v2931_v7, %v2859_v44  ;;  %6580 = vmatpush3.bf16.msra.mxu1 %v7561_v51  ;;  %v3028_v6 = vmax.f32 %v2930_v8, 0.0  ;;  %v10882_v18 = vld [vmem:[#allocation18_spill] sm:$0xff]  ;;  %v7577_v51 = vld [vmem:[%s10821_s3 + $0x410] ss:$12 sps:$4 sm:$0xff]   ;;  %v7581_v44 = vld [vmem:[%s10821_s3 + $0x3f8] ss:$12 sps:$4 sm:$0xff]  }
 0x217   : > { %5486 = vmatmul.mubr.bf16.vlgmr.msra.gmra.mxu0 %v10878_v30  ;;  %6581 = vmatprep.subr.bf16.mxu1 %v7564_v53  ;;  %v7575_v20 = vld [vmem:[%s10821_s3 + $0x368] ss:$12 sps:$4 sm:$0xff]   ;;  %v7578_v57 = vld [vmem:[%s10821_s3 + $0x530] ss:$12 sps:$4 sm:$0xff]   ;;  %v7580_v53 = vld [vmem:[%s10821_s3 + $0x5d8] ss:$12 sps:$4 sm:$0xff]  }
 0x218   : > { %v3029_v46 = vmax.f32 %v2932_v49, 0.0  ;;  %5493 = vmatprep.mubr.bf16.mxu0 %v10879_v23  ;;  %6612 = vmatpush3.bf16.msra.mxu0 %v7563_v17  ;;  %v10147_v29 = vpack.c.bf16 %v3028_v6, %v3016_v36  ;;  %v7579_v0 = vld [vmem:[%s10821_s3 + $0x350] ss:$12 sps:$4 sm:$0xff]   ;;  %v10883_v8 = vld [vmem:[#allocation14_spill] sm:$0xff]  ;;  %v10885_v7 = vld [vmem:[#allocation9_spill] sm:$0xff] }
 0x219   : > { %6613 = vmatprep.subr.bf16.mxu0 %v7566_v9  ;;  %v10884_v17 = vld [vmem:[#allocation16_spill] sm:$0xff]  ;;  %v7584_v9 = vld [vmem:[%s10821_s3 + $0x5c0] ss:$12 sps:$4 sm:$0xff]   ;;  %v7589_v23 = vld [vmem:[%s10821_s3 + $0x3c8] ss:$12 sps:$4 sm:$0xff]  }
 0x21a   : > { %v10142_v48 = vpack.c.bf16 %v3029_v46, %v3017_v24  ;;  %6582 = vmatpush3.bf16.msra.mxu1 %v7565_v35  ;;  %v10886_v49 = vld [vmem:[#allocation20_spill] sm:$0xff]  ;;  %v7585_v6 = vld [vmem:[%s10821_s3 + $0x3e0] ss:$12 sps:$4 sm:$0xff]   ;;  %v7590_v36 = vld [vmem:[%s10821_s3 + $0x4e8] ss:$12 sps:$4 sm:$0xff]  }
 0x21b   : > { %6583 = vmatprep.subr.bf16.mxu1 %v7568_v33  ;;  %v7583_v35 = vld [vmem:[%s10821_s3 + $0x338] ss:$12 sps:$4 sm:$0xff]   ;;  %v7586_v30 = vld [vmem:[%s10821_s3 + $0x500] ss:$12 sps:$4 sm:$0xff]   ;;  %v7588_v33 = vld [vmem:[%s10821_s3 + $0x5a8] ss:$12 sps:$4 sm:$0xff]  }
 0x21c   : > { %6614 = vmatpush3.bf16.msra.mxu0 %v7567_v31  ;;  %5442 = vmatprep.mubr.bf16.mxu1 %v10142_v48  ;;  %v7587_v24 = vld [vmem:[%s10821_s3 + $0x320] ss:$12 sps:$4 sm:$0xff]   ;;  %v10888_v31 = vld [vmem:[#allocation19_spill] sm:$0xff] }
 0x21d   : > { %5443 = vmatmul.mubr.bf16.gmra.mxu1 %v10147_v29  ;;  %6615 = vmatprep.subr.bf16.mxu0 %v7570_v47  ;;  %v10887_v46 = vld [vmem:[#allocation17_spill] sm:$0xff]  ;;  %v10889_v47 = vld [vmem:[#allocation10_spill] sm:$0xff] }
 0x21e   : > { %6584 = vmatpush3.bf16.msra.mxu1 %v7569_v5  ;;  %5550 = vmatprep.mubr.bf16.mxu1 %v10880_v60  ;;  %v7592_v5 = vld [vmem:[%s10821_s3 + $0x590] ss:$12 sps:$4 sm:$0xff]  }
 0x21f   : > { %5494 = vmatmul.mubr.bf16.gmra.mxu0 %v10881_v13  ;;  %6585 = vmatprep.subr.bf16.mxu1 %v7572_v63  ;;  %v10890_v63 = vld [vmem:[#allocation24_spill] sm:$0xff] }
 0x220   : > { %5501 = vmatprep.mubr.bf16.mxu0 %v10882_v18  ;;  %6616 = vmatpush3.bf16.msra.mxu0 %v7571_v34  ;;  %v7591_v34 = vld [vmem:[%s10821_s3 + $0x308] ss:$12 sps:$4 sm:$0xff]   ;;  %v7593_v60 = vld [vmem:[%s10821_s3 + $0x4d0] ss:$12 sps:$4 sm:$0xff]   ;;  %v7598_v18 = vld [vmem:[%s10821_s3 + $0x758] ss:$12 sps:$4 sm:$0xff]  }
 0x221   : > { %6617 = vmatprep.subr.bf16.mxu0 %v7574_v61  ;;  %v7594_v61 = vld [vmem:[%s10821_s3 + $0x770] ss:$12 sps:$4 sm:$0xff]  }
 0x222   : > { %6586 = vmatpush3.bf16.msra.mxu1 %v7573_v45  ;;  %v7596_v45 = vld [vmem:[%s10821_s3 + $0x578] ss:$12 sps:$4 sm:$0xff]   ;;  %v7595_v13 = vld [vmem:[%s10821_s3 + $0x6b0] ss:$12 sps:$4 sm:$0xff]  }
 0x223   : > { %6651 = vmatprep.subr.bf16.mxu1 %v7576_v19  ;;  %v10891_v19 = vld [vmem:[#allocation21_spill] sm:$0xff] }
 0x224   : > { %6618 = vmatpush3.bf16.msra.mxu0 %v7575_v20  ;;  %v10892_v20 = vld [vmem:[#allocation22_spill] sm:$0xff] }
 0x225   : > { %5551 = vmatmul.mubr.bf16.vlgmr.msra.gmra.mxu1 %v10883_v8  ;;  %6619 = vmatprep.subr.bf16.mxu0 %v7577_v51  ;;  %v7597_v51 = vld [vmem:[%s10821_s3 + $0x4b8] ss:$12 sps:$4 sm:$0xff]  }
 0x226   : > { %6652 = vmatpush3.bf16.msra.mxu1 %v7578_v57  ;;  %5558 = vmatprep.mubr.bf16.mxu1 %v10884_v17  ;;  %v7600_v57 = vld [vmem:[%s10821_s3 + $0x560] ss:$12 sps:$4 sm:$0xff]   ;;  %v10893_v17 = vld [vmem:[#allocation23_spill] sm:$0xff] }
 0x227   : > { %5502 = vmatmul.mubr.bf16.gmra.mxu0 %v10885_v7  ;;  %6653 = vmatprep.subr.bf16.mxu1 %v7580_v53  ;;  %v7599_v53 = vld [vmem:[%s10821_s3 + $0x698] ss:$12 sps:$4 sm:$0xff]  }
 0x228   : > { %5509 = vmatprep.mubr.bf16.mxu0 %v10886_v49  ;;  %6620 = vmatpush3.bf16.msra.mxu0 %v7579_v0  ;;  %v7602_v0 = vld [vmem:[%s10821_s3 + $0x740] ss:$12 sps:$4 sm:$0xff]  }
 0x229   : > { %6621 = vmatprep.subr.bf16.mxu0 %v7581_v44  ;;  %v7603_v44 = vld [vmem:[%s10821_s3 + $0x680] ss:$12 sps:$4 sm:$0xff]  }
 0x22a   : > { %6654 = vmatpush3.bf16.msra.mxu1 %v7582_v27  ;;  %v7606_v27 = vld [vmem:[%s10821_s3 + $0x728] ss:$12 sps:$4 sm:$0xff]   ;;  %v10894_v7 = vld [vmem:[#allocation25_spill] sm:$0xff] }
 0x22b   : > { %6655 = vmatprep.subr.bf16.mxu1 %v7584_v9  ;;  %v7605_v9 = vld [vmem:[%s10821_s3 + $0x488] ss:$12 sps:$4 sm:$0xff]  }
 0x22c   : > { %6622 = vmatpush3.bf16.msra.mxu0 %v7583_v35  ;;  %v7608_v35 = vld [vmem:[%s10821_s3 + $0x8f0] ss:$12 sps:$4 sm:$0xff]  }
 0x22d   : > { %5559 = vmatmul.mubr.bf16.gmra.mxu1 %v10887_v46  ;;  %6623 = vmatprep.subr.bf16.mxu0 %v7585_v6  ;;  %v7607_v6 = vld [vmem:[%s10821_s3 + $0x668] ss:$12 sps:$4 sm:$0xff]   ;;  %v7613_v46 = vld [vmem:[%s10821_s3 + $0x6f8] ss:$12 sps:$4 sm:$0xff]  }
 0x22e   : > { %6656 = vmatpush3.bf16.msra.mxu1 %v7586_v30  ;;  %5566 = vmatprep.mubr.bf16.mxu1 %v10888_v31  ;;  %v7609_v30 = vld [vmem:[%s10821_s3 + $0x710] ss:$12 sps:$4 sm:$0xff]  }
 0x22f   : > { %5510 = vmatmul.mubr.bf16.gmra.mxu0 %v10889_v47  ;;  %6657 = vmatprep.subr.bf16.mxu1 %v7588_v33  ;;  %v7617_v47 = vld [vmem:[%s10821_s3 + $0x6e0] ss:$12 sps:$4 sm:$0xff]  }
 0x230   : > { %6624 = vmatpush3.bf16.msra.mxu0 %v7587_v24  ;;  %5615 = vmatprep.mubr.bf16.mxu0 %v10890_v63  ;;  %v7611_v24 = vld [vmem:[%s10821_s3 + $0x650] ss:$12 sps:$4 sm:$0xff]   ;;  %v7619_v63 = vld [vmem:[%s10821_s3 + $0x620] ss:$12 sps:$4 sm:$0xff]  }
 0x231   : > { %6625 = vmatprep.subr.bf16.mxu0 %v7589_v23  ;;  %v7614_v23 = vld [vmem:[%s10821_s3 + $0x818] ss:$12 sps:$4 sm:$0xff]  }
 0x232   : > { %6658 = vmatpush3.bf16.msra.mxu1 %v7590_v36 }
 0x233   : > { %6659 = vmatprep.subr.bf16.mxu1 %v7592_v5 }
 0x234   : > { %6626 = vmatpush3.bf16.msra.mxu0 %v7591_v34  ;;  %v10262_v8 = vpop.f32.mrf.mxu0 }
 0x235   : > { %5567 = vmatmul.mubr.bf16.gmra.mxu1 %v10891_v19  ;;  %6691 = vmatprep.subr.bf16.mxu0 %v7594_v61  ;;  %v10320_v36 = vpop.f32.mrf.mxu1  ;;  %v7621_v61 = vld [vmem:[%s10821_s3 + $0x6c8] ss:$12 sps:$4 sm:$0xff]  }
 0x236   : > { %6660 = vmatpush3.bf16.msra.mxu1 %v7593_v60  ;;  %5574 = vmatprep.mubr.bf16.mxu1 %v10892_v20  ;;  %v10278_v49 = vpop.f32.mrf.mxu0  ;;  %v7622_v60 = vld [vmem:[%s10821_s3 + $0x7e8] ss:$12 sps:$4 sm:$0xff]   ;;  %v7627_v20 = vld [vmem:[%s10821_s3 + $0x7b8] ss:$12 sps:$4 sm:$0xff]  }
 0x237   : > { %5616 = vmatmul.mubr.bf16.vlgmr.msra.gmra.mxu0 %v9606_v25  ;;  %6661 = vmatprep.subr.bf16.mxu1 %v7596_v45  ;;  %v7601_v25 = vld [vmem:[%s10821_s3 + $0x4a0] ss:$12 sps:$4 sm:$0xff]   ;;  %v10336_v34 = vpop.f32.mrf.mxu1 }
 0x238   : > { %5623 = vmatprep.mubr.bf16.mxu0 %v9624_v14  ;;  %6692 = vmatpush3.bf16.msra.mxu0 %v7595_v13  ;;  %v7604_v14 = vld [vmem:[%s10821_s3 + $0x548] ss:$12 sps:$4 sm:$0xff]   ;;  %v10294_v33 = vpop.f32.mrf.mxu0 }
 0x239   : > { %6693 = vmatprep.subr.bf16.mxu0 %v7598_v18  ;;  %v10356_v13 = vpop.f32.mrf.mxu1  ;;  %v7626_v18 = vld [vmem:[%s10821_s3 + $0x878] ss:$12 sps:$4 sm:$0xff]  }
 0x23a   : > { %6662 = vmatpush3.bf16.msra.mxu1 %v7597_v51  ;;  %v10310_v31 = vpop.f32.mrf.mxu0 }
 0x23b   : > { %6663 = vmatprep.subr.bf16.mxu1 %v7600_v57  ;;  %v7628_v57 = vld [vmem:[%s10821_s3 + $0x860] ss:$12 sps:$4 sm:$0xff]  }
 0x23c   : > { %6694 = vmatpush3.bf16.msra.mxu0 %v7599_v53  ;;  %v10328_v5 = vpop.f32.mrf.mxu0 }
 0x23d   : > { %5575 = vmatmul.mubr.bf16.gmra.mxu1 %v10893_v17  ;;  %6695 = vmatprep.subr.bf16.mxu0 %v7602_v0 }
 0x23e   : > { %6664 = vmatpush3.bf16.msra.mxu1 %v7601_v25  ;;  %5680 = vmatprep.mubr.bf16.mxu1 %v10894_v7  ;;  %v10346_v45 = vpop.f32.mrf.mxu0 }
 0x23f   : > { %5624 = vmatmul.mubr.bf16.gmra.mxu0 %v9666_v37  ;;  %6665 = vmatprep.subr.bf16.mxu1 %v7604_v14  ;;  %v7610_v37 = vld [vmem:[%s10821_s3 + $0x830] ss:$12 sps:$4 sm:$0xff]  }
 0x240   : > { %5631 = vmatprep.mubr.bf16.mxu0 %v9675_v41  ;;  %6696 = vmatpush3.bf16.msra.mxu0 %v7603_v44  ;;  %v7612_v41 = vld [vmem:[%s10821_s3 + $0x8d8] ss:$12 sps:$4 sm:$0xff]   ;;  %v10361_v19 = vpop.f32.mrf.mxu0 }
 0x241   : > { %6697 = vmatprep.subr.bf16.mxu0 %v7606_v27 }
 0x242   : > { %6666 = vmatpush3.bf16.msra.mxu1 %v7605_v9  ;;  %v10373_v51 = vpop.f32.mrf.mxu0 }
 0x243   : > { %6731 = vmatprep.subr.bf16.mxu1 %v7608_v35 }
 0x244   : > { %6698 = vmatpush3.bf16.msra.mxu0 %v7607_v6 }
 0x245   : > { %5681 = vmatmul.mubr.bf16.vlgmr.msra.gmra.mxu1 %v9621_v12  ;;  %6699 = vmatprep.subr.bf16.mxu0 %v7609_v30  ;;  %v7616_v12 = vld [vmem:[%s10821_s3 + $0x8c0] ss:$12 sps:$4 sm:$0xff]  }
 0x246   : > { %6732 = vmatpush3.bf16.msra.mxu1 %v7610_v37  ;;  %5688 = vmatprep.mubr.bf16.mxu1 %v9629_v40  ;;  %v7615_v40 = vld [vmem:[%s10821_s3 + $0x638] ss:$12 sps:$4 sm:$0xff]  }
 0x247   : > { %5632 = vmatmul.mubr.bf16.gmra.mxu0 %v9724_v2  ;;  %6733 = vmatprep.subr.bf16.mxu1 %v7612_v41  ;;  %v7618_v2 = vld [vmem:[%s10821_s3 + $0x800] ss:$12 sps:$4 sm:$0xff]  }
 0x248   : > { %5639 = vmatprep.mubr.bf16.mxu0 %v9735_v43  ;;  %6700 = vmatpush3.bf16.msra.mxu0 %v7611_v24  ;;  %v7620_v43 = vld [vmem:[%s10821_s3 + $0x8a8] ss:$12 sps:$4 sm:$0xff]  }
 0x249   : > { %6701 = vmatprep.subr.bf16.mxu0 %v7613_v46 }
 0x24a   : > { %6734 = vmatpush3.bf16.msra.mxu1 %v7614_v23 }
 0x24b   : > { %6735 = vmatprep.subr.bf16.mxu1 %v7616_v12 }
 0x24c   : > { %6702 = vmatpush3.bf16.msra.mxu0 %v7615_v40 }
 0x24d   : > { %5689 = vmatmul.mubr.bf16.gmra.mxu1 %v9678_v50  ;;  %6703 = vmatprep.subr.bf16.mxu0 %v7617_v47  ;;  %v7624_v50 = vld [vmem:[%s10821_s3 + $0x890] ss:$12 sps:$4 sm:$0xff]  }
 0x24e   : > { %6736 = vmatpush3.bf16.msra.mxu1 %v7618_v2  ;;  %5696 = vmatprep.mubr.bf16.mxu1 %v9691_v54  ;;  %v7623_v54 = vld [vmem:[%s10821_s3 + $0x608] ss:$12 sps:$4 sm:$0xff]  }
 0x24f   : > { %5640 = vmatmul.mubr.bf16.gmra.mxu0 %v9770_v3  ;;  %6737 = vmatprep.subr.bf16.mxu1 %v7620_v43  ;;  %v7625_v3 = vld [vmem:[%s10821_s3 + $0x7d0] ss:$12 sps:$4 sm:$0xff]  }
 0x250   : > { %6704 = vmatpush3.bf16.msra.mxu0 %v7619_v63  ;;  %5745 = vmatprep.mubr.bf16.mxu0 %v9872_v15  ;;  %v10366_v15 = vpop.f32.mrf.mxu1 }
 0x251   : > { %6705 = vmatprep.subr.bf16.mxu0 %v7621_v61 }
 0x252   : > { %6738 = vmatpush3.bf16.msra.mxu1 %v7622_v60  ;;  %v10380_v53 = vpop.f32.mrf.mxu1 }
 0x253   : > { %6739 = vmatprep.subr.bf16.mxu1 %v7624_v50 }
 0x254   : > { %6706 = vmatpush3.bf16.msra.mxu0 %v7623_v54  ;;  %v10390_v0 = vpop.f32.mrf.mxu1 }
 0x255   : > { %5697 = vmatmul.mubr.bf16.gmra.mxu1 %v9730_v59  ;;  %v7629_v59 = vld [vmem:[%s10821_s3 + $0x7a0] ss:$12 sps:$4 sm:$0xff]  }
 0x256   : > { %6740 = vmatpush3.bf16.msra.mxu1 %v7625_v3  ;;  %5704 = vmatprep.mubr.bf16.mxu1 %v9745_v38  ;;  %v10385_v38 = vpop.f32.mrf.mxu0  ;;  %v10401_v14 = vpop.f32.mrf.mxu1 }
 0x257   : > { %5746 = vmatmul.mubr.bf16.vlgmr.msra.gmra.mxu0 %v9968_v11  ;;  %6741 = vmatprep.subr.bf16.mxu1 %v7626_v18  ;;  %v7630_v11 = vld [vmem:[%s10821_s3 + $0x848] ss:$12 sps:$4 sm:$0xff]  }
 0x258   : > { %5753 = vmatprep.mubr.bf16.mxu0 %v9979_v1  ;;  %v7631_v1 = vld [vmem:[%s10821_s3 + $0x788] ss:$12 sps:$4 sm:$0xff]   ;;  %v10397_v25 = vpop.f32.mrf.mxu0 }
 0x25a   : > { %6742 = vmatpush3.bf16.msra.mxu1 %v7627_v20  ;;  %v10403_v44 = vpop.f32.mrf.mxu0 }
 0x25b   : > { %6743 = vmatprep.subr.bf16.mxu1 %v7628_v57  ;;  %v10482_v57 = vld [vmem:[%s10822_s4] sm:$0x7] }
 0x25c   : > { %10904 = vst [vmem:[#allocation16_spill] sm:$0xff] %v10482_v57 }
 0x25d   : > { %5705 = vmatmul.mubr.bf16.gmra.mxu1 %v9775_v55  ;;  %v10405_v55 = vpop.f32.mrf.mxu1 }
 0x25e   : > { %6744 = vmatpush3.bf16.msra.mxu1 %v7629_v59  ;;  %5810 = vmatprep.mubr.bf16.mxu1 %v10026_v42  ;;  %v10409_v42 = vpop.f32.mrf.mxu0 }
 0x25f   : > { %5754 = vmatmul.mubr.bf16.gmra.mxu0 %v10004_v21  ;;  %6745 = vmatprep.subr.bf16.mxu1 %v7630_v11  ;;  %v10413_v21 = vpop.f32.mrf.mxu1 }
 0x260   : > { %5761 = vmatprep.mubr.bf16.mxu0 %v10010_v28  ;;  %v10415_v28 = vpop.f32.mrf.mxu0 }
 0x261   : > { %v10417_v17 = vpop.f32.mrf.mxu1 }
 0x262   : > { %6746 = vmatpush3.bf16.msra.mxu1 %v7631_v1  ;;  %v10421_v27 = vpop.f32.mrf.mxu0  ;;  %v10490_v1 = vrot.slane %v10482_v57, %v10873_v10 }
 0x265   : > { %5811 = vmatmul.mubr.bf16.vlgmr.msra.gmra.mxu1 %v10034_v26  ;;  %v10424_v26 = vpop.f32.mrf.mxu1 }
 0x266   : > { %5818 = vmatprep.mubr.bf16.mxu1 %v10070_v4  ;;  %v10426_v4 = vpop.f32.mrf.mxu0 }
 0x267   : > { %5762 = vmatmul.mubr.bf16.gmra.mxu0 %v10044_v58  ;;  %v10428_v58 = vpop.f32.mrf.mxu1 }
 0x268   : > { %5769 = vmatprep.mubr.bf16.mxu0 %v10051_v32  ;;  %v10432_v32 = vpop.f32.mrf.mxu0 }
 0x269   : > { %10895 = vst [vmem:[#allocation6_spill] sm:$0xff] %v10432_v32  ;;  %v10434_v7 = vpop.f32.mrf.mxu1 }
 0x26d   : > { %5819 = vmatmul.mubr.bf16.gmra.mxu1 %v10076_v39 }
 0x26e   : > { %5826 = vmatprep.mubr.bf16.mxu1 %v10108_v62  ;;  %v10436_v62 = vpop.f32.mrf.mxu1 }
 0x26f   : > { %5770 = vmatmul.mubr.bf16.gmra.mxu0 %v10086_v16  ;;  %10896 = vst [vmem:[#allocation5_spill] sm:$0xff] %v10436_v62 }
 0x270   : > { %v10439_v16 = vpop.f32.mrf.mxu1 }
 0x271   : > { %10897 = vst [vmem:[#allocation11_spill] sm:$0xff] %v10439_v16 }
 0x272   : > { %v10441_v6 = vpop.f32.mrf.mxu1 }
 0x273   : > { %10898 = vst [vmem:[#allocation7_spill] sm:$0xff] %v10441_v6  ;;  %v10496_v6 = vrot.slane %v10482_v57, %v8745_v56  ;;  %v5054_v56 = vadd.f32 %v10294_v33, %v10490_v1 }
 0x275   : > { %5827 = vmatmul.mubr.bf16.gmra.mxu1 %v10114_v52  ;;  %v5195_v39 = vpop.f32.mrf.mxu0  ;;  %v5056_v32 = vadd.f32 %v10310_v31, %v10496_v6  ;;  %v5062_v33 = vadd.f32 %v10346_v45, %v10496_v6 }
 0x276   : > { %5834 = vmatprep.mubr.bf16.mxu1 %v10142_v48  ;;  %v5268_v37 = vpop.f32.mrf.mxu1 }
 0x277   : > { %v5197_v9 = vpop.f32.mrf.mxu0  ;;  %v5135_v45 = vadd.f32 %v10390_v0, %v5062_v33 }
 0x278   : > { %v5270_v48 = vpop.f32.mrf.mxu1 }
 0x279   : > { %v5199_v35 = vpop.f32.mrf.mxu0 }
 0x27a   : > { %v5272_v24 = vpop.f32.mrf.mxu1 }
 0x27b   : > { %v5201_v30 = vpop.f32.mrf.mxu0 }
 0x27c   : > { %v10449_v23 = vpop.f32.mrf.mxu1 }
 0x27d   : > { %5835 = vmatmul.mubr.bf16.gmra.mxu1 %v10147_v29  ;;  %v10443_v52 = vpop.f32.mrf.mxu0 }
 0x27e   : > { %v10453_v29 = vpop.f32.mrf.mxu1 }
 0x27f   : > { %v10445_v41 = vpop.f32.mrf.mxu0 }
 0x280   : > { %v10457_v47 = vpop.f32.mrf.mxu1  ;;  %v5208_v0 = vadd.f32 %v10445_v41, %v5135_v45 }
 0x281   : > { %v10447_v46 = vpop.f32.mrf.mxu0 }
 0x282   : > { %v10461_v43 = vpop.f32.mrf.mxu1  ;;  %v5281_v33 = vadd.f32 %v10457_v47, %v5208_v0 }
 0x283   : > { %v10451_v12 = vpop.f32.mrf.mxu0 }
 0x284   : > { %v10465_v61 = vpop.f32.mrf.mxu1 }
 0x285   : > { %v10455_v40 = vpop.f32.mrf.mxu0 }
 0x286   : > { %v10469_v50 = vpop.f32.mrf.mxu1 }
 0x287   : > { %v10459_v2 = vpop.f32.mrf.mxu0 }
 0x288   : > { %v10473_v3 = vpop.f32.mrf.mxu1 }
 0x289   : > { %v10463_v63 = vpop.f32.mrf.mxu0  ;;  %10901 = vst [vmem:[#allocation8_spill] sm:$0xff] %v10473_v3 }
 0x28a   : > { %v10477_v20 = vpop.f32.mrf.mxu1 }
 0x28b   : > { %v10467_v60 = vpop.f32.mrf.mxu0  ;;  %10903 = vst [vmem:[#allocation14_spill] sm:$0xff] %v10477_v20 }
 0x28c   : > { %10899 = vst [vmem:[#allocation15_spill] sm:$0xff] %v10467_v60  ;;  %v10486_v11 = vpop.f32.mrf.mxu1  ;;  %v5060_v60 = vadd.f32 %v10328_v5, %v10490_v1 }
 0x28d   : > { %v10471_v54 = vpop.f32.mrf.mxu0  ;;  %10906 = vst [vmem:[#allocation20_spill] sm:$0xff] %v10486_v11  ;;  %v5052_v11 = vadd.f32 %v10278_v49, %v10496_v6 }
 0x28e   : > { %10900 = vst [vmem:[#allocation12_spill] sm:$0xff] %v10471_v54  ;;  %v5050_v54 = vadd.f32 %v10262_v8, %v10490_v1 }
 0x28f   : > { %v10475_v18 = vpop.f32.mrf.mxu0 }
 0x290   : > { %10902 = vst [vmem:[#allocation18_spill] sm:$0xff] %v10475_v18  ;;  %v10498_v18 = vpop.f32.mrf.mxu1 }
 0x291   : > { %v10484_v59 = vpop.f32.mrf.mxu0  ;;  %10908 = vst [vmem:[#allocation19_spill] sm:$0xff] %v10498_v18  ;;  %v5125_v18 = vadd.f32 %v10336_v34, %v5052_v11  ;;  %v5129_v34 = vadd.f32 %v10366_v15, %v5056_v32 }
 0x292   : > { %10905 = vst [vmem:[#allocation9_spill] sm:$0xff] %v10484_v59  ;;  %v10504_v20 = vpop.f32.mrf.mxu1  ;;  %v10915_v0 = vld [vmem:[#allocation14_spill] sm:$0xff] }
 0x293   : > { %v10492_v22 = vpop.f32.mrf.mxu0  ;;  %10909 = vst [vmem:[#allocation10_spill] sm:$0xff] %v10504_v20  ;;  %v5127_v20 = vadd.f32 %v10356_v13, %v5054_v56  ;;  %v5133_v56 = vadd.f32 %v10380_v53, %v5060_v60  ;;  %v5070_v53 = vadd.f32 %v10385_v38, %v10490_v1 }
 0x294   : > { %10907 = vst [vmem:[#allocation17_spill] sm:$0xff] %v10492_v22  ;;  %v5123_v22 = vadd.f32 %v10320_v36, %v5050_v54  ;;  %v10513_v62 = vpop.f32.mrf.mxu1  ;;  %v5198_v36 = vadd.f32 %v5197_v9, %v5125_v18  ;;  %v5202_v9 = vadd.f32 %v5201_v30, %v5129_v34 }
 0x295   : > { %10910 = vst [vmem:[#allocation24_spill] sm:$0xff] %v10513_v62  ;;  %v5066_v62 = vadd.f32 %v10373_v51, %v10496_v6 }
 0x296   : > { %v5196_v8 = vadd.f32 %v5195_v39, %v5123_v22  ;;  %v5200_v22 = vadd.f32 %v5199_v35, %v5127_v20  ;;  %v5064_v39 = vadd.f32 %v10361_v19, %v10490_v1  ;;  %v10525_v11 = vpop.f32.mrf.mxu1  ;;  %v5271_v5 = vadd.f32 %v5270_v48, %v5198_v36 }
 0x297   : > { %v5206_v35 = vadd.f32 %v10443_v52, %v5133_v56  ;;  %v5139_v52 = vadd.f32 %v10405_v55, %v5066_v62  ;;  %v5074_v36 = vadd.f32 %v10403_v44, %v10490_v1 }
 0x298   : > { %v5269_v31 = vadd.f32 %v5268_v37, %v5196_v8  ;;  %v5273_v32 = vadd.f32 %v5272_v24, %v5200_v22  ;;  %v5137_v20 = vadd.f32 %v10401_v14, %v5064_v39  ;;  %v5072_v14 = vadd.f32 %v10397_v25, %v10496_v6 }
 0x299   : > { %v5143_v8 = vadd.f32 %v10413_v21, %v5070_v53  ;;  %v5212_v25 = vadd.f32 %v10451_v12, %v5139_v52  ;;  %v5147_v12 = vadd.f32 %v10424_v26, %v5074_v36  ;;  %v10913_v53 = vld [vmem:[#allocation5_spill] sm:$0xff] }
 0x29b   : > { %v5216_v44 = vadd.f32 %v10455_v40, %v5143_v8 }
 0x29d   : > { %v5289_v45 = vadd.f32 %v10469_v50, %v5216_v44 }
 0x2b6   : > { %v5341_v16 = vpop.f32.mrf.mxu0 }
 0x2b7   : > { %v5342_v18 = vadd.f32 %v5341_v16, %v5269_v31  ;;  %v5275_v16 = vadd.f32 %v10449_v23, %v5202_v9  ;;  %v5210_v23 = vadd.f32 %v10447_v46, %v5137_v20  ;;  %v5145_v46 = vadd.f32 %v10417_v17, %v5072_v14  ;;  %v10917_v14 = vld [vmem:[#allocation11_spill] sm:$0xff] }
 0x2b8   : > { %v5343_v59 = vpop.f32.mrf.mxu0 }
 0x2b9   : > { %v5344_v37 = vadd.f32 %v5343_v59, %v5271_v5  ;;  %v5279_v59 = vadd.f32 %v10453_v29, %v5206_v35  ;;  %v5283_v22 = vadd.f32 %v10461_v43, %v5210_v23  ;;  %v5285_v5 = vadd.f32 %v10465_v61, %v5212_v25  ;;  %v10911_v35 = vld [vmem:[#allocation8_spill] sm:$0xff] }
 0x2ba   : > { %v5345_v10 = vpop.f32.mrf.mxu0  ;;  %v10918_v23 = vld [vmem:[#allocation20_spill] sm:$0xff] }
 0x2bb   : > { %v5346_v60 = vadd.f32 %v5345_v10, %v5273_v32 }
 0x2bc   : > { %v5347_v57 = vpop.f32.mrf.mxu0 }
 0x2bd   : > { %v5348_v41 = vadd.f32 %v5347_v57, %v5275_v16  ;;  %v5076_v57 = vadd.f32 %v10409_v42, %v10496_v6  ;;  %v5218_v42 = vadd.f32 %v10459_v2, %v5145_v46  ;;  %v10922_v46 = vld [vmem:[#allocation9_spill] sm:$0xff] }
 0x2be   : > { %v5351_v49 = vpop.f32.mrf.mxu0 }
 0x2bf   : > { %v5352_v34 = vadd.f32 %v5351_v49, %v5279_v59  ;;  %v5080_v49 = vadd.f32 %v10415_v28, %v10490_v1  ;;  %v5149_v40 = vadd.f32 %v10428_v58, %v5076_v57  ;;  %v5220_v28 = vadd.f32 %v10463_v63, %v5147_v12  ;;  %v10924_v12 = vld [vmem:[#allocation17_spill] sm:$0xff] }
 0x2c0   : > { %v5353_v54 = vpop.f32.mrf.mxu0 }
 0x2c1   : > { %v5354_v39 = vadd.f32 %v5353_v54, %v5281_v33  ;;  %v5082_v54 = vadd.f32 %v10421_v27, %v10496_v6  ;;  %v5153_v2 = vadd.f32 %v10434_v7, %v5080_v49  ;;  %v10912_v27 = vld [vmem:[#allocation15_spill] sm:$0xff] }
 0x2c2   : > { %v5355_v13 = vpop.f32.mrf.mxu0 }
 0x2c3   : > { %v5356_v9 = vadd.f32 %v5355_v13, %v5283_v22  ;;  %v5084_v13 = vadd.f32 %v10426_v4, %v10490_v1  ;;  %v5155_v63 = vadd.f32 %v10913_v53, %v5082_v54  ;;  %v10916_v4 = vld [vmem:[#allocation12_spill] sm:$0xff] }
 0x2c4   : > { %v5357_v3 = vpop.f32.mrf.mxu0  ;;  %v5226_v1 = vadd.f32 %v10916_v4, %v5153_v2 }
 0x2c5   : > { %v5414_v15 = vpop.f32.mrf.mxu1 }
 0x2c6   : > { %v5415_v19 = vadd.f32 %v5414_v15, %v5342_v18  ;;  %v5361_v48 = vpop.f32.mrf.mxu0  ;;  %v5358_v15 = vadd.f32 %v5357_v3, %v5285_v5  ;;  %v10914_v3 = vld [vmem:[#allocation6_spill] sm:$0xff] }
 0x2c7   : > { %v5416_v30 = vpop.f32.mrf.mxu1  ;;  %v5362_v20 = vadd.f32 %v5361_v48, %v5289_v45  ;;  %v5157_v48 = vadd.f32 %v10917_v14, %v5084_v13 }
 0x2c8   : > { %5843 = vst [vmem:[%s10537_s12] sm:$0xff] %v5415_v19  ;;  %v5417_v51 = vadd.f32 %v5416_v30, %v5344_v37  ;;  %v5363_v38 = vpop.f32.mrf.mxu0  ;;  %v5291_v37 = vadd.f32 %v10911_v35, %v5218_v42  ;;  %v5222_v19 = vadd.f32 %v10912_v27, %v5149_v40  ;;  %v5086_v30 = vadd.f32 %v10914_v3, %v10496_v6 }
 0x2c9   : > { %v5418_v24 = vpop.f32.mrf.mxu1  ;;  %v5230_v57 = vadd.f32 %v10922_v46, %v5157_v48 }
 0x2ca   : > { %5844 = vst [vmem:[%s10537_s12 + $0x8] sm:$0xff] %v5417_v51  ;;  %v5419_v10 = vadd.f32 %v5418_v24, %v5346_v60  ;;  %v5365_v55 = vpop.f32.mrf.mxu0  ;;  %v5293_v60 = vadd.f32 %v10915_v0, %v5220_v28  ;;  %v5364_v51 = vadd.f32 %v5363_v38, %v5291_v37 }
 0x2cb   : > { %v5420_v62 = vpop.f32.mrf.mxu1 }
 0x2cc   : > { %5846 = vst [vmem:[%s10537_s12 + $0x18] sm:$0xff] %v5419_v10  ;;  %v5421_v29 = vadd.f32 %v5420_v62, %v5348_v41  ;;  %v5367_v21 = vpop.f32.mrf.mxu0  ;;  %v5295_v41 = vadd.f32 %v10918_v23, %v5222_v19  ;;  %v10919_v10 = vld [vmem:[#allocation18_spill] sm:$0xff]  ;;  %v5366_v6 = vadd.f32 %v5365_v55, %v5293_v60  ;;  %v10920_v62 = vld [vmem:[#allocation7_spill] sm:$0xff] }
 0x2cd   : > { %v5424_v31 = vpop.f32.mrf.mxu1  ;;  %v5228_v8 = vadd.f32 %v10919_v10, %v5155_v63  ;;  %v5159_v33 = vadd.f32 %v10920_v62, %v5086_v30  ;;  %v10923_v55 = vld [vmem:[#allocation10_spill] sm:$0xff] }
 0x2ce   : > { %5847 = vst [vmem:[%s10537_s12 + $0x20] sm:$0xff] %v5421_v29  ;;  %v5425_v47 = vadd.f32 %v5424_v31, %v5352_v34  ;;  %v5371_v17 = vpop.f32.mrf.mxu0  ;;  %v10921_v34 = vld [vmem:[#allocation19_spill] sm:$0xff]  ;;  %v5368_v31 = vadd.f32 %v5367_v21, %v5295_v41 }
 0x2cf   : > { %v5426_v56 = vpop.f32.mrf.mxu1  ;;  %v5299_v29 = vadd.f32 %v10921_v34, %v5226_v1  ;;  %v5232_v49 = vadd.f32 %v10924_v12, %v5159_v33 }
 0x2d0   : > { %5849 = vst [vmem:[%s10537_s12 + $0x30] sm:$0xff] %v5425_v47  ;;  %v5427_v43 = vadd.f32 %v5426_v56, %v5354_v39  ;;  %v5373_v26 = vpop.f32.mrf.mxu0  ;;  %v5301_v47 = vadd.f32 %v10923_v55, %v5228_v8 }
 0x2d1   : > { %v5428_v18 = vpop.f32.mrf.mxu1  ;;  %v5372_v56 = vadd.f32 %v5371_v17, %v5299_v29  ;;  %v5305_v28 = vadd.f32 %v10525_v11, %v5232_v49 }
 0x2d2   : > { %5850 = vst [vmem:[%s10537_s12 + $0x38] sm:$0xff] %v5427_v43  ;;  %v5429_v61 = vadd.f32 %v5428_v18, %v5356_v9  ;;  %v5375_v58 = vpop.f32.mrf.mxu0  ;;  %v10925_v43 = vld [vmem:[#allocation24_spill] sm:$0xff]  ;;  %v5374_v21 = vadd.f32 %v5373_v26, %v5301_v47 }
 0x2d3   : > { %v5430_v32 = vpop.f32.mrf.mxu1  ;;  %v5303_v40 = vadd.f32 %v10925_v43, %v5230_v57 }
 0x2d4   : > { %5852 = vst [vmem:[%s10537_s12 + $0x48] sm:$0xff] %v5429_v61  ;;  %v5431_v50 = vadd.f32 %v5430_v32, %v5358_v15  ;;  %v5377_v7 = vpop.f32.mrf.mxu0 }
 0x2d5   : > { %v5434_v16 = vpop.f32.mrf.mxu1  ;;  %v5376_v15 = vadd.f32 %v5375_v58, %v5303_v40  ;;  %v5378_v13 = vadd.f32 %v5377_v7, %v5305_v28 }
 0x2d6   : > { %5853 = vst [vmem:[%s10537_s12 + $0x50] sm:$0xff] %v5431_v50  ;;  %v5435_v52 = vadd.f32 %v5434_v16, %v5362_v20 }
 0x2d7   : > { %v10583_v24 = vpop.f32.mrf.mxu0  ;;  %v5436_v59 = vpop.f32.mrf.mxu1 }
 0x2d8   : > { %5855 = vst [vmem:[%s10537_s12 + $0x60] sm:$0xff] %v5435_v52  ;;  %v5437_v36 = vadd.f32 %v5436_v59, %v5364_v51 }
 0x2d9   : > { %v10589_v25 = vpop.f32.mrf.mxu0  ;;  %v5438_v38 = vpop.f32.mrf.mxu1 }
 0x2da   : > { %5856 = vst [vmem:[%s10537_s12 + $0x68] sm:$0xff] %v5437_v36  ;;  %v5439_v22 = vadd.f32 %v5438_v38, %v5366_v6 }
 0x2db   : > { %v10594_v44 = vpop.f32.mrf.mxu0  ;;  %v5440_v39 = vpop.f32.mrf.mxu1 }
 0x2dc   : > { %5858 = vst [vmem:[%s10537_s12 + $0x78] sm:$0xff] %v5439_v22  ;;  %v5441_v5 = vadd.f32 %v5440_v39, %v5368_v31 }
 0x2dd   : > { %v10599_v42 = vpop.f32.mrf.mxu0  ;;  %v5444_v9 = vpop.f32.mrf.mxu1 }
 0x2de   : > { %5859 = vst [vmem:[%s10537_s12 + $0x80] sm:$0xff] %v5441_v5  ;;  %v5445_v54 = vadd.f32 %v5444_v9, %v5372_v56 }
 0x2df   : > { %v10603_v18 = vpop.f32.mrf.mxu0  ;;  %v5446_v45 = vpop.f32.mrf.mxu1 }
 0x2e0   : > { %5861 = vst [vmem:[%s10537_s12 + $0x90] sm:$0xff] %v5445_v54  ;;  %v5447_v17 = vadd.f32 %v5446_v45, %v5374_v21 }
 0x2e1   : > { %v10607_v61 = vpop.f32.mrf.mxu0  ;;  %v5448_v2 = vpop.f32.mrf.mxu1 }
 0x2e2   : > { %5862 = vst [vmem:[%s10537_s12 + $0x98] sm:$0xff] %v5447_v17  ;;  %v5449_v32 = vadd.f32 %v5448_v2, %v5376_v15 }
 0x2e3   : > { %v10610_v35 = vpop.f32.mrf.mxu0  ;;  %v5450_v26 = vpop.f32.mrf.mxu1 }
 0x2e4   : > { %5864 = vst [vmem:[%s10537_s12 + $0xa8] sm:$0xff] %v5449_v32  ;;  %v5451_v37 = vadd.f32 %v5450_v26, %v5378_v13 }
 0x2e5   : > { %v10613_v27 = vpop.f32.mrf.mxu0  ;;  %v6587_v19 = vpop.f32.mrf.mxu1 }
 0x2e6   : > { %5865 = vst [vmem:[%s10537_s12 + $0xb0] sm:$0xff] %v5451_v37  ;;  %v10940_v37 = vld [vmem:[#allocation13_spill] sm:$0xff] }
 0x2e7   : > { %v10616_v20 = vpop.f32.mrf.mxu0  ;;  %v6588_v11 = vpop.f32.mrf.mxu1 }
 0x2e9   : > { %v10618_v58 = vpop.f32.mrf.mxu0  ;;  %v10620_v50 = vpop.f32.mrf.mxu1 }
 0x2eb   : > { %v10622_v53 = vpop.f32.mrf.mxu0  ;;  %v6591_v63 = vpop.f32.mrf.mxu1 }
 0x2ed   : > { %v10624_v3 = vpop.f32.mrf.mxu0  ;;  %v10626_v30 = vpop.f32.mrf.mxu1 }
 0x2ef   : > { %v10628_v7 = vpop.f32.mrf.mxu0  ;;  %v10630_v16 = vpop.f32.mrf.mxu1 }
 0x2f1   : > { %v10632_v0 = vpop.f32.mrf.mxu0  ;;  %v10634_v60 = vpop.f32.mrf.mxu1 }
 0x2f3   : > { %v10636_v4 = vpop.f32.mrf.mxu0  ;;  %v10638_v1 = vpop.f32.mrf.mxu1 }
 0x2f4   : > { %10926 = vst [vmem:[#allocation21_spill] sm:$0xff] %v10636_v4 }
 0x2f5   : > { %v10640_v51 = vpop.f32.mrf.mxu0  ;;  %v10642_v52 = vpop.f32.mrf.mxu1 }
 0x2f6   : > { %10927 = vst [vmem:[#allocation22_spill] sm:$0xff] %v10640_v51 }
 0x2f7   : > { %v6627_v14 = vpop.f32.mrf.mxu0  ;;  %v10644_v48 = vpop.f32.mrf.mxu1 }
 0x2f9   : > { %v6628_v59 = vpop.f32.mrf.mxu0  ;;  %v10646_v23 = vpop.f32.mrf.mxu1 }
 0x2fb   : > { %v6630_v41 = vpop.f32.mrf.mxu0  ;;  %v10648_v10 = vpop.f32.mrf.mxu1 }
 0x2fd   : > { %v6631_v8 = vpop.f32.mrf.mxu0  ;;  %v10650_v6 = vpop.f32.mrf.mxu1 }
 0x2fe   : > { %10928 = vst [vmem:[#allocation23_spill] sm:$0xff] %v10650_v6 }
 0x2ff   : > { %v6633_v36 = vpop.f32.mrf.mxu0  ;;  %v10652_v62 = vpop.f32.mrf.mxu1 }
 0x300   : > { %10929 = vst [vmem:[#allocation25_spill] sm:$0xff] %v10652_v62 }
 0x301   : > { %v6634_v33 = vpop.f32.mrf.mxu0  ;;  %v10654_v38 = vpop.f32.mrf.mxu1 }
 0x302   : > { %10930 = vst [vmem:[#allocation8_spill] sm:$0xff] %v10654_v38 }
 0x303   : > { %v10656_v34 = vpop.f32.mrf.mxu0  ;;  %v10658_v29 = vpop.f32.mrf.mxu1 }
 0x304   : > { %10931 = vst [vmem:[#allocation15_spill] sm:$0xff] %v10658_v29  ;;  %v10941_v29 = vld [vmem:[#allocation16_spill] sm:$0xff] }
 0x305   : > { %v10660_v46 = vpop.f32.mrf.mxu0  ;;  %v6667_v57 = vpop.f32.mrf.mxu1  ;;  %v10692_v38 = vrot.slane %v10941_v29, %v10940_v37  ;;  %v6592_v37 = vadd.f32 %v6591_v63, %v10620_v50 }
 0x307   : > { %v10662_v31 = vpop.f32.mrf.mxu0  ;;  %v6668_v22 = vpop.f32.mrf.mxu1 }
 0x309   : > { %v10664_v39 = vpop.f32.mrf.mxu0  ;;  %v6670_v55 = vpop.f32.mrf.mxu1 }
 0x30b   : > { %v10666_v47 = vpop.f32.mrf.mxu0  ;;  %v6671_v12 = vpop.f32.mrf.mxu1 }
 0x30c   : > { %10932 = vst [vmem:[#allocation5_spill] sm:$0xff] %v10666_v47  ;;  %v6672_v50 = vadd.f32 %v6671_v12, %v6670_v55 }
 0x30d   : > { %v10668_v49 = vpop.f32.mrf.mxu0  ;;  %v6673_v56 = vpop.f32.mrf.mxu1 }
 0x30e   : > { %10933 = vst [vmem:[#allocation6_spill] sm:$0xff] %v10668_v49 }
 0x30f   : > { %v10670_v5 = vpop.f32.mrf.mxu0  ;;  %v6674_v9 = vpop.f32.mrf.mxu1 }
 0x310   : > { %10934 = vst [vmem:[#allocation14_spill] sm:$0xff] %v10670_v5  ;;  %v6589_v5 = vadd.f32 %v6588_v11, %v6587_v19  ;;  %v6675_v12 = vadd.f32 %v6674_v9, %v6673_v56 }
 0x311   : > { %v10672_v43 = vpop.f32.mrf.mxu0  ;;  %v10674_v40 = vpop.f32.mrf.mxu1 }
 0x312   : > { %10935 = vst [vmem:[#allocation12_spill] sm:$0xff] %v10672_v43 }
 0x313   : > { %v10676_v21 = vpop.f32.mrf.mxu0  ;;  %v10678_v54 = vpop.f32.mrf.mxu1 }
 0x314   : > { %10936 = vst [vmem:[#allocation11_spill] sm:$0xff] %v10676_v21  ;;  %v6549_v21 = vadd.f32 %v10589_v25, %v10583_v24  ;;  %v6669_v24 = vadd.f32 %v6668_v22, %v6667_v57  ;;  %v6555_v25 = vadd.f32 %v10607_v61, %v10603_v18  ;;  %v6558_v18 = vadd.f32 %v10613_v27, %v10610_v35 }
 0x315   : > { %v10680_v45 = vpop.f32.mrf.mxu0  ;;  %v10682_v28 = vpop.f32.mrf.mxu1  ;;  %v6635_v61 = vadd.f32 %v6634_v33, %v6633_v36  ;;  %v6561_v35 = vadd.f32 %v10618_v58, %v10616_v20  ;;  %v6678_v20 = vadd.f32 %v10678_v54, %v10674_v40  ;;  %v6604_v40 = vadd.f32 %v10648_v10, %v10646_v23  ;;  %v10946_v10 = vld [vmem:[#allocation23_spill] sm:$0xff] }
 0x316   : > { %10937 = vst [vmem:[#allocation20_spill] sm:$0xff] %v10680_v45  ;;  %v5488_v62 = vadd.f32 %v6549_v21, %v10692_v38  ;;  %v5496_v63 = vadd.f32 %v6555_v25, %v10692_v38 }
 0x317   : > { %v6707_v15 = vpop.f32.mrf.mxu0  ;;  %v10684_v17 = vpop.f32.mrf.mxu1 }
 0x318   : > { %v5553_v29 = vadd.f32 %v6589_v5, %v5488_v62 }
 0x319   : > { %v6708_v2 = vpop.f32.mrf.mxu0  ;;  %v10686_v13 = vpop.f32.mrf.mxu1 }
 0x31a   : > { %10938 = vst [vmem:[#allocation18_spill] sm:$0xff] %v10686_v13  ;;  %v6552_v13 = vadd.f32 %v10599_v42, %v10594_v44  ;;  %v6709_v47 = vadd.f32 %v6708_v2, %v6707_v15  ;;  %v6595_v44 = vadd.f32 %v10630_v16, %v10626_v30 }
 0x31b   : > { %v6710_v32 = vpop.f32.mrf.mxu0  ;;  %v10688_v26 = vpop.f32.mrf.mxu1 }
 0x31c   : > { %10939 = vst [vmem:[#allocation7_spill] sm:$0xff] %v10688_v26  ;;  %v6629_v26 = vadd.f32 %v6628_v59, %v6627_v14  ;;  %v5561_v15 = vadd.f32 %v6595_v44, %v5496_v63 }
 0x31d   : > { %v6711_v43 = vpop.f32.mrf.mxu0  ;;  %v10696_v45 = vpop.f32.mrf.mxu1 }
 0x31e   : > { %10942 = vst [vmem:[#allocation19_spill] sm:$0xff] %v10696_v45  ;;  %v5618_v21 = vadd.f32 %v6629_v26, %v5553_v29  ;;  %v6632_v45 = vadd.f32 %v6631_v8, %v6630_v41  ;;  %v6712_v41 = vadd.f32 %v6711_v43, %v6710_v32  ;;  %v5499_v26 = vadd.f32 %v6558_v18, %v10692_v38  ;;  %v10947_v18 = vld [vmem:[#allocation25_spill] sm:$0xff] }
 0x31f   : > { %v6713_v51 = vpop.f32.mrf.mxu0  ;;  %v10698_v4 = vpop.f32.mrf.mxu1  ;;  %v5626_v27 = vadd.f32 %v6635_v61, %v5561_v15  ;;  %v6607_v61 = vadd.f32 %v10947_v18, %v10946_v10  ;;  %v10950_v15 = vld [vmem:[#allocation21_spill] sm:$0xff] }
 0x320   : > { %10943 = vst [vmem:[#allocation9_spill] sm:$0xff] %v10698_v4  ;;  %v5491_v4 = vadd.f32 %v6552_v13, %v10692_v38  ;;  %v5683_v62 = vadd.f32 %v6669_v24, %v5618_v21 }
 0x321   : > { %v6714_v6 = vpop.f32.mrf.mxu0  ;;  %v10703_v49 = vpop.f32.mrf.mxu1  ;;  %v5691_v29 = vadd.f32 %v6675_v12, %v5626_v27 }
 0x322   : > { %v5556_v59 = vadd.f32 %v6592_v37, %v5491_v4  ;;  %v5748_v13 = vadd.f32 %v6709_v47, %v5683_v62  ;;  %v6598_v4 = vadd.f32 %v10638_v1, %v10634_v60  ;;  %v6638_v47 = vadd.f32 %v10660_v46, %v10656_v34 }
 0x323   : > { %v6716_v19 = vpop.f32.mrf.mxu0  ;;  %v10708_v11 = vpop.f32.mrf.mxu1  ;;  %v6601_v60 = vadd.f32 %v10644_v48, %v10642_v52  ;;  %v5504_v37 = vadd.f32 %v6561_v35, %v10692_v38  ;;  %v6564_v34 = vadd.f32 %v10624_v3, %v10622_v53  ;;  %v6681_v53 = vadd.f32 %v10684_v17, %v10682_v28 }
 0x324   : > { %v5621_v5 = vadd.f32 %v6632_v45, %v5556_v59  ;;  %v6715_v45 = vadd.f32 %v6714_v6, %v6713_v51  ;;  %v5564_v9 = vadd.f32 %v6598_v4, %v5499_v26  ;;  %v6641_v51 = vadd.f32 %v10664_v39, %v10662_v31  ;;  %v10945_v59 = vld [vmem:[#allocation6_spill] sm:$0xff] }
 0x325   : > { %v6717_v42 = vpop.f32.mrf.mxu0  ;;  %v6747_v14 = vpop.f32.mrf.mxu1  ;;  %v5569_v25 = vadd.f32 %v6601_v60, %v5504_v37  ;;  %v5507_v31 = vadd.f32 %v6564_v34, %v10692_v38  ;;  %v6567_v39 = vadd.f32 %v10632_v0, %v10628_v7 }
 0x326   : > { %v5686_v55 = vadd.f32 %v6672_v50, %v5621_v5  ;;  %v5629_v46 = vadd.f32 %v6638_v47, %v5564_v9  ;;  %v5756_v24 = vadd.f32 %v6715_v45, %v5691_v29  ;;  %v6718_v52 = vadd.f32 %v6717_v42, %v6716_v19  ;;  %v10954_v45 = vld [vmem:[#allocation8_spill] sm:$0xff]  ;;  %v10956_v9 = vld [vmem:[#allocation19_spill] sm:$0xff] }
 0x327   : > { %v6719_v57 = vpop.f32.mrf.mxu0  ;;  %v6748_v22 = vpop.f32.mrf.mxu1  ;;  %v5634_v19 = vadd.f32 %v6641_v51, %v5569_v25  ;;  %v10957_v29 = vld [vmem:[#allocation9_spill] sm:$0xff] }
 0x328   : > { %v6749_v8 = vadd.f32 %v6748_v22, %v6747_v14  ;;  %v5751_v43 = vadd.f32 %v6712_v41, %v5686_v55  ;;  %v5694_v54 = vadd.f32 %v6678_v20, %v5629_v46  ;;  %v10944_v14 = vld [vmem:[#allocation5_spill] sm:$0xff]  ;;  %v5572_v22 = vadd.f32 %v6604_v40, %v5507_v31  ;;  %v10949_v41 = vld [vmem:[#allocation7_spill] sm:$0xff] }
 0x329   : > { %v6720_v30 = vpop.f32.mrf.mxu0  ;;  %v6750_v16 = vpop.f32.mrf.mxu1  ;;  %v6644_v62 = vadd.f32 %v10945_v59, %v10944_v14  ;;  %v5699_v5 = vadd.f32 %v6681_v53, %v5634_v19  ;;  %v6687_v20 = vadd.f32 %v10957_v29, %v10956_v9 }
 0x32a   : > { %v5813_v2 = vadd.f32 %v6749_v8, %v5748_v13  ;;  %v5759_v50 = vadd.f32 %v6718_v52, %v5694_v54  ;;  %v6721_v63 = vadd.f32 %v6720_v30, %v6719_v57  ;;  %v10948_v13 = vld [vmem:[#allocation18_spill] sm:$0xff]  ;;  %v5512_v8 = vadd.f32 %v6567_v39, %v10692_v38  ;;  %v10953_v30 = vld [vmem:[#allocation12_spill] sm:$0xff] }
 0x32b   : > { %v6722_v36 = vpop.f32.mrf.mxu0  ;;  %v6751_v33 = vpop.f32.mrf.mxu1  ;;  %v6684_v7 = vadd.f32 %v10949_v41, %v10948_v13  ;;  %v10952_v57 = vld [vmem:[#allocation14_spill] sm:$0xff] }
 0x32c   : > { %5845 = vst [vmem:[%s10537_s12 + $0x10] sm:$0xff] %v5813_v2  ;;  %v6752_v32 = vadd.f32 %v6751_v33, %v6750_v16  ;;  %v10951_v16 = vld [vmem:[#allocation22_spill] sm:$0xff]  ;;  %v6647_v55 = vadd.f32 %v10953_v30, %v10952_v57  ;;  %v5637_v2 = vadd.f32 %v6644_v62, %v5572_v22  ;;  %v5764_v26 = vadd.f32 %v6721_v63, %v5699_v5 }
 0x32d   : > { %v6723_v1 = vpop.f32.mrf.mxu0  ;;  %v6753_v56 = vpop.f32.mrf.mxu1  ;;  %v6570_v4 = vadd.f32 %v10951_v16, %v10950_v15  ;;  %v5577_v33 = vadd.f32 %v6607_v61, %v5512_v8 }
 0x32e   : > { %v5816_v58 = vadd.f32 %v6752_v32, %v5751_v43  ;;  %v6724_v35 = vadd.f32 %v6723_v1, %v6722_v36  ;;  %v10955_v32 = vld [vmem:[#allocation15_spill] sm:$0xff]  ;;  %v10959_v36 = vld [vmem:[#allocation20_spill] sm:$0xff] }
 0x32f   : > { %v6754_v6 = vpop.f32.mrf.mxu1  ;;  %v6725_v21 = vpop.f32.mrf.mxu0  ;;  %v6610_v60 = vadd.f32 %v10955_v32, %v10954_v45  ;;  %v5515_v37 = vadd.f32 %v6570_v4, %v10692_v38  ;;  %v5642_v34 = vadd.f32 %v6647_v55, %v5577_v33  ;;  %v6690_v38 = vadd.f32 %v10708_v11, %v10703_v49 }
 0x330   : > { %5848 = vst [vmem:[%s10537_s12 + $0x28] sm:$0xff] %v5816_v58  ;;  %v6755_v48 = vadd.f32 %v6754_v6, %v6753_v56  ;;  %v5702_v56 = vadd.f32 %v6684_v7, %v5637_v2  ;;  %v10958_v6 = vld [vmem:[#allocation11_spill] sm:$0xff] }
 0x331   : > { %v6756_v44 = vpop.f32.mrf.mxu1  ;;  %v6726_v28 = vpop.f32.mrf.mxu0  ;;  %v6650_v1 = vadd.f32 %v10959_v36, %v10958_v6  ;;  %v5707_v40 = vadd.f32 %v6687_v20, %v5642_v34 }
 0x332   : > { %v5821_v3 = vadd.f32 %v6755_v48, %v5756_v24  ;;  %v5767_v46 = vadd.f32 %v6724_v35, %v5702_v56  ;;  %v6727_v24 = vadd.f32 %v6726_v28, %v6725_v21 }
 0x333   : > { %v6757_v42 = vpop.f32.mrf.mxu1  ;;  %v6728_v47 = vpop.f32.mrf.mxu0 }
 0x334   : > { %5851 = vst [vmem:[%s10537_s12 + $0x40] sm:$0xff] %v5821_v3  ;;  %v6758_v23 = vadd.f32 %v6757_v42, %v6756_v44  ;;  %v5580_v44 = vadd.f32 %v6610_v60, %v5515_v37  ;;  %v5772_v31 = vadd.f32 %v6727_v24, %v5707_v40 }
 0x335   : > { %v6759_v17 = vpop.f32.mrf.mxu1  ;;  %v6729_v48 = vpop.f32.mrf.mxu0 }
 0x336   : > { %v5824_v0 = vadd.f32 %v6758_v23, %v5759_v50  ;;  %v5645_v3 = vadd.f32 %v6650_v1, %v5580_v44  ;;  %v6730_v39 = vadd.f32 %v6729_v48, %v6728_v47 }
 0x337   : > { %v6760_v12 = vpop.f32.mrf.mxu1 }
 0x338   : > { %5854 = vst [vmem:[%s10537_s12 + $0x58] sm:$0xff] %v5824_v0  ;;  %v6761_v27 = vadd.f32 %v6760_v12, %v6759_v17  ;;  %v5710_v42 = vadd.f32 %v6690_v38, %v5645_v3 }
 0x339   : > { %v6762_v43 = vpop.f32.mrf.mxu1 }
 0x33a   : > { %v5829_v58 = vadd.f32 %v6761_v27, %v5764_v26  ;;  %v5775_v62 = vadd.f32 %v6730_v39, %v5710_v42 }
 0x33b   : > { %v6763_v51 = vpop.f32.mrf.mxu1 }
 0x33c   : > { %5857 = vst [vmem:[%s10537_s12 + $0x70] sm:$0xff] %v5829_v58  ;;  %v6764_v52 = vadd.f32 %v6763_v51, %v6762_v43 }
 0x33d   : > { %v6765_v25 = vpop.f32.mrf.mxu1 }
 0x33e   : > { %v5832_v54 = vadd.f32 %v6764_v52, %v5767_v46 }
 0x33f   : > { %v6766_v53 = vpop.f32.mrf.mxu1 }
 0x340   : > { %5860 = vst [vmem:[%s10537_s12 + $0x88] sm:$0xff] %v5832_v54  ;;  %v6767_v21 = vadd.f32 %v6766_v53, %v6765_v25 }
 0x341   : > { %v6768_v19 = vpop.f32.mrf.mxu1 }
 0x342   : > { %v5837_v14 = vadd.f32 %v6767_v21, %v5772_v31 }
 0x343   : > { %v6769_v59 = vpop.f32.mrf.mxu1 }
 0x344   : > { %5863 = vst [vmem:[%s10537_s12 + $0xa0] sm:$0xff] %v5837_v14  ;;  %v6770_v50 = vadd.f32 %v6769_v59, %v6768_v19 }
 0x346   : > { %v5840_v49 = vadd.f32 %v6770_v50, %v5775_v62 }
 0x348   : > { %5866 = vst [vmem:[%s10537_s12 + $0xb8] sm:$0xff] %v5840_v49 }
 0x349   : > { %7646 = shalt.err (!%p7643_p3)
}
 0x34a   : > { %s7647_s7 = scalar_lea.hbm %s10773_s23, 3072  ;;  %s7651_s10 = scalar_lea.hbm %s10823_s5, 6144 }
 0x34b   : > { %p7648_p4 = scmp.ne.s32.totalorder %s10773_s23, %s7647_s7  ;;  %p7652_p9 = scmp.lt.s32.totalorder %s10773_s23, %s10823_s5 }
 0x34c   : > { %p7653_p10 = scmp.lt.s32.totalorder %s7651_s10, %s7647_s7 }
 0x34d   : > { %p7649_p7 = pnand %p7648_p4, %p7767_p5 }
 0x34e   : > { %p7654_p11 = por %p7653_p10, %p7652_p9 }
 0x34f   : > { %p7650_p8 = pneg %p7649_p7 }
 0x351   : > { %p7655_p12 = pnand %p7654_p11, %p7650_p8 }
 0x353   : > { %7658 = shalt.err (!%p7655_p12)
}
 0x354   : > { %s7697_s12 = smov 384   ;;  %s7698_s13 = smov 24  }
 0x355   : > { %6774 = dma.vmem_to_hbm [thread:$0]  (%p7767_p5), %s10768_s14, 3072, %s10773_s23, %s10778_s17, %s7697_s12, %s7697_s12, %s7698_s13  }
 0x356 PF: > { %p6780_p13 = scmp.ge.s32.totalorder %s7693_s21, 2  ;;  %s5897_s15 = sand.u32 1, %s7681_s18  }
 0x357   : > { %s5898_s16 = scalar_lea.sflag [#allocation3], %s5897_s15 }
 0x358   : > { %p6777_p0 = pnand %p6780_p13, %p7771_p6 }
 0x35a   : > { %p6778_p1 = pneg %p6777_p0 }
 0x35c   : > { %7676 = dma.done.wait (%p6778_p1), %s5898_s16, 3072  }
 0x35d   : > { %7678 = vsyncadd (%p6778_p1), %s5898_s16, 4294964224  ;;  %p15_p2 = scmp.ge.s32.totalorder %s7754_s24, 4   ;;  %s10960_s18 = smov %s7685_s19 }
 0x35e   : > { %s10961_s19 = smov %s7689_s20  ;;  %s10962_s20 = smov %s7765_s27 }
 0x35f   : > { %s10963_s21 = smov %s7754_s24  ;;  %17 = sbr.rel (!%p15_p2) target bundleno = 3 (0x3), region = 75 }
 0x364   :  { %5903 = vsyncpa [#allocation3], 1 }
 0x365   :  { %5905 = vsyncpa [#allocation3 + $0x1], 1 }

</bundles_post_ra>
